<compile_context>
chip_gen: v7x
topology: tpu7x:2x2x1
jax: 0.10.0
libtpu: 0.0.40
codegen_flags: <defaults>
</compile_context>

<pallas_src>
import functools

import jax
import jax.numpy as jnp
from jax.experimental import pallas as pl
from jax.experimental.pallas import tpu as pltpu

LN_EPS = 1e-5                        # torch.nn.LayerNorm default
MATMUL_DTYPE = jnp.bfloat16          # MXU operand dtype (accumulate in f32)
VMEM_LIMIT_BYTES = 32 * 1024 * 1024  # safe on v5e/v6e (128 MiB) and v7x (64 MiB)


def _round_up(x, m):
    return (x + m - 1) // m * m


# ----------------------------- in-kernel helpers -----------------------------
def _layernorm(x, gamma, beta):
    mu = jnp.mean(x, axis=-1, keepdims=True)
    var = jnp.mean((x - mu) ** 2, axis=-1, keepdims=True)
    return (x - mu) * jax.lax.rsqrt(var + LN_EPS) * gamma + beta


def _softmax(a):
    m = jnp.max(a, axis=-1, keepdims=True)
    e = jnp.exp(a - m)
    s = jnp.sum(e, axis=-1, keepdims=True)
    return e * pl.reciprocal(s, approx=True)


def _gelu_exact(x):
    # torch.nn.GELU default = exact (erf based)
    return 0.5 * x * (1.0 + jax.lax.erf(x * (1.0 / jnp.sqrt(2.0))))


# -------------- kernel 1: norm1 + window attention + proj + residual ---------
def _attn_kernel(x_ref, g1_ref, b1_ref, wqkv_ref, bqkv_ref, wpm_ref, wps_ref,
                 bp_ref, o_ref, *, num_heads):
    xw = x_ref[...]                                    # (WB, Nw, C) block of windows
    WB, Nw, C = xw.shape
    hd = C // num_heads
    half = Nw // 2
    M = WB * Nw

    x32 = xw.reshape(M, C).astype(jnp.float32)
    xn = _layernorm(x32, g1_ref[...], b1_ref[...]).astype(MATMUL_DTYPE)

    # One fused QKV projection for self + mutual attention -> (M, 6C), f32 acc.
    # Column layout: [q_self | k_self | v_self | q_mut | k_mut | v_mut], each C
    # wide, head-major inside each C block.  The qk scale is folded into the q
    # columns (weights + bias) at pack time.
    qkv = jnp.dot(xn, wqkv_ref[...], preferred_element_type=jnp.float32) + bqkv_ref[...]

    def attend(q, k, v):
        # q, k, v: (B, L, hd) f32; batched over all windows in this block.
        s = jnp.einsum("bqd,bkd->bqk", q.astype(MATMUL_DTYPE), k.astype(MATMUL_DTYPE),
                       preferred_element_type=jnp.float32)
        pr = _softmax(s)
        return jnp.einsum("bqk,bkd->bqd", pr.astype(MATMUL_DTYPE), v.astype(MATMUL_DTYPE),
                          preferred_element_type=jnp.float32)

    self_heads, mut_heads = [], []
    for h in range(num_heads):          # static, small; every iter is window-batched
        c0 = h * hd
        q_s = qkv[:, 0 * C + c0:0 * C + c0 + hd].reshape(WB, Nw, hd)
        k_s = qkv[:, 1 * C + c0:1 * C + c0 + hd].reshape(WB, Nw, hd)
        v_s = qkv[:, 2 * C + c0:2 * C + c0 + hd].reshape(WB, Nw, hd)
        self_heads.append(attend(q_s, k_s, v_s).reshape(M, hd))

        q_m = qkv[:, 3 * C + c0:3 * C + c0 + hd].reshape(WB, Nw, hd)
        k_m = qkv[:, 4 * C + c0:4 * C + c0 + hd].reshape(WB, Nw, hd)
        v_m = qkv[:, 5 * C + c0:5 * C + c0 + hd].reshape(WB, Nw, hd)
        # mutual attention: out[:half] = attn(q2, k1, v1), out[half:] = attn(q1, k2, v2)
        x1 = attend(q_m[:, half:], k_m[:, :half], v_m[:, :half])   # (WB, half, hd)
        x2 = attend(q_m[:, :half], k_m[:, half:], v_m[:, half:])
        mut_heads.append(jnp.concatenate([x1, x2], axis=1).reshape(M, hd))

    x_self = jnp.concatenate(self_heads, axis=-1)      # (M, C)
    x_mut = jnp.concatenate(mut_heads, axis=-1)        # (M, C)

    # proj(cat([x_mut, x_self], -1)) == x_mut @ Wp[:C] + x_self @ Wp[C:]
    out = (jnp.dot(x_mut.astype(MATMUL_DTYPE), wpm_ref[...],
                   preferred_element_type=jnp.float32)
           + jnp.dot(x_self.astype(MATMUL_DTYPE), wps_ref[...],
                     preferred_element_type=jnp.float32)
           + bp_ref[...])

    # fused residual (window_partition/reverse commute with the per-token add)
    o_ref[...] = (xw.astype(jnp.float32) + out.reshape(WB, Nw, C)).astype(o_ref.dtype)


def window_attention_pallas(x_windows, p, num_heads, wb_cap=32):
    Bw, Nw, C = x_windows.shape
    assert C % num_heads == 0 and Nw % 2 == 0

    steps = pl.cdiv(Bw, wb_cap)
    if Bw > 1:
        steps = max(steps, 2)           # keep >= 2 grid steps for v7x megacore
    WB = pl.cdiv(Bw, steps)
    Bp = _round_up(Bw, WB)
    xin = jnp.pad(x_windows, ((0, Bp - Bw), (0, 0), (0, 0))) if Bp != Bw else x_windows

    kernel = functools.partial(_attn_kernel, num_heads=num_heads)

    def full(shape):
        return pl.BlockSpec(shape, lambda b, _s=shape: (0,) * len(_s))

    out = pl.pallas_call(
        kernel,
        out_shape=jax.ShapeDtypeStruct((Bp, Nw, C), x_windows.dtype),
        grid=(Bp // WB,),
        in_specs=[
            pl.BlockSpec((WB, Nw, C), lambda b: (b, 0, 0)),
            full(p["g1"].shape), full(p["b1"].shape),
            full(p["wqkv"].shape), full(p["bqkv"].shape),
            full(p["wproj_mut"].shape), full(p["wproj_self"].shape),
            full(p["bproj"].shape),
        ],
        out_specs=pl.BlockSpec((WB, Nw, C), lambda b: (b, 0, 0)),
        compiler_params=pltpu.CompilerParams(
            dimension_semantics=("parallel",),
            vmem_limit_bytes=VMEM_LIMIT_BYTES),
    )(xin, p["g1"], p["b1"], p["wqkv"], p["bqkv"],
      p["wproj_mut"], p["wproj_self"], p["bproj"])
    return out[:Bw] if Bp != Bw else out


# ---------------- kernel 2: norm2 + GEGLU MLP + residual ----------------------
def _mlp_kernel(x_ref, g2_ref, b2_ref, w1_ref, b1_ref, w2_ref, bo_ref, o_ref, *, hidden):
    x = x_ref[...].astype(jnp.float32)                  # (TM, C)
    xn = _layernorm(x, g2_ref[...], b2_ref[...])
    h12 = jnp.dot(xn.astype(MATMUL_DTYPE), w1_ref[...],
                  preferred_element_type=jnp.float32) + b1_ref[...]   # (TM, 2H)
    h = _gelu_exact(h12[:, :hidden]) * h12[:, hidden:]
    out = jnp.dot(h.astype(MATMUL_DTYPE), w2_ref[...],
                  preferred_element_type=jnp.float32) + bo_ref[...]
    o_ref[...] = (x + out).astype(o_ref.dtype)          # fused residual


def mlp_geglu_pallas(tokens, p, tile_cap=1024):
    T, C = tokens.shape
    hidden = p["w2"].shape[0]

    steps = pl.cdiv(T, tile_cap)
    if T > 8:
        steps = max(steps, 2)           # keep >= 2 grid steps for v7x megacore
    tile_m = _round_up(pl.cdiv(T, steps), 8)
    Tp = _round_up(T, tile_m)
    xin = jnp.pad(tokens, ((0, Tp - T), (0, 0))) if Tp != T else tokens

    kernel = functools.partial(_mlp_kernel, hidden=hidden)

    def full(shape):
        return pl.BlockSpec(shape, lambda i, _s=shape: (0,) * len(_s))

    out = pl.pallas_call(
        kernel,
        out_shape=jax.ShapeDtypeStruct((Tp, C), tokens.dtype),
        grid=(Tp // tile_m,),
        in_specs=[
            pl.BlockSpec((tile_m, C), lambda i: (i, 0)),
            full(p["g2"].shape), full(p["b2"].shape),
            full(p["w11_12"].shape), full(p["b11_12"].shape),
            full(p["w2"].shape), full(p["bo"].shape),
        ],
        out_specs=pl.BlockSpec((tile_m, C), lambda i: (i, 0)),
        compiler_params=pltpu.CompilerParams(
            dimension_semantics=("parallel",),
            vmem_limit_bytes=VMEM_LIMIT_BYTES),
    )(xin, p["g2"], p["b2"], p["w11_12"], p["b11_12"], p["w2"], p["bo"])
    return out[:T] if Tp != T else out


# ------------------------------ JAX glue --------------------------------------
def window_partition(x, wps):
    N, D, H, W, C = x.shape
    x = x.reshape(N // wps[0], wps[0], D // wps[1], wps[1],
                  H // wps[2], wps[2], W // wps[3], wps[3], C)
    x = jnp.transpose(x, (0, 2, 4, 6, 1, 3, 5, 7, 8))
    return x.reshape(-1, wps[0] * wps[1] * wps[2] * wps[3], C)


def window_reverse(windows, wps, N, D, H, W):
    x = windows.reshape(N // wps[0], D // wps[1], H // wps[2], W // wps[3],
                        wps[0], wps[1], wps[2], wps[3], -1)
    x = jnp.transpose(x, (0, 4, 1, 5, 2, 6, 3, 7, 8))
    return x.reshape(N, D, H, W, -1)


def tmsa_forward(x, packed, *, window_size, num_heads):
    N, D, H, W, C = x.shape
    # forward_part1: norm1 + windowed self/mutual attention + proj + residual (fused).
    # Input dims divide window_size so F.pad is a no-op; shift_size == 0.
    # TODO(synk): cyclic-shift (roll_block) + attention-mask branch not implemented (shift_size == 0).
    # TODO(synk): window_partition/reverse still done by XLA transposes; could be folded into a
    #             4-D-grid BlockSpec over the 5-D tensor to save two HBM passes.
    x_windows = window_partition(x, window_size)                # (Bw, Nw, C)
    y_windows = window_attention_pallas(x_windows, packed, num_heads)
    # forward_part2: norm2 + GEGLU MLP + residual (fused). The MLP is pointwise over
    # tokens, so it runs directly on window-ordered tokens; only one reverse at the end.
    Bw, Nw, _ = y_windows.shape
    z_tokens = mlp_geglu_pallas(y_windows.reshape(Bw * Nw, C), packed)
    return window_reverse(z_tokens.reshape(Bw, Nw, C), window_size, N, D, H, W)


def init_params(key, dim, num_heads, mlp_ratio=2.0):
    """Torch-module-like parameters (Linear weights stored pre-transposed: y = x @ W + b)."""
    hidden = int(dim * mlp_ratio)
    keys = jax.random.split(key, 12)

    def w(k, shape):
        return 0.02 * jax.random.normal(k, shape, jnp.float32)

    return {
        "g1": jnp.ones((1, dim), jnp.float32), "b1": jnp.zeros((1, dim), jnp.float32),
        "wqkv_self": w(keys[0], (dim, 3 * dim)), "bqkv_self": w(keys[1], (1, 3 * dim)),
        "wqkv_mut": w(keys[2], (dim, 3 * dim)), "bqkv_mut": w(keys[3], (1, 3 * dim)),
        "wproj": w(keys[4], (2 * dim, dim)), "bproj": w(keys[5], (1, dim)),
        "g2": jnp.ones((1, dim), jnp.float32), "b2": jnp.zeros((1, dim), jnp.float32),
        "w11": w(keys[6], (dim, hidden)), "b11": w(keys[7], (1, hidden)),
        "w12": w(keys[8], (dim, hidden)), "b12": w(keys[9], (1, hidden)),
        "w2": w(keys[10], (hidden, dim)), "bo": w(keys[11], (1, dim)),
    }


def pack_tmsa_params(p, dim, num_heads, matmul_dtype=MATMUL_DTYPE):
    """One-time packing: fuse QKV weights, fold the qk scale into q, split proj, fuse GEGLU."""
    scale = (dim // num_heads) ** (-0.5)

    def fold_scale(w, b):
        # q occupies the first `dim` output columns of the (dim, 3*dim) qkv weight
        return w.at[:, :dim].multiply(scale), b.at[:, :dim].multiply(scale)

    wqs, bqs = fold_scale(p["wqkv_self"], p["bqkv_self"])
    wqm, bqm = fold_scale(p["wqkv_mut"], p["bqkv_mut"])
    f32 = jnp.float32
    return {
        "g1": p["g1"].astype(f32), "b1": p["b1"].astype(f32),
        "wqkv": jnp.concatenate([wqs, wqm], axis=1).astype(matmul_dtype),      # (C, 6C)
        "bqkv": jnp.concatenate([bqs, bqm], axis=1).astype(f32),               # (1, 6C)
        "wproj_mut": p["wproj"][:dim].astype(matmul_dtype),                    # (C, C)
        "wproj_self": p["wproj"][dim:].astype(matmul_dtype),                   # (C, C)
        "bproj": p["bproj"].astype(f32),
        "g2": p["g2"].astype(f32), "b2": p["b2"].astype(f32),
        "w11_12": jnp.concatenate([p["w11"], p["w12"]], axis=1).astype(matmul_dtype),  # (C, 2H)
        "b11_12": jnp.concatenate([p["b11"], p["b12"]], axis=1).astype(f32),           # (1, 2H)
        "w2": p["w2"].astype(matmul_dtype),
        "bo": p["bo"].astype(f32),
    }


if __name__ == "__main__":
    key = jax.random.PRNGKey(0)
    k_x, k_p = jax.random.split(key)

    dim, num_heads = 32, 2
    window_size = (2, 2, 4, 4)           # (Nw_t, Dw, Hw, Ww) -> 64 tokens / window
    # x: (N, D, H, W, C), divisible by window_size so padding is a no-op.
    x = jax.random.normal(k_x, (2, 2, 8, 8, dim), jnp.float32)
    params = init_params(k_p, dim, num_heads)
    packed = pack_tmsa_params(params, dim, num_heads)

    fwd = jax.jit(functools.partial(tmsa_forward,
                                    window_size=window_size,
                                    num_heads=num_heads))
    out = fwd(x, packed)
    jax.block_until_ready(out)
    assert out.shape == x.shape and out.dtype == x.dtype
    print("KERNEL_OK")
</pallas_src>

<mosaic_0001>
module attributes {stable_mosaic.version = 11 : i64} {
  func.func @_mlp_kernel(%arg0: i32, %arg1: memref<128x32xf32, #tpu.memory_space<vmem>>, %arg2: memref<1x32xf32, #tpu.memory_space<vmem>>, %arg3: memref<1x32xf32, #tpu.memory_space<vmem>>, %arg4: memref<32x128xbf16, #tpu.memory_space<vmem>>, %arg5: memref<1x128xf32, #tpu.memory_space<vmem>>, %arg6: memref<64x32xbf16, #tpu.memory_space<vmem>>, %arg7: memref<1x32xf32, #tpu.memory_space<vmem>>, %arg8: memref<128x32xf32, #tpu.memory_space<vmem>>) attributes {dimension_semantics = [#tpu.dimension_semantics<parallel>], iteration_bounds = array<i64: 2>, scalar_prefetch = 0 : i64, scratch_operands = 0 : i64, tpu.core_type = #tpu.core_type<tc>, window_params = [{transform_indices = @transform_0, window_bounds = array<i64: 128, 32>}, {pipeline_mode = #tpu.pipeline_mode<synchronous>, transform_indices = @transform_1, window_bounds = array<i64: 1, 32>}, {pipeline_mode = #tpu.pipeline_mode<synchronous>, transform_indices = @transform_2, window_bounds = array<i64: 1, 32>}, {pipeline_mode = #tpu.pipeline_mode<synchronous>, transform_indices = @transform_3, window_bounds = array<i64: 32, 128>}, {pipeline_mode = #tpu.pipeline_mode<synchronous>, transform_indices = @transform_4, window_bounds = array<i64: 1, 128>}, {pipeline_mode = #tpu.pipeline_mode<synchronous>, transform_indices = @transform_5, window_bounds = array<i64: 64, 32>}, {pipeline_mode = #tpu.pipeline_mode<synchronous>, transform_indices = @transform_6, window_bounds = array<i64: 1, 32>}, {transform_indices = @transform_7, window_bounds = array<i64: 128, 32>}]} {
    %c0 = arith.constant 0 : index
    %c0_0 = arith.constant 0 : index
    %0 = vector.load %arg1[%c0, %c0_0] : memref<128x32xf32, #tpu.memory_space<vmem>>, vector<128x32xf32>
    %c0_1 = arith.constant 0 : index
    %c0_2 = arith.constant 0 : index
    %1 = vector.load %arg2[%c0_1, %c0_2] : memref<1x32xf32, #tpu.memory_space<vmem>>, vector<1x32xf32>
    %c0_3 = arith.constant 0 : index
    %c0_4 = arith.constant 0 : index
    %2 = vector.load %arg3[%c0_3, %c0_4] : memref<1x32xf32, #tpu.memory_space<vmem>>, vector<1x32xf32>
    %cst = arith.constant dense<0.000000e+00> : vector<128xf32>
    %3 = vector.multi_reduction <add>, %0, %cst [1] : vector<128x32xf32> to vector<128xf32>
    %4 = vector.shape_cast %3 : vector<128xf32> to vector<128x1xf32>
    %cst_5 = arith.constant 3.200000e+01 : f32
    %5 = vector.broadcast %cst_5 : f32 to vector<128x1xf32>
    %6 = arith.divf %4, %5 : vector<128x1xf32>
    %7 = vector.broadcast %6 : vector<128x1xf32> to vector<128x32xf32>
    %8 = arith.subf %0, %7 : vector<128x32xf32>
    %9 = arith.mulf %8, %8 : vector<128x32xf32>
    %cst_6 = arith.constant dense<0.000000e+00> : vector<128xf32>
    %10 = vector.multi_reduction <add>, %9, %cst_6 [1] : vector<128x32xf32> to vector<128xf32>
    %11 = vector.shape_cast %10 : vector<128xf32> to vector<128x1xf32>
    %cst_7 = arith.constant 3.200000e+01 : f32
    %12 = vector.broadcast %cst_7 : f32 to vector<128x1xf32>
    %13 = arith.divf %11, %12 : vector<128x1xf32>
    %14 = vector.broadcast %6 : vector<128x1xf32> to vector<128x32xf32>
    %15 = arith.subf %0, %14 : vector<128x32xf32>
    %cst_8 = arith.constant 9.99999974E-6 : f32
    %16 = vector.broadcast %cst_8 : f32 to vector<128x1xf32>
    %17 = arith.addf %13, %16 : vector<128x1xf32>
    %18 = math.rsqrt %17 : vector<128x1xf32>
    %19 = vector.broadcast %18 : vector<128x1xf32> to vector<128x32xf32>
    %20 = arith.mulf %15, %19 : vector<128x32xf32>
    %21 = vector.broadcast %1 : vector<1x32xf32> to vector<128x32xf32>
    %22 = arith.mulf %20, %21 : vector<128x32xf32>
    %23 = vector.broadcast %2 : vector<1x32xf32> to vector<128x32xf32>
    %24 = arith.addf %22, %23 : vector<128x32xf32>
    %25 = arith.truncf %24 : vector<128x32xf32> to vector<128x32xbf16>
    %c0_9 = arith.constant 0 : index
    %c0_10 = arith.constant 0 : index
    %26 = vector.load %arg4[%c0_9, %c0_10] : memref<32x128xbf16, #tpu.memory_space<vmem>>, vector<32x128xbf16>
    %cst_11 = arith.constant dense<0.000000e+00> : vector<128x128xf32>
    %27 = tpu.matmul %25, %26, %cst_11 {dimension_numbers = #tpu.dot_dimension_numbers<[1], [0], [0], [1], [0, 0, 1, 1], [], []>} : vector<128x32xbf16>, vector<32x128xbf16>, vector<128x128xf32> -> vector<128x128xf32>
    %c0_12 = arith.constant 0 : index
    %c0_13 = arith.constant 0 : index
    %28 = vector.load %arg5[%c0_12, %c0_13] : memref<1x128xf32, #tpu.memory_space<vmem>>, vector<1x128xf32>
    %29 = vector.broadcast %28 : vector<1x128xf32> to vector<128x128xf32>
    %30 = arith.addf %27, %29 : vector<128x128xf32>
    %31 = vector.extract_strided_slice %30 {offsets = [0, 0], sizes = [128, 64], strides = [1, 1]} : vector<128x128xf32> to vector<128x64xf32>
    %cst_14 = arith.constant 5.000000e-01 : f32
    %32 = vector.broadcast %cst_14 : f32 to vector<128x64xf32>
    %33 = arith.mulf %32, %31 : vector<128x64xf32>
    %cst_15 = arith.constant 2.000000e+00 : f32
    %34 = math.sqrt %cst_15 : f32
    %cst_16 = arith.constant 1.000000e+00 : f32
    %35 = arith.divf %cst_16, %34 : f32
    %36 = vector.broadcast %35 : f32 to vector<128x64xf32>
    %37 = arith.mulf %31, %36 : vector<128x64xf32>
    %38 = math.erf %37 : vector<128x64xf32>
    %cst_17 = arith.constant 1.000000e+00 : f32
    %39 = vector.broadcast %cst_17 : f32 to vector<128x64xf32>
    %40 = arith.addf %39, %38 : vector<128x64xf32>
    %41 = arith.mulf %33, %40 : vector<128x64xf32>
    %42 = vector.extract_strided_slice %30 {offsets = [0, 64], sizes = [128, 64], strides = [1, 1]} : vector<128x128xf32> to vector<128x64xf32>
    %43 = arith.mulf %41, %42 : vector<128x64xf32>
    %44 = arith.truncf %43 : vector<128x64xf32> to vector<128x64xbf16>
    %c0_18 = arith.constant 0 : index
    %c0_19 = arith.constant 0 : index
    %45 = vector.load %arg6[%c0_18, %c0_19] : memref<64x32xbf16, #tpu.memory_space<vmem>>, vector<64x32xbf16>
    %cst_20 = arith.constant dense<0.000000e+00> : vector<128x32xf32>
    %46 = tpu.matmul %44, %45, %cst_20 {dimension_numbers = #tpu.dot_dimension_numbers<[1], [0], [0], [1], [0, 0, 1, 1], [], []>} : vector<128x64xbf16>, vector<64x32xbf16>, vector<128x32xf32> -> vector<128x32xf32>
    %c0_21 = arith.constant 0 : index
    %c0_22 = arith.constant 0 : index
    %47 = vector.load %arg7[%c0_21, %c0_22] : memref<1x32xf32, #tpu.memory_space<vmem>>, vector<1x32xf32>
    %48 = vector.broadcast %47 : vector<1x32xf32> to vector<128x32xf32>
    %49 = arith.addf %46, %48 : vector<128x32xf32>
    %50 = arith.addf %0, %49 : vector<128x32xf32>
    %c0_23 = arith.constant 0 : index
    %c0_24 = arith.constant 0 : index
    %51 = vector.load %arg8[%c0_23, %c0_24] : memref<128x32xf32, #tpu.memory_space<vmem>>, vector<128x32xf32>
    tpu.vector_store %arg8[%c0_23, %c0_24], %50 {strides = array<i32>} : memref<128x32xf32, #tpu.memory_space<vmem>>, vector<128x32xf32>,
    return
  }
  func.func @transform_0(%arg0: i32) -> (i32, i32) {
    %c0_i32 = arith.constant 0 : i32
    %c0_i32_0 = arith.constant 0 : i32
    return %arg0, %c0_i32 : i32, i32
  }
  func.func @transform_1(%arg0: i32) -> (i32, i32) {
    %c0_i32 = arith.constant 0 : i32
    %c0_i32_0 = arith.constant 0 : i32
    %c0_i32_1 = arith.constant 0 : i32
    return %c0_i32, %c0_i32_0 : i32, i32
  }
  func.func @transform_2(%arg0: i32) -> (i32, i32) {
    %c0_i32 = arith.constant 0 : i32
    %c0_i32_0 = arith.constant 0 : i32
    %c0_i32_1 = arith.constant 0 : i32
    return %c0_i32, %c0_i32_0 : i32, i32
  }
  func.func @transform_3(%arg0: i32) -> (i32, i32) {
    %c0_i32 = arith.constant 0 : i32
    %c0_i32_0 = arith.constant 0 : i32
    %c0_i32_1 = arith.constant 0 : i32
    return %c0_i32, %c0_i32_0 : i32, i32
  }
  func.func @transform_4(%arg0: i32) -> (i32, i32) {
    %c0_i32 = arith.constant 0 : i32
    %c0_i32_0 = arith.constant 0 : i32
    %c0_i32_1 = arith.constant 0 : i32
    return %c0_i32, %c0_i32_0 : i32, i32
  }
  func.func @transform_5(%arg0: i32) -> (i32, i32) {
    %c0_i32 = arith.constant 0 : i32
    %c0_i32_0 = arith.constant 0 : i32
    %c0_i32_1 = arith.constant 0 : i32
    return %c0_i32, %c0_i32_0 : i32, i32
  }
  func.func @transform_6(%arg0: i32) -> (i32, i32) {
    %c0_i32 = arith.constant 0 : i32
    %c0_i32_0 = arith.constant 0 : i32
    %c0_i32_1 = arith.constant 0 : i32
    return %c0_i32, %c0_i32_0 : i32, i32
  }
  func.func @transform_7(%arg0: i32) -> (i32, i32) {
    %c0_i32 = arith.constant 0 : i32
    %c0_i32_0 = arith.constant 0 : i32
    return %arg0, %c0_i32 : i32, i32
  }
}

module attributes {stable_mosaic.version = 11 : i64} {
  func.func @_attn_kernel(%arg0: i32, %arg1: memref<2x64x32xf32, #tpu.memory_space<vmem>>, %arg2: memref<1x32xf32, #tpu.memory_space<vmem>>, %arg3: memref<1x32xf32, #tpu.memory_space<vmem>>, %arg4: memref<32x192xbf16, #tpu.memory_space<vmem>>, %arg5: memref<1x192xf32, #tpu.memory_space<vmem>>, %arg6: memref<32x32xbf16, #tpu.memory_space<vmem>>, %arg7: memref<32x32xbf16, #tpu.memory_space<vmem>>, %arg8: memref<1x32xf32, #tpu.memory_space<vmem>>, %arg9: memref<2x64x32xf32, #tpu.memory_space<vmem>>) attributes {dimension_semantics = [#tpu.dimension_semantics<parallel>], iteration_bounds = array<i64: 2>, scalar_prefetch = 0 : i64, scratch_operands = 0 : i64, tpu.core_type = #tpu.core_type<tc>, window_params = [{transform_indices = @transform_0, window_bounds = array<i64: 2, 64, 32>}, {pipeline_mode = #tpu.pipeline_mode<synchronous>, transform_indices = @transform_1, window_bounds = array<i64: 1, 32>}, {pipeline_mode = #tpu.pipeline_mode<synchronous>, transform_indices = @transform_2, window_bounds = array<i64: 1, 32>}, {pipeline_mode = #tpu.pipeline_mode<synchronous>, transform_indices = @transform_3, window_bounds = array<i64: 32, 192>}, {pipeline_mode = #tpu.pipeline_mode<synchronous>, transform_indices = @transform_4, window_bounds = array<i64: 1, 192>}, {pipeline_mode = #tpu.pipeline_mode<synchronous>, transform_indices = @transform_5, window_bounds = array<i64: 32, 32>}, {pipeline_mode = #tpu.pipeline_mode<synchronous>, transform_indices = @transform_6, window_bounds = array<i64: 32, 32>}, {pipeline_mode = #tpu.pipeline_mode<synchronous>, transform_indices = @transform_7, window_bounds = array<i64: 1, 32>}, {transform_indices = @transform_8, window_bounds = array<i64: 2, 64, 32>}]} {
    %c0 = arith.constant 0 : index
    %c0_0 = arith.constant 0 : index
    %c0_1 = arith.constant 0 : index
    %0 = vector.load %arg1[%c0, %c0_0, %c0_1] : memref<2x64x32xf32, #tpu.memory_space<vmem>>, vector<2x64x32xf32>
    %1 = vector.shape_cast %0 : vector<2x64x32xf32> to vector<128x32xf32>
    %c0_2 = arith.constant 0 : index
    %c0_3 = arith.constant 0 : index
    %2 = vector.load %arg2[%c0_2, %c0_3] : memref<1x32xf32, #tpu.memory_space<vmem>>, vector<1x32xf32>
    %c0_4 = arith.constant 0 : index
    %c0_5 = arith.constant 0 : index
    %3 = vector.load %arg3[%c0_4, %c0_5] : memref<1x32xf32, #tpu.memory_space<vmem>>, vector<1x32xf32>
    %cst = arith.constant dense<0.000000e+00> : vector<128xf32>
    %4 = vector.multi_reduction <add>, %1, %cst [1] : vector<128x32xf32> to vector<128xf32>
    %5 = vector.shape_cast %4 : vector<128xf32> to vector<128x1xf32>
    %cst_6 = arith.constant 3.200000e+01 : f32
    %6 = vector.broadcast %cst_6 : f32 to vector<128x1xf32>
    %7 = arith.divf %5, %6 : vector<128x1xf32>
    %8 = vector.broadcast %7 : vector<128x1xf32> to vector<128x32xf32>
    %9 = arith.subf %1, %8 : vector<128x32xf32>
    %10 = arith.mulf %9, %9 : vector<128x32xf32>
    %cst_7 = arith.constant dense<0.000000e+00> : vector<128xf32>
    %11 = vector.multi_reduction <add>, %10, %cst_7 [1] : vector<128x32xf32> to vector<128xf32>
    %12 = vector.shape_cast %11 : vector<128xf32> to vector<128x1xf32>
    %cst_8 = arith.constant 3.200000e+01 : f32
    %13 = vector.broadcast %cst_8 : f32 to vector<128x1xf32>
    %14 = arith.divf %12, %13 : vector<128x1xf32>
    %15 = vector.broadcast %7 : vector<128x1xf32> to vector<128x32xf32>
    %16 = arith.subf %1, %15 : vector<128x32xf32>
    %cst_9 = arith.constant 9.99999974E-6 : f32
    %17 = vector.broadcast %cst_9 : f32 to vector<128x1xf32>
    %18 = arith.addf %14, %17 : vector<128x1xf32>
    %19 = math.rsqrt %18 : vector<128x1xf32>
    %20 = vector.broadcast %19 : vector<128x1xf32> to vector<128x32xf32>
    %21 = arith.mulf %16, %20 : vector<128x32xf32>
    %22 = vector.broadcast %2 : vector<1x32xf32> to vector<128x32xf32>
    %23 = arith.mulf %21, %22 : vector<128x32xf32>
    %24 = vector.broadcast %3 : vector<1x32xf32> to vector<128x32xf32>
    %25 = arith.addf %23, %24 : vector<128x32xf32>
    %26 = arith.truncf %25 : vector<128x32xf32> to vector<128x32xbf16>
    %c0_10 = arith.constant 0 : index
    %c0_11 = arith.constant 0 : index
    %27 = vector.load %arg4[%c0_10, %c0_11] : memref<32x192xbf16, #tpu.memory_space<vmem>>, vector<32x192xbf16>
    %cst_12 = arith.constant dense<0.000000e+00> : vector<128x192xf32>
    %28 = tpu.matmul %26, %27, %cst_12 {dimension_numbers = #tpu.dot_dimension_numbers<[1], [0], [0], [1], [0, 0, 1, 1], [], []>} : vector<128x32xbf16>, vector<32x192xbf16>, vector<128x192xf32> -> vector<128x192xf32>
    %c0_13 = arith.constant 0 : index
    %c0_14 = arith.constant 0 : index
    %29 = vector.load %arg5[%c0_13, %c0_14] : memref<1x192xf32, #tpu.memory_space<vmem>>, vector<1x192xf32>
    %30 = vector.broadcast %29 : vector<1x192xf32> to vector<128x192xf32>
    %31 = arith.addf %28, %30 : vector<128x192xf32>
    %32 = vector.extract_strided_slice %31 {offsets = [0, 0], sizes = [128, 16], strides = [1, 1]} : vector<128x192xf32> to vector<128x16xf32>
    %33 = vector.shape_cast %32 : vector<128x16xf32> to vector<2x64x16xf32>
    %34 = vector.extract_strided_slice %31 {offsets = [0, 32], sizes = [128, 16], strides = [1, 1]} : vector<128x192xf32> to vector<128x16xf32>
    %35 = vector.shape_cast %34 : vector<128x16xf32> to vector<2x64x16xf32>
    %36 = vector.extract_strided_slice %31 {offsets = [0, 64], sizes = [128, 16], strides = [1, 1]} : vector<128x192xf32> to vector<128x16xf32>
    %37 = vector.shape_cast %36 : vector<128x16xf32> to vector<2x64x16xf32>
    %38 = arith.truncf %33 : vector<2x64x16xf32> to vector<2x64x16xbf16>
    %39 = arith.truncf %35 : vector<2x64x16xf32> to vector<2x64x16xbf16>
    "tpu.trace_start"() <{level = 10 : i32, message = "bqd,bkd->bqk"}> : () -> ()
    %cst_15 = arith.constant dense<0.000000e+00> : vector<2x64x64xf32>
    %40 = tpu.matmul %38, %39, %cst_15 {dimension_numbers = #tpu.dot_dimension_numbers<[2], [2], [1], [1], [0, 0, 0, 1, 1, 1], [0], [0]>} : vector<2x64x16xbf16>, vector<2x64x16xbf16>, vector<2x64x64xf32> -> vector<2x64x64xf32>
    "tpu.trace_stop"() : () -> ()
    %cst_16 = arith.constant dense<0xFF800000> : vector<2x64xf32>
    %41 = vector.multi_reduction <maximumf>, %40, %cst_16 [2] : vector<2x64x64xf32> to vector<2x64xf32>
    %42 = vector.shape_cast %41 : vector<2x64xf32> to vector<2x64x1xf32>
    %43 = vector.broadcast %42 : vector<2x64x1xf32> to vector<2x64x64xf32>
    %44 = arith.subf %40, %43 : vector<2x64x64xf32>
    %45 = math.exp %44 : vector<2x64x64xf32>
    %cst_17 = arith.constant dense<0.000000e+00> : vector<2x64xf32>
    %46 = vector.multi_reduction <add>, %45, %cst_17 [2] : vector<2x64x64xf32> to vector<2x64xf32>
    %47 = vector.shape_cast %46 : vector<2x64xf32> to vector<2x64x1xf32>
    %48 = tpu.reciprocal %47 {approx = true} : vector<2x64x1xf32> -> vector<2x64x1xf32>
    %49 = vector.broadcast %48 : vector<2x64x1xf32> to vector<2x64x64xf32>
    %50 = arith.mulf %45, %49 : vector<2x64x64xf32>
    %51 = arith.truncf %50 : vector<2x64x64xf32> to vector<2x64x64xbf16>
    %52 = arith.truncf %37 : vector<2x64x16xf32> to vector<2x64x16xbf16>
    "tpu.trace_start"() <{level = 10 : i32, message = "bqk,bkd->bqd"}> : () -> ()
    %cst_18 = arith.constant dense<0.000000e+00> : vector<2x64x16xf32>
    %53 = tpu.matmul %51, %52, %cst_18 {dimension_numbers = #tpu.dot_dimension_numbers<[2], [1], [1], [2], [0, 0, 0, 1, 1, 2], [0], [0]>} : vector<2x64x64xbf16>, vector<2x64x16xbf16>, vector<2x64x16xf32> -> vector<2x64x16xf32>
    "tpu.trace_stop"() : () -> ()
    %54 = vector.shape_cast %53 : vector<2x64x16xf32> to vector<128x16xf32>
    %55 = vector.extract_strided_slice %31 {offsets = [0, 96], sizes = [128, 16], strides = [1, 1]} : vector<128x192xf32> to vector<128x16xf32>
    %56 = vector.shape_cast %55 : vector<128x16xf32> to vector<2x64x16xf32>
    %57 = vector.extract_strided_slice %31 {offsets = [0, 128], sizes = [128, 16], strides = [1, 1]} : vector<128x192xf32> to vector<128x16xf32>
    %58 = vector.shape_cast %57 : vector<128x16xf32> to vector<2x64x16xf32>
    %59 = vector.extract_strided_slice %31 {offsets = [0, 160], sizes = [128, 16], strides = [1, 1]} : vector<128x192xf32> to vector<128x16xf32>
    %60 = vector.shape_cast %59 : vector<128x16xf32> to vector<2x64x16xf32>
    %61 = vector.extract_strided_slice %56 {offsets = [0, 32, 0], sizes = [2, 32, 16], strides = [1, 1, 1]} : vector<2x64x16xf32> to vector<2x32x16xf32>
    %62 = vector.extract_strided_slice %58 {offsets = [0, 0, 0], sizes = [2, 32, 16], strides = [1, 1, 1]} : vector<2x64x16xf32> to vector<2x32x16xf32>
    %63 = vector.extract_strided_slice %60 {offsets = [0, 0, 0], sizes = [2, 32, 16], strides = [1, 1, 1]} : vector<2x64x16xf32> to vector<2x32x16xf32>
    %64 = arith.truncf %61 : vector<2x32x16xf32> to vector<2x32x16xbf16>
    %65 = arith.truncf %62 : vector<2x32x16xf32> to vector<2x32x16xbf16>
    "tpu.trace_start"() <{level = 10 : i32, message = "bqd,bkd->bqk"}> : () -> ()
    %cst_19 = arith.constant dense<0.000000e+00> : vector<2x32x32xf32>
    %66 = tpu.matmul %64, %65, %cst_19 {dimension_numbers = #tpu.dot_dimension_numbers<[2], [2], [1], [1], [0, 0, 0, 1, 1, 1], [0], [0]>} : vector<2x32x16xbf16>, vector<2x32x16xbf16>, vector<2x32x32xf32> -> vector<2x32x32xf32>
    "tpu.trace_stop"() : () -> ()
    %cst_20 = arith.constant dense<0xFF800000> : vector<2x32xf32>
    %67 = vector.multi_reduction <maximumf>, %66, %cst_20 [2] : vector<2x32x32xf32> to vector<2x32xf32>
    %68 = vector.shape_cast %67 : vector<2x32xf32> to vector<2x32x1xf32>
    %69 = vector.broadcast %68 : vector<2x32x1xf32> to vector<2x32x32xf32>
    %70 = arith.subf %66, %69 : vector<2x32x32xf32>
    %71 = math.exp %70 : vector<2x32x32xf32>
    %cst_21 = arith.constant dense<0.000000e+00> : vector<2x32xf32>
    %72 = vector.multi_reduction <add>, %71, %cst_21 [2] : vector<2x32x32xf32> to vector<2x32xf32>
    %73 = vector.shape_cast %72 : vector<2x32xf32> to vector<2x32x1xf32>
    %74 = tpu.reciprocal %73 {approx = true} : vector<2x32x1xf32> -> vector<2x32x1xf32>
    %75 = vector.broadcast %74 : vector<2x32x1xf32> to vector<2x32x32xf32>
    %76 = arith.mulf %71, %75 : vector<2x32x32xf32>
    %77 = arith.truncf %76 : vector<2x32x32xf32> to vector<2x32x32xbf16>
    %78 = arith.truncf %63 : vector<2x32x16xf32> to vector<2x32x16xbf16>
    "tpu.trace_start"() <{level = 10 : i32, message = "bqk,bkd->bqd"}> : () -> ()
    %cst_22 = arith.constant dense<0.000000e+00> : vector<2x32x16xf32>
    %79 = tpu.matmul %77, %78, %cst_22 {dimension_numbers = #tpu.dot_dimension_numbers<[2], [1], [1], [2], [0, 0, 0, 1, 1, 2], [0], [0]>} : vector<2x32x32xbf16>, vector<2x32x16xbf16>, vector<2x32x16xf32> -> vector<2x32x16xf32>
    "tpu.trace_stop"() : () -> ()
    %80 = vector.extract_strided_slice %56 {offsets = [0, 0, 0], sizes = [2, 32, 16], strides = [1, 1, 1]} : vector<2x64x16xf32> to vector<2x32x16xf32>
    %81 = vector.extract_strided_slice %58 {offsets = [0, 32, 0], sizes = [2, 32, 16], strides = [1, 1, 1]} : vector<2x64x16xf32> to vector<2x32x16xf32>
    %82 = vector.extract_strided_slice %60 {offsets = [0, 32, 0], sizes = [2, 32, 16], strides = [1, 1, 1]} : vector<2x64x16xf32> to vector<2x32x16xf32>
    %83 = arith.truncf %80 : vector<2x32x16xf32> to vector<2x32x16xbf16>
    %84 = arith.truncf %81 : vector<2x32x16xf32> to vector<2x32x16xbf16>
    "tpu.trace_start"() <{level = 10 : i32, message = "bqd,bkd->bqk"}> : () -> ()
    %cst_23 = arith.constant dense<0.000000e+00> : vector<2x32x32xf32>
    %85 = tpu.matmul %83, %84, %cst_23 {dimension_numbers = #tpu.dot_dimension_numbers<[2], [2], [1], [1], [0, 0, 0, 1, 1, 1], [0], [0]>} : vector<2x32x16xbf16>, vector<2x32x16xbf16>, vector<2x32x32xf32> -> vector<2x32x32xf32>
    "tpu.trace_stop"() : () -> ()
    %cst_24 = arith.constant dense<0xFF800000> : vector<2x32xf32>
    %86 = vector.multi_reduction <maximumf>, %85, %cst_24 [2] : vector<2x32x32xf32> to vector<2x32xf32>
    %87 = vector.shape_cast %86 : vector<2x32xf32> to vector<2x32x1xf32>
    %88 = vector.broadcast %87 : vector<2x32x1xf32> to vector<2x32x32xf32>
    %89 = arith.subf %85, %88 : vector<2x32x32xf32>
    %90 = math.exp %89 : vector<2x32x32xf32>
    %cst_25 = arith.constant dense<0.000000e+00> : vector<2x32xf32>
    %91 = vector.multi_reduction <add>, %90, %cst_25 [2] : vector<2x32x32xf32> to vector<2x32xf32>
    %92 = vector.shape_cast %91 : vector<2x32xf32> to vector<2x32x1xf32>
    %93 = tpu.reciprocal %92 {approx = true} : vector<2x32x1xf32> -> vector<2x32x1xf32>
    %94 = vector.broadcast %93 : vector<2x32x1xf32> to vector<2x32x32xf32>
    %95 = arith.mulf %90, %94 : vector<2x32x32xf32>
    %96 = arith.truncf %95 : vector<2x32x32xf32> to vector<2x32x32xbf16>
    %97 = arith.truncf %82 : vector<2x32x16xf32> to vector<2x32x16xbf16>
    "tpu.trace_start"() <{level = 10 : i32, message = "bqk,bkd->bqd"}> : () -> ()
    %cst_26 = arith.constant dense<0.000000e+00> : vector<2x32x16xf32>
    %98 = tpu.matmul %96, %97, %cst_26 {dimension_numbers = #tpu.dot_dimension_numbers<[2], [1], [1], [2], [0, 0, 0, 1, 1, 2], [0], [0]>} : vector<2x32x32xbf16>, vector<2x32x16xbf16>, vector<2x32x16xf32> -> vector<2x32x16xf32>
    "tpu.trace_stop"() : () -> ()
    %99 = tpu.concatenate %79, %98 in 1 : vector<2x32x16xf32>, vector<2x32x16xf32> -> vector<2x64x16xf32>
    %100 = vector.shape_cast %99 : vector<2x64x16xf32> to vector<128x16xf32>
    %101 = vector.extract_strided_slice %31 {offsets = [0, 16], sizes = [128, 16], strides = [1, 1]} : vector<128x192xf32> to vector<128x16xf32>
    %102 = vector.shape_cast %101 : vector<128x16xf32> to vector<2x64x16xf32>
    %103 = vector.extract_strided_slice %31 {offsets = [0, 48], sizes = [128, 16], strides = [1, 1]} : vector<128x192xf32> to vector<128x16xf32>
    %104 = vector.shape_cast %103 : vector<128x16xf32> to vector<2x64x16xf32>
    %105 = vector.extract_strided_slice %31 {offsets = [0, 80], sizes = [128, 16], strides = [1, 1]} : vector<128x192xf32> to vector<128x16xf32>
    %106 = vector.shape_cast %105 : vector<128x16xf32> to vector<2x64x16xf32>
    %107 = arith.truncf %102 : vector<2x64x16xf32> to vector<2x64x16xbf16>
    %108 = arith.truncf %104 : vector<2x64x16xf32> to vector<2x64x16xbf16>
    "tpu.trace_start"() <{level = 10 : i32, message = "bqd,bkd->bqk"}> : () -> ()
    %cst_27 = arith.constant dense<0.000000e+00> : vector<2x64x64xf32>
    %109 = tpu.matmul %107, %108, %cst_27 {dimension_numbers = #tpu.dot_dimension_numbers<[2], [2], [1], [1], [0, 0, 0, 1, 1, 1], [0], [0]>} : vector<2x64x16xbf16>, vector<2x64x16xbf16>, vector<2x64x64xf32> -> vector<2x64x64xf32>
    "tpu.trace_stop"() : () -> ()
    %cst_28 = arith.constant dense<0xFF800000> : vector<2x64xf32>
    %110 = vector.multi_reduction <maximumf>, %109, %cst_28 [2] : vector<2x64x64xf32> to vector<2x64xf32>
    %111 = vector.shape_cast %110 : vector<2x64xf32> to vector<2x64x1xf32>
    %112 = vector.broadcast %111 : vector<2x64x1xf32> to vector<2x64x64xf32>
    %113 = arith.subf %109, %112 : vector<2x64x64xf32>
    %114 = math.exp %113 : vector<2x64x64xf32>
    %cst_29 = arith.constant dense<0.000000e+00> : vector<2x64xf32>
    %115 = vector.multi_reduction <add>, %114, %cst_29 [2] : vector<2x64x64xf32> to vector<2x64xf32>
    %116 = vector.shape_cast %115 : vector<2x64xf32> to vector<2x64x1xf32>
    %117 = tpu.reciprocal %116 {approx = true} : vector<2x64x1xf32> -> vector<2x64x1xf32>
    %118 = vector.broadcast %117 : vector<2x64x1xf32> to vector<2x64x64xf32>
    %119 = arith.mulf %114, %118 : vector<2x64x64xf32>
    %120 = arith.truncf %119 : vector<2x64x64xf32> to vector<2x64x64xbf16>
    %121 = arith.truncf %106 : vector<2x64x16xf32> to vector<2x64x16xbf16>
    "tpu.trace_start"() <{level = 10 : i32, message = "bqk,bkd->bqd"}> : () -> ()
    %cst_30 = arith.constant dense<0.000000e+00> : vector<2x64x16xf32>
    %122 = tpu.matmul %120, %121, %cst_30 {dimension_numbers = #tpu.dot_dimension_numbers<[2], [1], [1], [2], [0, 0, 0, 1, 1, 2], [0], [0]>} : vector<2x64x64xbf16>, vector<2x64x16xbf16>, vector<2x64x16xf32> -> vector<2x64x16xf32>
    "tpu.trace_stop"() : () -> ()
    %123 = vector.shape_cast %122 : vector<2x64x16xf32> to vector<128x16xf32>
    %124 = vector.extract_strided_slice %31 {offsets = [0, 112], sizes = [128, 16], strides = [1, 1]} : vector<128x192xf32> to vector<128x16xf32>
    %125 = vector.shape_cast %124 : vector<128x16xf32> to vector<2x64x16xf32>
    %126 = vector.extract_strided_slice %31 {offsets = [0, 144], sizes = [128, 16], strides = [1, 1]} : vector<128x192xf32> to vector<128x16xf32>
    %127 = vector.shape_cast %126 : vector<128x16xf32> to vector<2x64x16xf32>
    %128 = vector.extract_strided_slice %31 {offsets = [0, 176], sizes = [128, 16], strides = [1, 1]} : vector<128x192xf32> to vector<128x16xf32>
    %129 = vector.shape_cast %128 : vector<128x16xf32> to vector<2x64x16xf32>
    %130 = vector.extract_strided_slice %125 {offsets = [0, 32, 0], sizes = [2, 32, 16], strides = [1, 1, 1]} : vector<2x64x16xf32> to vector<2x32x16xf32>
    %131 = vector.extract_strided_slice %127 {offsets = [0, 0, 0], sizes = [2, 32, 16], strides = [1, 1, 1]} : vector<2x64x16xf32> to vector<2x32x16xf32>
    %132 = vector.extract_strided_slice %129 {offsets = [0, 0, 0], sizes = [2, 32, 16], strides = [1, 1, 1]} : vector<2x64x16xf32> to vector<2x32x16xf32>
    %133 = arith.truncf %130 : vector<2x32x16xf32> to vector<2x32x16xbf16>
    %134 = arith.truncf %131 : vector<2x32x16xf32> to vector<2x32x16xbf16>
    "tpu.trace_start"() <{level = 10 : i32, message = "bqd,bkd->bqk"}> : () -> ()
    %cst_31 = arith.constant dense<0.000000e+00> : vector<2x32x32xf32>
    %135 = tpu.matmul %133, %134, %cst_31 {dimension_numbers = #tpu.dot_dimension_numbers<[2], [2], [1], [1], [0, 0, 0, 1, 1, 1], [0], [0]>} : vector<2x32x16xbf16>, vector<2x32x16xbf16>, vector<2x32x32xf32> -> vector<2x32x32xf32>
    "tpu.trace_stop"() : () -> ()
    %cst_32 = arith.constant dense<0xFF800000> : vector<2x32xf32>
    %136 = vector.multi_reduction <maximumf>, %135, %cst_32 [2] : vector<2x32x32xf32> to vector<2x32xf32>
    %137 = vector.shape_cast %136 : vector<2x32xf32> to vector<2x32x1xf32>
    %138 = vector.broadcast %137 : vector<2x32x1xf32> to vector<2x32x32xf32>
    %139 = arith.subf %135, %138 : vector<2x32x32xf32>
    %140 = math.exp %139 : vector<2x32x32xf32>
    %cst_33 = arith.constant dense<0.000000e+00> : vector<2x32xf32>
    %141 = vector.multi_reduction <add>, %140, %cst_33 [2] : vector<2x32x32xf32> to vector<2x32xf32>
    %142 = vector.shape_cast %141 : vector<2x32xf32> to vector<2x32x1xf32>
    %143 = tpu.reciprocal %142 {approx = true} : vector<2x32x1xf32> -> vector<2x32x1xf32>
    %144 = vector.broadcast %143 : vector<2x32x1xf32> to vector<2x32x32xf32>
    %145 = arith.mulf %140, %144 : vector<2x32x32xf32>
    %146 = arith.truncf %145 : vector<2x32x32xf32> to vector<2x32x32xbf16>
    %147 = arith.truncf %132 : vector<2x32x16xf32> to vector<2x32x16xbf16>
    "tpu.trace_start"() <{level = 10 : i32, message = "bqk,bkd->bqd"}> : () -> ()
    %cst_34 = arith.constant dense<0.000000e+00> : vector<2x32x16xf32>
    %148 = tpu.matmul %146, %147, %cst_34 {dimension_numbers = #tpu.dot_dimension_numbers<[2], [1], [1], [2], [0, 0, 0, 1, 1, 2], [0], [0]>} : vector<2x32x32xbf16>, vector<2x32x16xbf16>, vector<2x32x16xf32> -> vector<2x32x16xf32>
    "tpu.trace_stop"() : () -> ()
    %149 = vector.extract_strided_slice %125 {offsets = [0, 0, 0], sizes = [2, 32, 16], strides = [1, 1, 1]} : vector<2x64x16xf32> to vector<2x32x16xf32>
    %150 = vector.extract_strided_slice %127 {offsets = [0, 32, 0], sizes = [2, 32, 16], strides = [1, 1, 1]} : vector<2x64x16xf32> to vector<2x32x16xf32>
    %151 = vector.extract_strided_slice %129 {offsets = [0, 32, 0], sizes = [2, 32, 16], strides = [1, 1, 1]} : vector<2x64x16xf32> to vector<2x32x16xf32>
    %152 = arith.truncf %149 : vector<2x32x16xf32> to vector<2x32x16xbf16>
    %153 = arith.truncf %150 : vector<2x32x16xf32> to vector<2x32x16xbf16>
    "tpu.trace_start"() <{level = 10 : i32, message = "bqd,bkd->bqk"}> : () -> ()
    %cst_35 = arith.constant dense<0.000000e+00> : vector<2x32x32xf32>
    %154 = tpu.matmul %152, %153, %cst_35 {dimension_numbers = #tpu.dot_dimension_numbers<[2], [2], [1], [1], [0, 0, 0, 1, 1, 1], [0], [0]>} : vector<2x32x16xbf16>, vector<2x32x16xbf16>, vector<2x32x32xf32> -> vector<2x32x32xf32>
    "tpu.trace_stop"() : () -> ()
    %cst_36 = arith.constant dense<0xFF800000> : vector<2x32xf32>
    %155 = vector.multi_reduction <maximumf>, %154, %cst_36 [2] : vector<2x32x32xf32> to vector<2x32xf32>
    %156 = vector.shape_cast %155 : vector<2x32xf32> to vector<2x32x1xf32>
    %157 = vector.broadcast %156 : vector<2x32x1xf32> to vector<2x32x32xf32>
    %158 = arith.subf %154, %157 : vector<2x32x32xf32>
    %159 = math.exp %158 : vector<2x32x32xf32>
    %cst_37 = arith.constant dense<0.000000e+00> : vector<2x32xf32>
    %160 = vector.multi_reduction <add>, %159, %cst_37 [2] : vector<2x32x32xf32> to vector<2x32xf32>
    %161 = vector.shape_cast %160 : vector<2x32xf32> to vector<2x32x1xf32>
    %162 = tpu.reciprocal %161 {approx = true} : vector<2x32x1xf32> -> vector<2x32x1xf32>
    %163 = vector.broadcast %162 : vector<2x32x1xf32> to vector<2x32x32xf32>
    %164 = arith.mulf %159, %163 : vector<2x32x32xf32>
    %165 = arith.truncf %164 : vector<2x32x32xf32> to vector<2x32x32xbf16>
    %166 = arith.truncf %151 : vector<2x32x16xf32> to vector<2x32x16xbf16>
    "tpu.trace_start"() <{level = 10 : i32, message = "bqk,bkd->bqd"}> : () -> ()
    %cst_38 = arith.constant dense<0.000000e+00> : vector<2x32x16xf32>
    %167 = tpu.matmul %165, %166, %cst_38 {dimension_numbers = #tpu.dot_dimension_numbers<[2], [1], [1], [2], [0, 0, 0, 1, 1, 2], [0], [0]>} : vector<2x32x32xbf16>, vector<2x32x16xbf16>, vector<2x32x16xf32> -> vector<2x32x16xf32>
    "tpu.trace_stop"() : () -> ()
    %168 = tpu.concatenate %148, %167 in 1 : vector<2x32x16xf32>, vector<2x32x16xf32> -> vector<2x64x16xf32>
    %169 = vector.shape_cast %168 : vector<2x64x16xf32> to vector<128x16xf32>
    %170 = tpu.concatenate %54, %123 in 1 : vector<128x16xf32>, vector<128x16xf32> -> vector<128x32xf32>
    %171 = tpu.concatenate %100, %169 in 1 : vector<128x16xf32>, vector<128x16xf32> -> vector<128x32xf32>
    %172 = arith.truncf %171 : vector<128x32xf32> to vector<128x32xbf16>
    %c0_39 = arith.constant 0 : index
    %c0_40 = arith.constant 0 : index
    %173 = vector.load %arg6[%c0_39, %c0_40] : memref<32x32xbf16, #tpu.memory_space<vmem>>, vector<32x32xbf16>
    %cst_41 = arith.constant dense<0.000000e+00> : vector<128x32xf32>
    %174 = tpu.matmul %172, %173, %cst_41 {dimension_numbers = #tpu.dot_dimension_numbers<[1], [0], [0], [1], [0, 0, 1, 1], [], []>} : vector<128x32xbf16>, vector<32x32xbf16>, vector<128x32xf32> -> vector<128x32xf32>
    %175 = arith.truncf %170 : vector<128x32xf32> to vector<128x32xbf16>
    %c0_42 = arith.constant 0 : index
    %c0_43 = arith.constant 0 : index
    %176 = vector.load %arg7[%c0_42, %c0_43] : memref<32x32xbf16, #tpu.memory_space<vmem>>, vector<32x32xbf16>
    %cst_44 = arith.constant dense<0.000000e+00> : vector<128x32xf32>
    %177 = tpu.matmul %175, %176, %cst_44 {dimension_numbers = #tpu.dot_dimension_numbers<[1], [0], [0], [1], [0, 0, 1, 1], [], []>} : vector<128x32xbf16>, vector<32x32xbf16>, vector<128x32xf32> -> vector<128x32xf32>
    %178 = arith.addf %174, %177 : vector<128x32xf32>
    %c0_45 = arith.constant 0 : index
    %c0_46 = arith.constant 0 : index
    %179 = vector.load %arg8[%c0_45, %c0_46] : memref<1x32xf32, #tpu.memory_space<vmem>>, vector<1x32xf32>
    %180 = vector.broadcast %179 : vector<1x32xf32> to vector<128x32xf32>
    %181 = arith.addf %178, %180 : vector<128x32xf32>
    %182 = vector.shape_cast %181 : vector<128x32xf32> to vector<2x64x32xf32>
    %183 = arith.addf %0, %182 : vector<2x64x32xf32>
    %c0_47 = arith.constant 0 : index
    %c0_48 = arith.constant 0 : index
    %c0_49 = arith.constant 0 : index
    %184 = vector.load %arg9[%c0_47, %c0_48, %c0_49] : memref<2x64x32xf32, #tpu.memory_space<vmem>>, vector<2x64x32xf32>
    tpu.vector_store %arg9[%c0_47, %c0_48, %c0_49], %183 {strides = array<i32>} : memref<2x64x32xf32, #tpu.memory_space<vmem>>, vector<2x64x32xf32>,
    return
  }
  func.func @transform_0(%arg0: i32) -> (i32, i32, i32) {
    %c0_i32 = arith.constant 0 : i32
    %c0_i32_0 = arith.constant 0 : i32
    %c0_i32_1 = arith.constant 0 : i32
    return %arg0, %c0_i32, %c0_i32_0 : i32, i32, i32
  }
  func.func @transform_1(%arg0: i32) -> (i32, i32) {
    %c0_i32 = arith.constant 0 : i32
    %c0_i32_0 = arith.constant 0 : i32
    %c0_i32_1 = arith.constant 0 : i32
    return %c0_i32, %c0_i32_0 : i32, i32
  }
  func.func @transform_2(%arg0: i32) -> (i32, i32) {
    %c0_i32 = arith.constant 0 : i32
    %c0_i32_0 = arith.constant 0 : i32
    %c0_i32_1 = arith.constant 0 : i32
    return %c0_i32, %c0_i32_0 : i32, i32
  }
  func.func @transform_3(%arg0: i32) -> (i32, i32) {
    %c0_i32 = arith.constant 0 : i32
    %c0_i32_0 = arith.constant 0 : i32
    %c0_i32_1 = arith.constant 0 : i32
    return %c0_i32, %c0_i32_0 : i32, i32
  }
  func.func @transform_4(%arg0: i32) -> (i32, i32) {
    %c0_i32 = arith.constant 0 : i32
    %c0_i32_0 = arith.constant 0 : i32
    %c0_i32_1 = arith.constant 0 : i32
    return %c0_i32, %c0_i32_0 : i32, i32
  }
  func.func @transform_5(%arg0: i32) -> (i32, i32) {
    %c0_i32 = arith.constant 0 : i32
    %c0_i32_0 = arith.constant 0 : i32
    %c0_i32_1 = arith.constant 0 : i32
    return %c0_i32, %c0_i32_0 : i32, i32
  }
  func.func @transform_6(%arg0: i32) -> (i32, i32) {
    %c0_i32 = arith.constant 0 : i32
    %c0_i32_0 = arith.constant 0 : i32
    %c0_i32_1 = arith.constant 0 : i32
    return %c0_i32, %c0_i32_0 : i32, i32
  }
  func.func @transform_7(%arg0: i32) -> (i32, i32) {
    %c0_i32 = arith.constant 0 : i32
    %c0_i32_0 = arith.constant 0 : i32
    %c0_i32_1 = arith.constant 0 : i32
    return %c0_i32, %c0_i32_0 : i32, i32
  }
  func.func @transform_8(%arg0: i32) -> (i32, i32, i32) {
    %c0_i32 = arith.constant 0 : i32
    %c0_i32_0 = arith.constant 0 : i32
    %c0_i32_1 = arith.constant 0 : i32
    return %arg0, %c0_i32, %c0_i32_0 : i32, i32, i32
  }
}

</mosaic_0001>

<bundles_post_ra>
// kernel: tmsa_forward.3
= control target key start
LH: loop header
LB: loop body
LE: loop exit
PB: predicated region body
PF: predicated region fallthrough
CT: control target
= control target key end

     0   :  { %s1368_s24 = smov 0   ;;  %s1816_s0 = inlined_call_operand.vmem [shape: f32[256,32], index: 0, kind: input, shape index: {}]   ;;  %s1817_s1 = inlined_call_operand.vmem [shape: f32[1,32], index: 1, kind: input, shape index: {}]   ;;  %s1818_s2 = inlined_call_operand.vmem [shape: f32[1,32], index: 2, kind: input, shape index: {}]   ;;  %s1819_s3 = inlined_call_operand.vmem [shape: bf16[32,128], index: 3, kind: input, shape index: {}]   ;;  %s1820_s4 = inlined_call_operand.vmem [shape: f32[1,128], index: 4, kind: input, shape index: {}]   ;;  %s1821_s5 = inlined_call_operand.vmem [shape: bf16[64,32], index: 5, kind: input, shape index: {}]   ;;  %s1822_s6 = inlined_call_operand.vmem [shape: f32[1,32], index: 6, kind: input, shape index: {}]   ;;  %s1823_s7 = inlined_call_operand.vmem [shape: f32[256,32], index: 7, kind: output, shape index: {}]  }
   0x1 LB: > { %s1124_s25 = sadd.s32 4294967295, %s1325_s24   ;;  %p1128_p0 = scmp.ge.s32.totalorder %s1325_s24, 1  ;;  %s1325_s24 = sphi %s1368_s24, %s17_s24  }
   0x2   : > { %p238_p1 = scmp.lt.s32.totalorder %s1325_s24, 3 }
   0x4   : > { %p239_p2 = pnand %p1128_p0, %p238_p1 }
   0x5   : > { %s1129_s26 = sshll.u32 (!%p239_p2), %s1124_s25, 4  ;;  %vm301_vm0 = vcmask (!%p239_p2), 261120   ;;  %s1327_s29 = smov (!%p239_p2), 64   ;;  %vm914_vm1 = vcmask (!%p239_p2), 523264  }
   0x6   : > { %242 = sbr.rel (%p239_p2) target bundleno = 925 (0x39d), region = 48  ;;  %p271_p3 = scmp.lt.s32.totalorder (!%p239_p2), %s1129_s26, 31 }
   0xd   : > { %s1825_s26 = smov (!%p271_p3, %s1129_s26), 31 }
   0xe   : > { %s1130_s27 = sshll.u32 %s1825_s26, 3 }
   0xf   : > { %s1384_s30 = scalar_lea.vmem %s1816_s0, %s1130_s27  ;;  %s1748_s12 = scalar_lea.vmem %s1823_s7, %s1130_s27 }
  0x10   : > { %v283_v0 = vld [vmem:[%s1384_s30] sm:$0xff]  ;;  %v1388_v1 = vld [vmem:[%s1384_s30 + $0x10] sm:$0xff]  ;;  %v284_v2 = vld [vmem:[%s1384_s30 + $0x8] sm:$0xff] }
  0x11   : > { %v302_v3 = vsel %vm301_vm0, %v283_v0, 0.0  ;;  %v308_v4 = vsel %vm301_vm0, %v1388_v1, 0.0  ;;  %v1395_v5 = vld [vmem:[%s1384_s30 + $0x18] sm:$0xff]  ;;  %v305_v6 = vsel %vm301_vm0, %v284_v2, 0.0  ;;  %v287_v8 = vld [vmem:[%s1384_s30 + $0x20] sm:$0xff]  ;;  %v288_v9 = vld [vmem:[%s1384_s30 + $0x28] sm:$0xff] }
  0x12   : > { %303 = vadd.xlane.f32.xlu0 %v302_v3  ;;  %309 = vadd.xlane.f32.xlu1 %v308_v4  ;;  %v311_v7 = vsel %vm301_vm0, %v1395_v5, 0.0  ;;  %v314_v10 = vsel %vm301_vm0, %v287_v8, 0.0  ;;  %v317_v11 = vsel %vm301_vm0, %v288_v9, 0.0  ;;  %v1405_v12 = vld [vmem:[%s1384_s30 + $0x30] sm:$0xff]  ;;  %v1408_v13 = vld [vmem:[%s1384_s30 + $0x38] sm:$0xff]  ;;  %v1415_v16 = vld [vmem:[%s1384_s30 + $0x40] sm:$0xff] }
  0x13   : > { %v320_v14 = vsel %vm301_vm0, %v1405_v12, 0.0  ;;  %v323_v15 = vsel %vm301_vm0, %v1408_v13, 0.0  ;;  %v1418_v17 = vld [vmem:[%s1384_s30 + $0x48] sm:$0xff]  ;;  %v326_v18 = vsel %vm301_vm0, %v1415_v16, 0.0  ;;  %v1425_v20 = vld [vmem:[%s1384_s30 + $0x50] sm:$0xff]  ;;  %v1428_v21 = vld [vmem:[%s1384_s30 + $0x58] sm:$0xff] }
  0x14   : > { %v329_v19 = vsel %vm301_vm0, %v1418_v17, 0.0  ;;  %v332_v22 = vsel %vm301_vm0, %v1425_v20, 0.0  ;;  %v335_v23 = vsel %vm301_vm0, %v1428_v21, 0.0  ;;  %v1435_v24 = vld [vmem:[%s1384_s30 + $0x60] sm:$0xff]  ;;  %v1438_v25 = vld [vmem:[%s1384_s30 + $0x68] sm:$0xff]  ;;  %v1445_v28 = vld [vmem:[%s1384_s30 + $0x70] sm:$0xff] }
  0x15   : > { %v338_v26 = vsel %vm301_vm0, %v1435_v24, 0.0  ;;  %v341_v27 = vsel %vm301_vm0, %v1438_v25, 0.0  ;;  %v1448_v29 = vld [vmem:[%s1384_s30 + $0x78] sm:$0xff]  ;;  %v344_v30 = vsel %vm301_vm0, %v1445_v28, 0.0 }
  0x16   : > { %306 = vadd.xlane.f32.xlu0 %v305_v6  ;;  %312 = vadd.xlane.f32.xlu1 %v311_v7  ;;  %v347_v31 = vsel %vm301_vm0, %v1448_v29, 0.0 }
  0x1a   : > { %315 = vadd.xlane.f32.xlu0 %v314_v10  ;;  %318 = vadd.xlane.f32.xlu1 %v317_v11 }
  0x1e   : > { %321 = vadd.xlane.f32.xlu0 %v320_v14  ;;  %324 = vadd.xlane.f32.xlu1 %v323_v15 }
  0x22   : > { %327 = vadd.xlane.f32.xlu0 %v326_v18  ;;  %330 = vadd.xlane.f32.xlu1 %v329_v19 }
  0x26   : > { %333 = vadd.xlane.f32.xlu0 %v332_v22  ;;  %336 = vadd.xlane.f32.xlu1 %v335_v23 }
  0x2a   : > { %339 = vadd.xlane.f32.xlu0 %v338_v26  ;;  %342 = vadd.xlane.f32.xlu1 %v341_v27 }
  0x2e   : > { %345 = vadd.xlane.f32.xlu0 %v344_v30  ;;  %348 = vadd.xlane.f32.xlu1 %v347_v31 }
  0x9f   : > { %v304_v32 = vpop.xlane.xlu0 %303  ;;  %v310_v33 = vpop.xlane.xlu1 %309 }
  0xa0   : > { %v351_v34 = vmul.f32 0.03125, %v304_v32  ;;  %v353_v35 = vmul.f32 0.03125, %v310_v33 }
  0xa2   : > { %v1454_v36 = vsub.f32 %v283_v0, %v351_v34  ;;  %v1457_v37 = vsub.f32 %v1388_v1, %v353_v35 }
  0xa3   : > { %v307_v38 = vpop.xlane.xlu0 %306  ;;  %v313_v39 = vpop.xlane.xlu1 %312 }
  0xa4   : > { %v352_v40 = vmul.f32 0.03125, %v307_v38  ;;  %v354_v41 = vmul.f32 0.03125, %v313_v39  ;;  %v383_v42 = vmul.f32 %v1454_v36, %v1454_v36  ;;  %v385_v43 = vmul.f32 %v1457_v37, %v1457_v37 }
  0xa6   : > { %v1463_v44 = vsub.f32 %v284_v2, %v352_v40  ;;  %v1466_v45 = vsub.f32 %v1395_v5, %v354_v41  ;;  %v399_v46 = vsel %vm301_vm0, %v383_v42, 0.0  ;;  %v405_v49 = vsel %vm301_vm0, %v385_v43, 0.0 }
  0xa7   : > { %400 = vadd.xlane.f32.xlu0 %v399_v46  ;;  %v316_v47 = vpop.xlane.xlu0 %315  ;;  %v319_v48 = vpop.xlane.xlu1 %318 }
  0xa8   : > { %v355_v50 = vmul.f32 0.03125, %v316_v47  ;;  %v356_v51 = vmul.f32 0.03125, %v319_v48  ;;  %v384_v52 = vmul.f32 %v1463_v44, %v1463_v44  ;;  %v386_v53 = vmul.f32 %v1466_v45, %v1466_v45 }
  0xaa   : > { %v1474_v54 = vsub.f32 %v287_v8, %v355_v50  ;;  %v1476_v55 = vsub.f32 %v288_v9, %v356_v51  ;;  %v402_v56 = vsel %vm301_vm0, %v384_v52, 0.0  ;;  %v408_v59 = vsel %vm301_vm0, %v386_v53, 0.0 }
  0xab   : > { %406 = vadd.xlane.f32.xlu0 %v405_v49  ;;  %403 = vadd.xlane.f32.xlu1 %v402_v56  ;;  %v322_v57 = vpop.xlane.xlu0 %321  ;;  %v325_v58 = vpop.xlane.xlu1 %324 }
  0xac   : > { %v357_v60 = vmul.f32 0.03125, %v322_v57  ;;  %v358_v61 = vmul.f32 0.03125, %v325_v58  ;;  %v387_v62 = vmul.f32 %v1474_v54, %v1474_v54  ;;  %v388_v63 = vmul.f32 %v1476_v55, %v1476_v55  ;;  %v1237_v58 = vld [vmem:[%s1819_s3 + $0x8] sm:$0xff]  }
  0xae   : > { %v1485_v0 = vsub.f32 %v1405_v12, %v357_v60  ;;  %v1488_v2 = vsub.f32 %v1408_v13, %v358_v61  ;;  %v411_v3 = vsel %vm301_vm0, %v387_v62, 0.0  ;;  %v414_v7 = vsel %vm301_vm0, %v388_v63, 0.0 }
  0xaf   : > { %409 = vadd.xlane.f32.xlu1 %v408_v59  ;;  %412 = vadd.xlane.f32.xlu0 %v411_v3  ;;  %v328_v4 = vpop.xlane.xlu0 %327  ;;  %v331_v6 = vpop.xlane.xlu1 %330 }
  0xb0   : > { %v359_v8 = vmul.f32 0.03125, %v328_v4  ;;  %v360_v9 = vmul.f32 0.03125, %v331_v6  ;;  %v389_v10 = vmul.f32 %v1485_v0, %v1485_v0  ;;  %v390_v11 = vmul.f32 %v1488_v2, %v1488_v2 }
  0xb2   : > { %v1497_v14 = vsub.f32 %v1415_v16, %v359_v8  ;;  %v1500_v13 = vsub.f32 %v1418_v17, %v360_v9  ;;  %v417_v15 = vsel %vm301_vm0, %v389_v10, 0.0  ;;  %v420_v22 = vsel %vm301_vm0, %v390_v11, 0.0 }
  0xb3   : > { %415 = vadd.xlane.f32.xlu1 %v414_v7  ;;  %418 = vadd.xlane.f32.xlu0 %v417_v15  ;;  %v334_v18 = vpop.xlane.xlu0 %333  ;;  %v337_v19 = vpop.xlane.xlu1 %336 }
  0xb4   : > { %v361_v23 = vmul.f32 0.03125, %v334_v18  ;;  %v362_v26 = vmul.f32 0.03125, %v337_v19  ;;  %v391_v27 = vmul.f32 %v1497_v14, %v1497_v14  ;;  %v392_v16 = vmul.f32 %v1500_v13, %v1500_v13 }
  0xb6   : > { %v1509_v30 = vsub.f32 %v1425_v20, %v361_v23  ;;  %v1512_v17 = vsub.f32 %v1428_v21, %v362_v26  ;;  %v423_v31 = vsel %vm301_vm0, %v391_v27, 0.0  ;;  %v426_v34 = vsel %vm301_vm0, %v392_v16, 0.0 }
  0xb7   : > { %421 = vadd.xlane.f32.xlu1 %v420_v22  ;;  %424 = vadd.xlane.f32.xlu0 %v423_v31  ;;  %v340_v32 = vpop.xlane.xlu0 %339  ;;  %v343_v33 = vpop.xlane.xlu1 %342 }
  0xb8   : > { %v363_v35 = vmul.f32 0.03125, %v340_v32  ;;  %v364_v38 = vmul.f32 0.03125, %v343_v33  ;;  %v393_v39 = vmul.f32 %v1509_v30, %v1509_v30  ;;  %v394_v20 = vmul.f32 %v1512_v17, %v1512_v17 }
  0xba   : > { %v1521_v40 = vsub.f32 %v1435_v24, %v363_v35  ;;  %v1524_v21 = vsub.f32 %v1438_v25, %v364_v38  ;;  %v429_v41 = vsel %vm301_vm0, %v393_v39, 0.0  ;;  %v432_v46 = vsel %vm301_vm0, %v394_v20, 0.0  ;;  %v1556_v39 = vld [vmem:[%s1817_s1] ss:$0 sm:$0xff] }
  0xbb   : > { %427 = vadd.xlane.f32.xlu1 %v426_v34  ;;  %430 = vadd.xlane.f32.xlu0 %v429_v41  ;;  %v346_v42 = vpop.xlane.xlu0 %345  ;;  %v349_v43 = vpop.xlane.xlu1 %348 }
  0xbc   : > { %v365_v47 = vmul.f32 0.03125, %v346_v42  ;;  %v366_v48 = vmul.f32 0.03125, %v349_v43  ;;  %v395_v49 = vmul.f32 %v1521_v40, %v1521_v40  ;;  %v396_v24 = vmul.f32 %v1524_v21, %v1524_v21 }
  0xbe   : > { %v1533_v50 = vsub.f32 %v1445_v28, %v365_v47  ;;  %v1536_v25 = vsub.f32 %v1448_v29, %v366_v48  ;;  %v435_v51 = vsel %vm301_vm0, %v395_v49, 0.0  ;;  %v438_v52 = vsel %vm301_vm0, %v396_v24, 0.0  ;;  %v1236_v29 = vld [vmem:[%s1819_s3] sm:$0xff]  }
  0xbf   : > { %433 = vadd.xlane.f32.xlu1 %v432_v46  ;;  %436 = vadd.xlane.f32.xlu0 %v435_v51 }
  0xc0   : > { %v397_v53 = vmul.f32 %v1533_v50, %v1533_v50  ;;  %v398_v56 = vmul.f32 %v1536_v25, %v1536_v25  ;;  %1183 = vmatprep.subr.bf16.mxu0 %v1236_v29 }
  0xc1   : > { %1184 = vmatpush3.bf16.msra.mxu0 %v1236_v29 }
  0xc2   : > { %v441_v57 = vsel %vm301_vm0, %v397_v53, 0.0  ;;  %v444_v28 = vsel %vm301_vm0, %v398_v56, 0.0  ;;  %1185 = vmatprep.subr.bf16.mxu0 %v1237_v58 }
  0xc3   : > { %439 = vadd.xlane.f32.xlu1 %v438_v52  ;;  %442 = vadd.xlane.f32.xlu0 %v441_v57  ;;  %v1564_v52 = vld [vmem:[%s1818_s2] ss:$0 sm:$0xff] }
  0xc5   : > { %1186 = vmatpush3.bf16.msra.mxu0 %v1237_v58 }
  0xc7   : > { %445 = vadd.xlane.f32.xlu1 %v444_v28 }
 0x134   : > { %v401_v59 = vpop.xlane.xlu0 %400 }
 0x135   : > { %v447_v60 = vmul.f32 0.03125, %v401_v59 }
 0x137   : > { %v463_v61 = vadd.f32 1e-05, %v447_v60 }
 0x138   : > { %v404_v62 = vpop.xlane.xlu1 %403  ;;  %v407_v63 = vpop.xlane.xlu0 %406 }
 0x139   : > { %1242 = vrsqrt.f32 %v463_v61  ;;  %v448_v3 = vmul.f32 0.03125, %v404_v62  ;;  %v449_v4 = vmul.f32 0.03125, %v407_v63 }
 0x13b   : > { %v464_v6 = vadd.f32 1e-05, %v448_v3  ;;  %v465_v7 = vadd.f32 1e-05, %v449_v4 }
 0x13c   : > { %v410_v8 = vpop.xlane.xlu1 %409  ;;  %v413_v9 = vpop.xlane.xlu0 %412 }
 0x13d   : > { %1244 = vrsqrt.f32 %v464_v6  ;;  %v450_v10 = vmul.f32 0.03125, %v410_v8  ;;  %v451_v11 = vmul.f32 0.03125, %v413_v9 }
 0x13e   : > { %1246 = vrsqrt.f32 %v465_v7 }
 0x13f   : > { %v466_v15 = vadd.f32 1e-05, %v450_v10  ;;  %v467_v18 = vadd.f32 1e-05, %v451_v11 }
 0x140   : > { %v416_v19 = vpop.xlane.xlu1 %415  ;;  %v419_v22 = vpop.xlane.xlu0 %418 }
 0x141   : > { %1248 = vrsqrt.f32 %v466_v15  ;;  %v452_v23 = vmul.f32 0.03125, %v416_v19  ;;  %v453_v26 = vmul.f32 0.03125, %v419_v22 }
 0x142   : > { %1250 = vrsqrt.f32 %v467_v18 }
 0x143   : > { %v1243_v27 = vpop.eup %1242  ;;  %v468_v16 = vadd.f32 1e-05, %v452_v23  ;;  %v469_v31 = vadd.f32 1e-05, %v453_v26 }
 0x144   : > { %v422_v32 = vpop.xlane.xlu1 %421  ;;  %v425_v33 = vpop.xlane.xlu0 %424  ;;  %v495_v34 = vmul.f32 %v1243_v27, %v1454_v36 }
 0x145   : > { %1252 = vrsqrt.f32 %v468_v16  ;;  %v454_v35 = vmul.f32 0.03125, %v422_v32  ;;  %v455_v38 = vmul.f32 0.03125, %v425_v33 }
 0x146   : > { %1254 = vrsqrt.f32 %v469_v31  ;;  %v517_v49 = vmul.f32 %v1556_v39, %v495_v34 }
 0x147   : > { %v1245_v20 = vpop.eup %1244  ;;  %v470_v41 = vadd.f32 1e-05, %v454_v35  ;;  %v471_v42 = vadd.f32 1e-05, %v455_v38 }
 0x148   : > { %v1247_v43 = vpop.eup %1246  ;;  %v428_v46 = vpop.xlane.xlu1 %427  ;;  %v496_v48 = vmul.f32 %v1245_v20, %v1463_v44 }
 0x149   : > { %v431_v47 = vpop.xlane.xlu0 %430  ;;  %v497_v36 = vmul.f32 %v1247_v43, %v1457_v37  ;;  %1256 = vrsqrt.f32 %v470_v41  ;;  %v456_v24 = vmul.f32 0.03125, %v428_v46  ;;  %v539_v37 = vadd.f32 %v1564_v52, %v517_v49 }
 0x14a   : > { %v457_v51 = vmul.f32 0.03125, %v431_v47  ;;  %1258 = vrsqrt.f32 %v471_v42  ;;  %v518_v53 = vmul.f32 %v1556_v39, %v496_v48 }
 0x14b   : > { %v1249_v56 = vpop.eup %1248  ;;  %v472_v57 = vadd.f32 1e-05, %v456_v24  ;;  %v519_v61 = vmul.f32 %v1556_v39, %v497_v36 }
 0x14c   : > { %v473_v28 = vadd.f32 1e-05, %v457_v51  ;;  %v1251_v29 = vpop.eup %1250  ;;  %v498_v44 = vmul.f32 %v1249_v56, %v1466_v45  ;;  %v434_v58 = vpop.xlane.xlu1 %433  ;;  %v540_v60 = vadd.f32 %v1564_v52, %v518_v53 }
 0x14d   : > { %v437_v59 = vpop.xlane.xlu0 %436  ;;  %v499_v62 = vmul.f32 %v1251_v29, %v1474_v54  ;;  %1260 = vrsqrt.f32 %v472_v57  ;;  %v458_v63 = vmul.f32 0.03125, %v434_v58  ;;  %v541_v18 = vadd.f32 %v1564_v52, %v519_v61 }
 0x14e   : > { %v459_v3 = vmul.f32 0.03125, %v437_v59  ;;  %1262 = vrsqrt.f32 %v473_v28  ;;  %v555_v4 = vpack.c.bf16 %v540_v60, %v539_v37  ;;  %v520_v6 = vmul.f32 %v1556_v39, %v498_v44 }
 0x14f   : > { %v1253_v7 = vpop.eup %1252  ;;  %v474_v8 = vadd.f32 1e-05, %v458_v63  ;;  %v521_v19 = vmul.f32 %v1556_v39, %v499_v62 }
 0x150   : > { %v475_v45 = vadd.f32 1e-05, %v459_v3  ;;  %v1255_v9 = vpop.eup %1254  ;;  %v500_v10 = vmul.f32 %v1253_v7, %v1476_v55  ;;  %v440_v11 = vpop.xlane.xlu1 %439  ;;  %1187 = vmatprep.mubr.msk.bf16.mxu0 %vm301_vm0, %v555_v4  ;;  %v542_v54 = vadd.f32 %v1564_v52, %v520_v6 }
 0x151   : > { %v443_v15 = vpop.xlane.xlu0 %442  ;;  %v501_v22 = vmul.f32 %v1255_v9, %v1485_v0  ;;  %1264 = vrsqrt.f32 %v474_v8  ;;  %v460_v23 = vmul.f32 0.03125, %v440_v11  ;;  %v543_v38 = vadd.f32 %v1564_v52, %v521_v19  ;;  %v1241_v19 = vld [vmem:[%s1821_s5 + $0x18] sm:$0xff]  }
 0x152   : > { %v461_v26 = vmul.f32 0.03125, %v443_v15  ;;  %1266 = vrsqrt.f32 %v475_v45  ;;  %v556_v27 = vpack.c.bf16 %v542_v54, %v541_v18  ;;  %v522_v16 = vmul.f32 %v1556_v39, %v500_v10  ;;  %v1239_v54 = vld [vmem:[%s1821_s5 + $0x8] sm:$0xff]  }
 0x153   : > { %v1257_v55 = vpop.eup %1256  ;;  %v476_v31 = vadd.f32 1e-05, %v460_v23  ;;  %v523_v20 = vmul.f32 %v1556_v39, %v501_v22 }
 0x154   : > { %v477_v32 = vadd.f32 1e-05, %v461_v26  ;;  %v1259_v33 = vpop.eup %1258  ;;  %v502_v34 = vmul.f32 %v1257_v55, %v1488_v2  ;;  %v446_v35 = vpop.xlane.xlu1 %445  ;;  %1188 = vmatmul.mubr.msk.bf16.vlgmr.msra.gmra.mrb[0].mxu0 %vm301_vm0, %v556_v27  ;;  %v544_v0 = vadd.f32 %v1564_v52, %v522_v16 }
 0x155   : > { %v503_v41 = vmul.f32 %v1259_v33, %v1497_v14  ;;  %1268 = vrsqrt.f32 %v476_v31  ;;  %v462_v42 = vmul.f32 0.03125, %v446_v35  ;;  %v545_v36 = vadd.f32 %v1564_v52, %v523_v20 }
 0x156   : > { %1270 = vrsqrt.f32 %v477_v32  ;;  %v557_v43 = vpack.c.bf16 %v544_v0, %v543_v38  ;;  %v524_v46 = vmul.f32 %v1556_v39, %v502_v34 }
 0x157   : > { %v1261_v47 = vpop.eup %1260  ;;  %v478_v48 = vadd.f32 1e-05, %v462_v42  ;;  %v525_v51 = vmul.f32 %v1556_v39, %v503_v41 }
 0x158   : > { %v1263_v2 = vpop.eup %1262  ;;  %v504_v49 = vmul.f32 %v1261_v47, %v1500_v13  ;;  %1191 = vmatprep.mubr.msk.bf16.mxu0 %vm301_vm0, %v557_v43  ;;  %v546_v24 = vadd.f32 %v1564_v52, %v524_v46 }
 0x159   : > { %v505_v14 = vmul.f32 %v1263_v2, %v1509_v30  ;;  %1272 = vrsqrt.f32 %v478_v48  ;;  %v547_v13 = vadd.f32 %v1564_v52, %v525_v51 }
 0x15a   : > { %v558_v53 = vpack.c.bf16 %v546_v24, %v545_v36  ;;  %v526_v56 = vmul.f32 %v1556_v39, %v504_v49 }
 0x15b   : > { %v1265_v57 = vpop.eup %1264  ;;  %v527_v58 = vmul.f32 %v1556_v39, %v505_v14 }
 0x15c   : > { %v1267_v28 = vpop.eup %1266  ;;  %v506_v29 = vmul.f32 %v1265_v57, %v1512_v17  ;;  %1192 = vmatmul.mubr.msk.bf16.gmra.mrb[4].mxu0 %vm301_vm0, %v558_v53  ;;  %v548_v44 = vadd.f32 %v1564_v52, %v526_v56 }
 0x15d   : > { %v507_v59 = vmul.f32 %v1267_v28, %v1521_v40  ;;  %v549_v17 = vadd.f32 %v1564_v52, %v527_v58 }
 0x15e   : > { %v559_v37 = vpack.c.bf16 %v548_v44, %v547_v13  ;;  %v528_v30 = vmul.f32 %v1556_v39, %v506_v29 }
 0x15f   : > { %v1269_v60 = vpop.eup %1268  ;;  %v529_v3 = vmul.f32 %v1556_v39, %v507_v59 }
 0x160   : > { %v1271_v61 = vpop.eup %1270  ;;  %v508_v62 = vmul.f32 %v1269_v60, %v1524_v21  ;;  %1195 = vmatprep.mubr.msk.bf16.mxu0 %vm301_vm0, %v559_v37  ;;  %v550_v63 = vadd.f32 %v1564_v52, %v528_v30 }
 0x161   : > { %v509_v4 = vmul.f32 %v1271_v61, %v1533_v50  ;;  %v551_v21 = vadd.f32 %v1564_v52, %v529_v3 }
 0x162   : > { %v560_v6 = vpack.c.bf16 %v550_v63, %v549_v17  ;;  %v530_v40 = vmul.f32 %v1556_v39, %v508_v62 }
 0x163   : > { %v1273_v7 = vpop.eup %1272  ;;  %v531_v9 = vmul.f32 %v1556_v39, %v509_v4 }
 0x164   : > { %v510_v8 = vmul.f32 %v1273_v7, %v1536_v25  ;;  %1196 = vmatmul.mubr.msk.bf16.gmra.mrb[8].mxu0 %vm301_vm0, %v560_v6  ;;  %v552_v45 = vadd.f32 %v1564_v52, %v530_v40  ;;  %v1238_v25 = vld [vmem:[%s1821_s5] sm:$0xff]  }
 0x165   : > { %v553_v50 = vadd.f32 %v1564_v52, %v531_v9  ;;  %1203 = vmatprep.subr.bf16.mxu1 %v1238_v25 }
 0x166   : > { %v561_v10 = vpack.c.bf16 %v552_v45, %v551_v21  ;;  %v532_v11 = vmul.f32 %v1556_v39, %v510_v8  ;;  %1204 = vmatpush3.bf16.msra.mxu1 %v1238_v25  ;;  %v1240_v39 = vld [vmem:[%s1821_s5 + $0x10] sm:$0xff]  }
 0x167   : > { %1205 = vmatprep.subr.bf16.mxu1 %v1239_v54 }
 0x168   : > { %1199 = vmatprep.mubr.msk.bf16.mxu0 %vm301_vm0, %v561_v10  ;;  %v554_v15 = vadd.f32 %v1564_v52, %v532_v11  ;;  %v1135_v52 = vld [vmem:[%s1820_s4] ss:$0 sm:$0xff] }
 0x16a   : > { %v562_v18 = vpack.c.bf16 %v554_v15, %v553_v50  ;;  %1206 = vmatpush3.bf16.msra.mxu1 %v1239_v54 }
 0x16b   : > { %1207 = vmatprep.subr.bf16.mxu1 %v1240_v39 }
 0x16c   : > { %1200 = vmatmul.mubr.msk.bf16.gmra.mrb[12].mxu0 %vm301_vm0, %v562_v18 }
 0x16e   : > { %1208 = vmatpush3.bf16.msra.mxu1 %v1240_v39 }
 0x16f   : > { %1209 = vmatprep.subr.bf16.mxu1 %v1241_v19 }
 0x172   : > { %1210 = vmatpush3.bf16.msra.mxu1 %v1241_v19 }
 0x227   : > { %v1189_v22 = vpop.f32.mrb[0].mxu0 }
 0x228   : > { %v1633_v23 = vadd.f32 %v1189_v22, %v1135_v52  ;;  %v644_v26 = vpop.f32.mrb[1].mxu0 }
 0x229   : > { %v1635_v27 = vadd.f32 %v1135_v52, %v644_v26  ;;  %v1190_v16 = vpop.f32.mrb[2].mxu0 }
 0x22a   : > { %807 = vrot.lane.b32.xlu1 %v1633_v23, %s1327_s29  ;;  %v647_v55 = vpop.f32.mrb[3].mxu0  ;;  %v1645_v33 = vadd.f32 %v1190_v16, %v1135_v52  ;;  %v725_v59 = vmul.f32 0.70710677, %v1633_v23  ;;  %v709_v19 = vmul.f32 0.5, %v1633_v23 }
 0x22b   : > { %v1639_v31 = vadd.f32 %v1135_v52, %v647_v55  ;;  %803 = vrot.lane.b32.xlu0 %v1635_v27, %s1327_s29  ;;  %v723_v44 = vmul.f32 0.70710677, %v1635_v27  ;;  %v707_v9 = vmul.f32 0.5, %v1635_v27 }
 0x22c   : > { %v726_v37 = vmul.f32 0.70710677, %v1645_v33  ;;  %v710_v26 = vmul.f32 0.5, %v1645_v33 }
 0x22d   : > { %v724_v58 = vmul.f32 0.70710677, %v1639_v31  ;;  %1274 = verf.f32 %v723_v44  ;;  %v708_v10 = vmul.f32 0.5, %v1639_v31 }
 0x22e   : > { %805 = vrot.lane.b32.xlu1 %v1639_v31, %s1327_s29 }
 0x22f   : > { %v1193_v32 = vpop.f32.mrb[4].mxu0  ;;  %1276 = verf.f32 %v724_v58 }
 0x230   : > { %v660_v34 = vpop.f32.mrb[5].mxu0  ;;  %v1655_v41 = vadd.f32 %v1193_v32, %v1135_v52  ;;  %1278 = verf.f32 %v725_v59 }
 0x231   : > { %v1647_v35 = vadd.f32 %v1135_v52, %v660_v34  ;;  %v1194_v38 = vpop.f32.mrb[6].mxu0  ;;  %1280 = verf.f32 %v726_v37 }
 0x232   : > { %809 = vrot.lane.b32.xlu1 %v1645_v33, %s1327_s29  ;;  %v663_v0 = vpop.f32.mrb[7].mxu0  ;;  %v1661_v43 = vadd.f32 %v1194_v38, %v1135_v52  ;;  %v729_v61 = vmul.f32 0.70710677, %v1655_v41 }
 0x233   : > { %v1651_v20 = vadd.f32 %v1135_v52, %v663_v0  ;;  %811 = vrot.lane.b32.xlu0 %v1647_v35, %s1327_s29  ;;  %v727_v30 = vmul.f32 0.70710677, %v1647_v35 }
 0x234   : > { %v730_v62 = vmul.f32 0.70710677, %v1661_v43 }
 0x235   : > { %v728_v60 = vmul.f32 0.70710677, %v1651_v20  ;;  %1282 = verf.f32 %v727_v30  ;;  %v712_v33 = vmul.f32 0.5, %v1651_v20 }
 0x236   : > { %813 = vrot.lane.b32.xlu1 %v1651_v20, %s1327_s29  ;;  %v713_v20 = vmul.f32 0.5, %v1655_v41 }
 0x237   : > { %815 = vrot.lane.b32.xlu0 %v1655_v41, %s1327_s29  ;;  %v1197_v42 = vpop.f32.mrb[8].mxu0  ;;  %1284 = verf.f32 %v728_v60  ;;  %v1275_v17 = vpop.eup %1274 }
 0x238   : > { %v676_v46 = vpop.f32.mrb[9].mxu0  ;;  %v1671_v36 = vadd.f32 %v1197_v42, %v1135_v52  ;;  %1286 = verf.f32 %v729_v61  ;;  %v755_v40 = vadd.f32 1.0, %v1275_v17 }
 0x239   : > { %v1663_v47 = vadd.f32 %v1135_v52, %v676_v46  ;;  %v1198_v48 = vpop.f32.mrb[10].mxu0  ;;  %v1277_v63 = vpop.eup %1276  ;;  %1288 = verf.f32 %v730_v62 }
 0x23a   : > { %817 = vrot.lane.b32.xlu1 %v1661_v43, %s1327_s29  ;;  %v679_v2 = vpop.f32.mrb[11].mxu0  ;;  %v1677_v51 = vadd.f32 %v1198_v48, %v1135_v52  ;;  %v1279_v6 = vpop.eup %1278  ;;  %v756_v7 = vadd.f32 1.0, %v1277_v63  ;;  %v733_v45 = vmul.f32 0.70710677, %v1671_v36  ;;  %v771_v25 = vmul.f32 %v755_v40, %v707_v9 }
 0x23b   : > { %v1667_v49 = vadd.f32 %v1135_v52, %v679_v2  ;;  %819 = vrot.lane.b32.xlu0 %v1663_v47, %s1327_s29  ;;  %v731_v3 = vmul.f32 0.70710677, %v1663_v47  ;;  %v1281_v8 = vpop.eup %1280  ;;  %v757_v50 = vadd.f32 1.0, %v1279_v6  ;;  %v711_v2 = vmul.f32 0.5, %v1647_v35 }
 0x23c   : > { %v734_v11 = vmul.f32 0.70710677, %v1677_v51  ;;  %v772_v54 = vmul.f32 %v756_v7, %v708_v10  ;;  %v758_v39 = vadd.f32 1.0, %v1281_v8  ;;  %v715_v41 = vmul.f32 0.5, %v1663_v47 }
 0x23d   : > { %v732_v4 = vmul.f32 0.70710677, %v1667_v49  ;;  %1290 = verf.f32 %v731_v3  ;;  %v773_v32 = vmul.f32 %v757_v50, %v709_v19  ;;  %v718_v47 = vmul.f32 0.5, %v1677_v51 }
 0x23e   : > { %821 = vrot.lane.b32.xlu1 %v1667_v49, %s1327_s29  ;;  %v774_v38 = vmul.f32 %v758_v39, %v710_v26 }
 0x23f   : > { %823 = vrot.lane.b32.xlu0 %v1671_v36, %s1327_s29  ;;  %v1201_v24 = vpop.f32.mrb[12].mxu0  ;;  %1292 = verf.f32 %v732_v4  ;;  %v1283_v18 = vpop.eup %1282  ;;  %v714_v4 = vmul.f32 0.5, %v1661_v43 }
 0x240   : > { %v692_v14 = vpop.f32.mrb[13].mxu0  ;;  %v1687_v29 = vadd.f32 %v1201_v24, %v1135_v52  ;;  %1294 = verf.f32 %v733_v45  ;;  %v759_v42 = vadd.f32 1.0, %v1283_v18  ;;  %v716_v18 = vmul.f32 0.5, %v1667_v49 }
 0x241   : > { %v1679_v53 = vadd.f32 %v1135_v52, %v692_v14  ;;  %v1202_v56 = vpop.f32.mrb[14].mxu0  ;;  %1296 = verf.f32 %v734_v11 }
 0x242   : > { %825 = vrot.lane.b32.xlu1 %v1677_v51, %s1327_s29  ;;  %v695_v57 = vpop.f32.mrb[15].mxu0  ;;  %v1693_v13 = vadd.f32 %v1202_v56, %v1135_v52  ;;  %v737_v24 = vmul.f32 0.70710677, %v1687_v29  ;;  %v775_v30 = vmul.f32 %v759_v42, %v711_v2 }
 0x243   : > { %v1683_v28 = vadd.f32 %v1135_v52, %v695_v57  ;;  %827 = vrot.lane.b32.xlu0 %v1679_v53, %s1327_s29  ;;  %v1285_v52 = vpop.eup %1284  ;;  %v735_v27 = vmul.f32 0.70710677, %v1679_v53 }
 0x244   : > { %v1287_v34 = vpop.eup %1286  ;;  %v760_v46 = vadd.f32 1.0, %v1285_v52  ;;  %v738_v44 = vmul.f32 0.70710677, %v1693_v13 }
 0x245   : > { %v736_v31 = vmul.f32 0.70710677, %v1683_v28  ;;  %v1289_v48 = vpop.eup %1288  ;;  %1298 = verf.f32 %v735_v27  ;;  %v761_v58 = vadd.f32 1.0, %v1287_v34  ;;  %v717_v27 = vmul.f32 0.5, %v1671_v36 }
 0x246   : > { %829 = vrot.lane.b32.xlu1 %v1683_v28, %s1327_s29  ;;  %v776_v60 = vmul.f32 %v760_v46, %v712_v33  ;;  %v762_v61 = vadd.f32 1.0, %v1289_v48  ;;  %v719_v36 = vmul.f32 0.5, %v1679_v53 }
 0x247   : > { %831 = vrot.lane.b32.xlu0 %v1687_v29, %s1327_s29  ;;  %1300 = verf.f32 %v736_v31  ;;  %v1291_v59 = vpop.eup %1290  ;;  %v777_v6 = vmul.f32 %v761_v58, %v713_v20 }
 0x248   : > { %1302 = verf.f32 %v737_v24  ;;  %v778_v8 = vmul.f32 %v762_v61, %v714_v4  ;;  %v720_v24 = vmul.f32 0.5, %v1683_v28 }
 0x249   : > { %v1293_v35 = vpop.eup %1292  ;;  %1304 = verf.f32 %v738_v44 }
 0x24a   : > { %833 = vrot.lane.b32.xlu1 %v1693_v13, %s1327_s29  ;;  %v1295_v40 = vpop.eup %1294  ;;  %v764_v45 = vadd.f32 1.0, %v1293_v35 }
 0x24b   : > { %v1297_v9 = vpop.eup %1296 }
 0x24c   : > { %v780_v52 = vmul.f32 %v764_v45, %v716_v18  ;;  %v766_v19 = vadd.f32 1.0, %v1297_v9  ;;  %v1306_v45 = vld [vmem:[%s1384_s30] sm:$0xff] }
 0x24f   : > { %v1299_v43 = vpop.eup %1298 }
 0x29c   : > { %v808_v21 = vpop.permute.xlu1 %807 }
 0x29d   : > { %v804_v15 = vpop.permute.xlu0 %803  ;;  %v853_v14 = vmul.f32 %v808_v21, %v773_v32  ;;  %v763_v21 = vadd.f32 1.0, %v1291_v59 }
 0x29e   : > { %v851_v16 = vmul.f32 %v804_v15, %v771_v25  ;;  %v765_v25 = vadd.f32 1.0, %v1295_v40 }
 0x29f   : > { %v779_v39 = vmul.f32 %v763_v21, %v715_v41 }
 0x2a0   : > { %v806_v22 = vpop.permute.xlu1 %805  ;;  %v781_v32 = vmul.f32 %v765_v25, %v717_v27 }
 0x2a1   : > { %v852_v55 = vmul.f32 %v806_v22, %v772_v54  ;;  %v1301_v22 = vpop.eup %1300 }
 0x2a2   : > { %v1303_v34 = vpop.eup %1302  ;;  %v768_v42 = vadd.f32 1.0, %v1301_v22 }
 0x2a3   : > { %v867_v0 = vpack.c.bf16 %v852_v55, %v851_v16  ;;  %v1305_v46 = vpop.eup %1304 }
 0x2a4   : > { %v810_v23 = vpop.permute.xlu1 %809  ;;  %v770_v44 = vadd.f32 1.0, %v1305_v46  ;;  %v1312_v46 = vld [vmem:[%s1384_s30 + $0x40] sm:$0xff] }
 0x2a5   : > { %v854_v56 = vmul.f32 %v810_v23, %v774_v38  ;;  %1211 = vmatprep.mubr.msk.bf16.mxu1 %vm914_vm1, %v867_v0  ;;  %v812_v57 = vpop.permute.xlu0 %811  ;;  %v782_v38 = vmul.f32 %v766_v19, %v718_v47  ;;  %v767_v0 = vadd.f32 1.0, %v1299_v43 }
 0x2a6   : > { %v855_v17 = vmul.f32 %v812_v57, %v775_v30  ;;  %v784_v57 = vmul.f32 %v768_v42, %v720_v24  ;;  %v721_v30 = vmul.f32 0.5, %v1687_v29  ;;  %v1740_v29 = vld [vmem:[%s1822_s6] ss:$0 sm:$0xff] }
 0x2a7   : > { %v868_v37 = vpack.c.bf16 %v854_v56, %v853_v14  ;;  %v769_v14 = vadd.f32 1.0, %v1303_v34  ;;  %v783_v51 = vmul.f32 %v767_v0, %v719_v36 }
 0x2a8   : > { %v814_v62 = vpop.permute.xlu1 %813 }
 0x2a9   : > { %v856_v63 = vmul.f32 %v814_v62, %v776_v60  ;;  %1212 = vmatmul.mubr.msk.bf16.vlgmr.msra.gmra.mrb[0].mxu1 %vm914_vm1, %v868_v37  ;;  %v816_v3 = vpop.permute.xlu0 %815  ;;  %v722_v60 = vmul.f32 0.5, %v1693_v13  ;;  %v785_v35 = vmul.f32 %v769_v14, %v721_v30 }
 0x2aa   : > { %v857_v11 = vmul.f32 %v816_v3, %v777_v6 }
 0x2ab   : > { %v869_v7 = vpack.c.bf16 %v856_v63, %v855_v17  ;;  %v786_v62 = vmul.f32 %v770_v44, %v722_v60  ;;  %v1316_v60 = vld [vmem:[%s1384_s30 + $0x60] sm:$0xff] }
 0x2ac   : > { %v818_v10 = vpop.permute.xlu1 %817 }
 0x2ad   : > { %v858_v50 = vmul.f32 %v818_v10, %v778_v8  ;;  %1215 = vmatprep.mubr.msk.bf16.mxu1 %vm914_vm1, %v869_v7  ;;  %v820_v15 = vpop.permute.xlu0 %819 }
 0x2ae   : > { %v859_v16 = vmul.f32 %v820_v15, %v779_v39 }
 0x2af   : > { %v870_v54 = vpack.c.bf16 %v858_v50, %v857_v11  ;;  %v1307_v50 = vld [vmem:[%s1384_s30 + $0x8] sm:$0xff] }
 0x2b0   : > { %v822_v26 = vpop.permute.xlu1 %821 }
 0x2b1   : > { %v860_v55 = vmul.f32 %v822_v26, %v780_v52  ;;  %1216 = vmatmul.mubr.msk.bf16.gmra.mrb[4].mxu1 %vm914_vm1, %v870_v54  ;;  %v824_v31 = vpop.permute.xlu0 %823  ;;  %v1308_v52 = vld [vmem:[%s1384_s30 + $0x20] sm:$0xff]  ;;  %v1309_v26 = vld [vmem:[%s1384_s30 + $0x38] sm:$0xff] }
 0x2b2   : > { %v861_v23 = vmul.f32 %v824_v31, %v781_v32 }
 0x2b3   : > { %v871_v49 = vpack.c.bf16 %v860_v55, %v859_v16  ;;  %v1310_v16 = vld [vmem:[%s1384_s30 + $0x28] sm:$0xff] }
 0x2b4   : > { %v826_v48 = vpop.permute.xlu1 %825 }
 0x2b5   : > { %v862_v2 = vmul.f32 %v826_v48, %v782_v38  ;;  %1219 = vmatprep.mubr.msk.bf16.mxu1 %vm914_vm1, %v871_v49  ;;  %v828_v33 = vpop.permute.xlu0 %827  ;;  %v1311_v49 = vld [vmem:[%s1384_s30 + $0x50] sm:$0xff] }
 0x2b6   : > { %v863_v59 = vmul.f32 %v828_v33, %v783_v51  ;;  %v1314_v33 = vld [vmem:[%s1384_s30 + $0x48] sm:$0xff] }
 0x2b7   : > { %v872_v56 = vpack.c.bf16 %v862_v2, %v861_v23  ;;  %v1313_v2 = vld [vmem:[%s1384_s30 + $0x58] sm:$0xff] }
 0x2b8   : > { %v830_v58 = vpop.permute.xlu1 %829 }
 0x2b9   : > { %v864_v37 = vmul.f32 %v830_v58, %v784_v57  ;;  %1220 = vmatmul.mubr.msk.bf16.gmra.mrb[8].mxu1 %vm914_vm1, %v872_v56  ;;  %v832_v61 = vpop.permute.xlu0 %831  ;;  %v1315_v58 = vld [vmem:[%s1384_s30 + $0x70] sm:$0xff] }
 0x2ba   : > { %v865_v20 = vmul.f32 %v832_v61, %v785_v35  ;;  %v1317_v35 = vld [vmem:[%s1384_s30 + $0x78] sm:$0xff] }
 0x2bb   : > { %v873_v53 = vpack.c.bf16 %v864_v37, %v863_v59 }
 0x2bc   : > { %v834_v28 = vpop.permute.xlu1 %833 }
 0x2bd   : > { %v866_v17 = vmul.f32 %v834_v28, %v786_v62  ;;  %1223 = vmatprep.mubr.msk.bf16.mxu1 %vm914_vm1, %v873_v53  ;;  %v1318_v28 = vld [vmem:[%s1384_s30 + $0x68] sm:$0xff] }
 0x2bf   : > { %v874_v63 = vpack.c.bf16 %v866_v17, %v865_v20 }
 0x2c1   : > { %1224 = vmatmul.mubr.msk.bf16.gmra.mrb[12].mxu1 %vm914_vm1, %v874_v63 }
 0x37c   : > { %v1213_v13 = vpop.f32.mrb[0].mxu1 }
 0x37d   : > { %v982_v3 = vadd.f32 %v1213_v13, %v1740_v29  ;;  %v973_v4 = vpop.f32.mrb[1].mxu1 }
 0x37e   : > { %v974_v6 = vadd.f32 %v1740_v29, %v973_v4  ;;  %v1214_v40 = vpop.f32.mrb[2].mxu1 }
 0x37f   : > { %v1038_v7 = vadd.f32 %v982_v3, %v1388_v1  ;;  %v985_v8 = vadd.f32 %v1214_v40, %v1740_v29  ;;  %v976_v21 = vpop.f32.mrb[3].mxu1 }
 0x380   : > { %v1036_v9 = vadd.f32 %v1306_v45, %v974_v6  ;;  %v977_v10 = vadd.f32 %v1740_v29, %v976_v21 }
 0x381   : > { %1054 = vst.msk [vmem:[%s1748_s12 + $0x10] sm:$0xff] %vm301_vm0, %v1038_v7  ;;  %v1039_v11 = vadd.f32 %v985_v8, %v1395_v5 }
 0x382   : > { %1052 = vst.msk [vmem:[%s1748_s12] sm:$0xff] %vm301_vm0, %v1036_v9  ;;  %v1037_v41 = vadd.f32 %v1307_v50, %v977_v10 }
 0x383   : > { %1055 = vst.msk [vmem:[%s1748_s12 + $0x18] sm:$0xff] %vm301_vm0, %v1039_v11 }
 0x384   : > { %1053 = vst.msk [vmem:[%s1748_s12 + $0x8] sm:$0xff] %vm301_vm0, %v1037_v41  ;;  %v1217_v1 = vpop.f32.mrb[4].mxu1 }
 0x385   : > { %v998_v15 = vadd.f32 %v1217_v1, %v1740_v29  ;;  %v989_v18 = vpop.f32.mrb[5].mxu1 }
 0x386   : > { %v990_v5 = vadd.f32 %v1740_v29, %v989_v18  ;;  %v1218_v25 = vpop.f32.mrb[6].mxu1 }
 0x387   : > { %v1042_v43 = vadd.f32 %v998_v15, %v1405_v12  ;;  %v1001_v54 = vadd.f32 %v1218_v25, %v1740_v29  ;;  %v992_v39 = vpop.f32.mrb[7].mxu1 }
 0x388   : > { %v1040_v19 = vadd.f32 %v1308_v52, %v990_v5  ;;  %v993_v22 = vadd.f32 %v1740_v29, %v992_v39 }
 0x389   : > { %1058 = vst.msk [vmem:[%s1748_s12 + $0x30] sm:$0xff] %vm301_vm0, %v1042_v43  ;;  %v1043_v27 = vadd.f32 %v1309_v26, %v1001_v54 }
 0x38a   : > { %1056 = vst.msk [vmem:[%s1748_s12 + $0x20] sm:$0xff] %vm301_vm0, %v1040_v19  ;;  %v1041_v55 = vadd.f32 %v1310_v16, %v993_v22 }
 0x38b   : > { %1059 = vst.msk [vmem:[%s1748_s12 + $0x38] sm:$0xff] %vm301_vm0, %v1043_v27 }
 0x38c   : > { %1057 = vst.msk [vmem:[%s1748_s12 + $0x28] sm:$0xff] %vm301_vm0, %v1041_v55  ;;  %v1221_v12 = vpop.f32.mrb[8].mxu1 }
 0x38d   : > { %v1014_v31 = vadd.f32 %v1221_v12, %v1740_v29  ;;  %v1005_v47 = vpop.f32.mrb[9].mxu1 }
 0x38e   : > { %v1006_v32 = vadd.f32 %v1740_v29, %v1005_v47  ;;  %v1222_v34 = vpop.f32.mrb[10].mxu1 }
 0x38f   : > { %v1046_v38 = vadd.f32 %v1311_v49, %v1014_v31  ;;  %v1017_v0 = vadd.f32 %v1222_v34, %v1740_v29  ;;  %v1008_v42 = vpop.f32.mrb[11].mxu1 }
 0x390   : > { %v1044_v48 = vadd.f32 %v1312_v46, %v1006_v32  ;;  %v1009_v23 = vadd.f32 %v1740_v29, %v1008_v42 }
 0x391   : > { %1062 = vst.msk [vmem:[%s1748_s12 + $0x50] sm:$0xff] %vm301_vm0, %v1046_v38  ;;  %v1047_v36 = vadd.f32 %v1313_v2, %v1017_v0 }
 0x392   : > { %1060 = vst.msk [vmem:[%s1748_s12 + $0x40] sm:$0xff] %vm301_vm0, %v1044_v48  ;;  %v1045_v24 = vadd.f32 %v1314_v33, %v1009_v23 }
 0x393   : > { %1063 = vst.msk [vmem:[%s1748_s12 + $0x58] sm:$0xff] %vm301_vm0, %v1047_v36 }
 0x394   : > { %1061 = vst.msk [vmem:[%s1748_s12 + $0x48] sm:$0xff] %vm301_vm0, %v1045_v24  ;;  %v1225_v14 = vpop.f32.mrb[12].mxu1 }
 0x395   : > { %v1030_v56 = vadd.f32 %v1225_v14, %v1740_v29  ;;  %v1021_v51 = vpop.f32.mrb[13].mxu1 }
 0x396   : > { %v1022_v57 = vadd.f32 %v1740_v29, %v1021_v51  ;;  %v1226_v44 = vpop.f32.mrb[14].mxu1 }
 0x397   : > { %v1050_v59 = vadd.f32 %v1315_v58, %v1030_v56  ;;  %v1033_v37 = vadd.f32 %v1226_v44, %v1740_v29  ;;  %v1024_v30 = vpop.f32.mrb[15].mxu1 }
 0x398   : > { %v1048_v61 = vadd.f32 %v1316_v60, %v1022_v57  ;;  %v1025_v53 = vadd.f32 %v1740_v29, %v1024_v30 }
 0x399   : > { %1066 = vst.msk [vmem:[%s1748_s12 + $0x70] sm:$0xff] %vm301_vm0, %v1050_v59  ;;  %v1051_v62 = vadd.f32 %v1317_v35, %v1033_v37 }
 0x39a   : > { %1064 = vst.msk [vmem:[%s1748_s12 + $0x60] sm:$0xff] %vm301_vm0, %v1048_v61  ;;  %v1049_v20 = vadd.f32 %v1318_v28, %v1025_v53 }
 0x39b   : > { %1067 = vst.msk [vmem:[%s1748_s12 + $0x78] sm:$0xff] %vm301_vm0, %v1051_v62 }
 0x39c   : > { %1065 = vst.msk [vmem:[%s1748_s12 + $0x68] sm:$0xff] %vm301_vm0, %v1049_v20 }
 0x39d PF: > { %s17_s24 = sadd.s32 1, %s1325_s24  }
 0x39e   : > { %p14_p4 = scmp.ge.s32.totalorder %s17_s24, 4  }
 0x3a0   :  { %16 = sbr.rel (!%p14_p4) target bundleno = 1 (0x1), region = 78 }

// kernel: tmsa_forward.2
= control target key start
LH: loop header
LB: loop body
LE: loop exit
PB: predicated region body
PF: predicated region fallthrough
CT: control target
= control target key end

     0   :  { %s4962_s27 = smov 0   ;;  %s6415_s0 = inlined_call_operand.vmem [shape: f32[4,64,32], index: 0, kind: input, shape index: {}]   ;;  %s6416_s1 = inlined_call_operand.vmem [shape: f32[1,32], index: 1, kind: input, shape index: {}]   ;;  %s6417_s2 = inlined_call_operand.vmem [shape: f32[1,32], index: 2, kind: input, shape index: {}]   ;;  %s6418_s3 = inlined_call_operand.vmem [shape: bf16[32,192], index: 3, kind: input, shape index: {}]   ;;  %s6419_s4 = inlined_call_operand.vmem [shape: f32[1,192], index: 4, kind: input, shape index: {}]   ;;  %s6420_s5 = inlined_call_operand.vmem [shape: bf16[32,32], index: 5, kind: input, shape index: {}]   ;;  %s6421_s6 = inlined_call_operand.vmem [shape: bf16[32,32], index: 6, kind: input, shape index: {}]   ;;  %s6422_s7 = inlined_call_operand.vmem [shape: f32[1,32], index: 7, kind: input, shape index: {}]   ;;  %s6423_s8 = inlined_call_operand.vmem [shape: f32[4,64,32], index: 8, kind: output, shape index: {}]  }
   0x1 LB: > { %s3885_s28 = sadd.s32 4294967295, %s4907_s27   ;;  %p3889_p0 = scmp.ge.s32.totalorder %s4907_s27, 1  ;;  %s4907_s27 = sphi %s4962_s27, %s18_s27  }
   0x2   : > { %p264_p1 = scmp.lt.s32.totalorder %s4907_s27, 3 }
   0x4   : > { %p265_p2 = pnand %p3889_p0, %p264_p1 }
   0x6   : > { %268 = sbr.rel (%p265_p2) target bundleno = 4940 (0x134c), region = 52 }
   0xd   : > { %s3890_s29 = sshll.u32 %s3885_s28, 1  ;;  %vm333_vm0 = vcmask 261120   ;;  %vm788_vm1 = vcmask 130048   ;;  %s4910_s26 = smov 96   ;;  %vm979_vm2 = vcmask 523264  }
   0xe   : > { %p301_p3 = scmp.lt.s32.totalorder %s3890_s29, 3  ;;  %s4911_s28 = smov 64  }
   0xf   : > { %s4912_s9 = smov 32   ;;  %s4913_s10 = smov 80  }
  0x10   : > { %s6477_s29 = smov (!%p301_p3, %s3890_s29), 3  ;;  %s4914_s12 = smov 112  }
  0x11   : > { %s3997_s30 = sshll.u32 %s6477_s29, 6  ;;  %s4915_s13 = smov 48  }
  0x12   : > { %s4978_s11 = scalar_lea.vmem %s6415_s0, %s3997_s30  ;;  %s4916_s14 = smov 16  }
  0x13   : > { %v315_v0 = vld [vmem:[%s4978_s11] sm:$0xff]  ;;  %v317_v1 = vld [vmem:[%s4978_s11 + $0x10] sm:$0xff]  ;;  %v316_v2 = vld [vmem:[%s4978_s11 + $0x8] sm:$0xff] }
  0x14   : > { %v334_v3 = vsel %vm333_vm0, %v315_v0, 0.0  ;;  %v340_v4 = vsel %vm333_vm0, %v317_v1, 0.0  ;;  %v318_v5 = vld [vmem:[%s4978_s11 + $0x18] sm:$0xff]  ;;  %v337_v6 = vsel %vm333_vm0, %v316_v2, 0.0  ;;  %v319_v8 = vld [vmem:[%s4978_s11 + $0x20] sm:$0xff]  ;;  %v320_v9 = vld [vmem:[%s4978_s11 + $0x28] sm:$0xff] }
  0x15   : > { %335 = vadd.xlane.f32.xlu0 %v334_v3  ;;  %341 = vadd.xlane.f32.xlu1 %v340_v4  ;;  %v343_v7 = vsel %vm333_vm0, %v318_v5, 0.0  ;;  %v346_v10 = vsel %vm333_vm0, %v319_v8, 0.0  ;;  %v349_v11 = vsel %vm333_vm0, %v320_v9, 0.0  ;;  %v4993_v12 = vld [vmem:[%s4978_s11 + $0x30] sm:$0xff]  ;;  %v4996_v13 = vld [vmem:[%s4978_s11 + $0x38] sm:$0xff]  ;;  %v5003_v16 = vld [vmem:[%s4978_s11 + $0x40] sm:$0xff] }
  0x16   : > { %v352_v14 = vsel %vm333_vm0, %v4993_v12, 0.0  ;;  %v355_v15 = vsel %vm333_vm0, %v4996_v13, 0.0  ;;  %v5006_v17 = vld [vmem:[%s4978_s11 + $0x48] sm:$0xff]  ;;  %v358_v18 = vsel %vm333_vm0, %v5003_v16, 0.0  ;;  %v5013_v20 = vld [vmem:[%s4978_s11 + $0x50] sm:$0xff]  ;;  %v5016_v21 = vld [vmem:[%s4978_s11 + $0x58] sm:$0xff] }
  0x17   : > { %v361_v19 = vsel %vm333_vm0, %v5006_v17, 0.0  ;;  %v364_v22 = vsel %vm333_vm0, %v5013_v20, 0.0  ;;  %v367_v23 = vsel %vm333_vm0, %v5016_v21, 0.0  ;;  %v5023_v24 = vld [vmem:[%s4978_s11 + $0x60] sm:$0xff]  ;;  %v5026_v25 = vld [vmem:[%s4978_s11 + $0x68] sm:$0xff]  ;;  %v5033_v28 = vld [vmem:[%s4978_s11 + $0x70] sm:$0xff] }
  0x18   : > { %v370_v26 = vsel %vm333_vm0, %v5023_v24, 0.0  ;;  %v373_v27 = vsel %vm333_vm0, %v5026_v25, 0.0  ;;  %v5036_v29 = vld [vmem:[%s4978_s11 + $0x78] sm:$0xff]  ;;  %v376_v30 = vsel %vm333_vm0, %v5033_v28, 0.0 }
  0x19   : > { %338 = vadd.xlane.f32.xlu0 %v337_v6  ;;  %344 = vadd.xlane.f32.xlu1 %v343_v7  ;;  %v379_v31 = vsel %vm333_vm0, %v5036_v29, 0.0 }
  0x1d   : > { %347 = vadd.xlane.f32.xlu0 %v346_v10  ;;  %350 = vadd.xlane.f32.xlu1 %v349_v11 }
  0x21   : > { %353 = vadd.xlane.f32.xlu0 %v352_v14  ;;  %356 = vadd.xlane.f32.xlu1 %v355_v15 }
  0x25   : > { %359 = vadd.xlane.f32.xlu0 %v358_v18  ;;  %362 = vadd.xlane.f32.xlu1 %v361_v19 }
  0x29   : > { %365 = vadd.xlane.f32.xlu0 %v364_v22  ;;  %368 = vadd.xlane.f32.xlu1 %v367_v23 }
  0x2d   : > { %371 = vadd.xlane.f32.xlu0 %v370_v26  ;;  %374 = vadd.xlane.f32.xlu1 %v373_v27 }
  0x31   : > { %377 = vadd.xlane.f32.xlu0 %v376_v30  ;;  %380 = vadd.xlane.f32.xlu1 %v379_v31 }
  0xa2   : > { %v336_v32 = vpop.xlane.xlu0 %335  ;;  %v342_v33 = vpop.xlane.xlu1 %341 }
  0xa3   : > { %v383_v34 = vmul.f32 0.03125, %v336_v32  ;;  %v385_v35 = vmul.f32 0.03125, %v342_v33 }
  0xa5   : > { %v5042_v36 = vsub.f32 %v315_v0, %v383_v34  ;;  %v5044_v37 = vsub.f32 %v317_v1, %v385_v35 }
  0xa6   : > { %v339_v38 = vpop.xlane.xlu0 %338  ;;  %v345_v39 = vpop.xlane.xlu1 %344 }
  0xa7   : > { %v384_v40 = vmul.f32 0.03125, %v339_v38  ;;  %v386_v41 = vmul.f32 0.03125, %v345_v39  ;;  %v415_v42 = vmul.f32 %v5042_v36, %v5042_v36  ;;  %v417_v43 = vmul.f32 %v5044_v37, %v5044_v37 }
  0xa9   : > { %v5050_v44 = vsub.f32 %v316_v2, %v384_v40  ;;  %v5052_v45 = vsub.f32 %v318_v5, %v386_v41  ;;  %v431_v46 = vsel %vm333_vm0, %v415_v42, 0.0  ;;  %v437_v49 = vsel %vm333_vm0, %v417_v43, 0.0 }
  0xaa   : > { %432 = vadd.xlane.f32.xlu0 %v431_v46  ;;  %v348_v47 = vpop.xlane.xlu0 %347  ;;  %v351_v48 = vpop.xlane.xlu1 %350 }
  0xab   : > { %v387_v50 = vmul.f32 0.03125, %v348_v47  ;;  %v388_v51 = vmul.f32 0.03125, %v351_v48  ;;  %v416_v52 = vmul.f32 %v5050_v44, %v5050_v44  ;;  %v418_v53 = vmul.f32 %v5052_v45, %v5052_v45 }
  0xad   : > { %v5060_v54 = vsub.f32 %v319_v8, %v387_v50  ;;  %v5062_v55 = vsub.f32 %v320_v9, %v388_v51  ;;  %v434_v56 = vsel %vm333_vm0, %v416_v52, 0.0  ;;  %v440_v59 = vsel %vm333_vm0, %v418_v53, 0.0  ;;  %v4589_v53 = vld [vmem:[%s6418_s3] ss:$8 sps:$4 sm:$0xff]  }
  0xae   : > { %438 = vadd.xlane.f32.xlu0 %v437_v49  ;;  %435 = vadd.xlane.f32.xlu1 %v434_v56  ;;  %v354_v57 = vpop.xlane.xlu0 %353  ;;  %v357_v58 = vpop.xlane.xlu1 %356  ;;  %v4590_v56 = vld [vmem:[%s6418_s3 + $0x14] ss:$8 sps:$4 sm:$0xff]  }
  0xaf   : > { %v389_v60 = vmul.f32 0.03125, %v354_v57  ;;  %v390_v61 = vmul.f32 0.03125, %v357_v58  ;;  %v419_v62 = vmul.f32 %v5060_v54, %v5060_v54  ;;  %v420_v63 = vmul.f32 %v5062_v55, %v5062_v55  ;;  %v4592_v57 = vld [vmem:[%s6418_s3 + $0x10] ss:$8 sps:$4 sm:$0xff]  }
  0xb0   : > { %v4909_v58 = vmov 0  }
  0xb1   : > { %v5071_v0 = vsub.f32 %v4993_v12, %v389_v60  ;;  %v5074_v1 = vsub.f32 %v4996_v13, %v390_v61  ;;  %v443_v2 = vsel %vm333_vm0, %v419_v62, 0.0  ;;  %v446_v5 = vsel %vm333_vm0, %v420_v63, 0.0  ;;  %687 = vmatprep.mubr.bf16.mxu0 %v4909_v58 }
  0xb2   : > { %441 = vadd.xlane.f32.xlu1 %v440_v59  ;;  %444 = vadd.xlane.f32.xlu0 %v443_v2  ;;  %v360_v3 = vpop.xlane.xlu0 %359  ;;  %v363_v4 = vpop.xlane.xlu1 %362 }
  0xb3   : > { %v391_v6 = vmul.f32 0.03125, %v360_v3  ;;  %v392_v7 = vmul.f32 0.03125, %v363_v4  ;;  %v421_v8 = vmul.f32 %v5071_v0, %v5071_v0  ;;  %v422_v9 = vmul.f32 %v5074_v1, %v5074_v1 }
  0xb5   : > { %v5083_v10 = vsub.f32 %v5003_v16, %v391_v6  ;;  %v5086_v11 = vsub.f32 %v5006_v17, %v392_v7  ;;  %v449_v12 = vsel %vm333_vm0, %v421_v8, 0.0  ;;  %v452_v15 = vsel %vm333_vm0, %v422_v9, 0.0 }
  0xb6   : > { %447 = vadd.xlane.f32.xlu1 %v446_v5  ;;  %450 = vadd.xlane.f32.xlu0 %v449_v12  ;;  %v366_v13 = vpop.xlane.xlu0 %365  ;;  %v369_v14 = vpop.xlane.xlu1 %368 }
  0xb7   : > { %v393_v18 = vmul.f32 0.03125, %v366_v13  ;;  %v394_v19 = vmul.f32 0.03125, %v369_v14  ;;  %v423_v22 = vmul.f32 %v5083_v10, %v5083_v10  ;;  %v424_v16 = vmul.f32 %v5086_v11, %v5086_v11 }
  0xb9   : > { %v5095_v23 = vsub.f32 %v5013_v20, %v393_v18  ;;  %v5098_v17 = vsub.f32 %v5016_v21, %v394_v19  ;;  %v455_v26 = vsel %vm333_vm0, %v423_v22, 0.0  ;;  %v458_v31 = vsel %vm333_vm0, %v424_v16, 0.0 }
  0xba   : > { %453 = vadd.xlane.f32.xlu1 %v452_v15  ;;  %456 = vadd.xlane.f32.xlu0 %v455_v26  ;;  %v372_v27 = vpop.xlane.xlu0 %371  ;;  %v375_v30 = vpop.xlane.xlu1 %374 }
  0xbb   : > { %v395_v32 = vmul.f32 0.03125, %v372_v27  ;;  %v396_v33 = vmul.f32 0.03125, %v375_v30  ;;  %v425_v34 = vmul.f32 %v5095_v23, %v5095_v23  ;;  %v426_v20 = vmul.f32 %v5098_v17, %v5098_v17  ;;  %v5149_v30 = vld [vmem:[%s6416_s1] ss:$0 sm:$0xff] }
  0xbd   : > { %v5107_v35 = vsub.f32 %v5023_v24, %v395_v32  ;;  %v5110_v21 = vsub.f32 %v5026_v25, %v396_v33  ;;  %v461_v38 = vsel %vm333_vm0, %v425_v34, 0.0  ;;  %v464_v41 = vsel %vm333_vm0, %v426_v20, 0.0 }
  0xbe   : > { %459 = vadd.xlane.f32.xlu1 %v458_v31  ;;  %462 = vadd.xlane.f32.xlu0 %v461_v38  ;;  %v378_v39 = vpop.xlane.xlu0 %377  ;;  %v381_v40 = vpop.xlane.xlu1 %380 }
  0xbf   : > { %v397_v42 = vmul.f32 0.03125, %v378_v39  ;;  %v398_v43 = vmul.f32 0.03125, %v381_v40  ;;  %v427_v46 = vmul.f32 %v5107_v35, %v5107_v35  ;;  %v428_v24 = vmul.f32 %v5110_v21, %v5110_v21 }
  0xc1   : > { %v5119_v47 = vsub.f32 %v5033_v28, %v397_v42  ;;  %v5122_v25 = vsub.f32 %v5036_v29, %v398_v43  ;;  %v467_v48 = vsel %vm333_vm0, %v427_v46, 0.0  ;;  %v470_v49 = vsel %vm333_vm0, %v428_v24, 0.0  ;;  %v4587_v29 = vld [vmem:[%s6418_s3 + $0x4] ss:$8 sps:$4 sm:$0xff]  }
  0xc2   : > { %465 = vadd.xlane.f32.xlu1 %v464_v41  ;;  %468 = vadd.xlane.f32.xlu0 %v467_v48 }
  0xc3   : > { %v429_v50 = vmul.f32 %v5119_v47, %v5119_v47  ;;  %v430_v51 = vmul.f32 %v5122_v25, %v5122_v25  ;;  %655 = vmatprep.subr.bf16.mxu0 %v4587_v29 }
  0xc4   : > { %656 = vmatpush1.bf16.msra.mxu0 %v4589_v53 }
  0xc5   : > { %v473_v52 = vsel %vm333_vm0, %v429_v50, 0.0  ;;  %v476_v28 = vsel %vm333_vm0, %v430_v51, 0.0  ;;  %657 = vmatprep.subr.bf16.mxu0 %v4590_v56 }
  0xc6   : > { %471 = vadd.xlane.f32.xlu1 %v470_v49  ;;  %474 = vadd.xlane.f32.xlu0 %v473_v52 }
  0xc8   : > { %658 = vmatpush1.bf16.msra.mxu0 %v4592_v57 }
  0xca   : > { %477 = vadd.xlane.f32.xlu1 %v476_v28 }
 0x137   : > { %v433_v59 = vpop.xlane.xlu0 %432 }
 0x138   : > { %v479_v60 = vmul.f32 0.03125, %v433_v59 }
 0x13a   : > { %v495_v61 = vadd.f32 1e-05, %v479_v60 }
 0x13b   : > { %v436_v62 = vpop.xlane.xlu1 %435  ;;  %v439_v63 = vpop.xlane.xlu0 %438 }
 0x13c   : > { %4597 = vrsqrt.f32 %v495_v61  ;;  %v480_v2 = vmul.f32 0.03125, %v436_v62  ;;  %v481_v3 = vmul.f32 0.03125, %v439_v63 }
 0x13e   : > { %v496_v4 = vadd.f32 1e-05, %v480_v2  ;;  %v497_v5 = vadd.f32 1e-05, %v481_v3 }
 0x13f   : > { %v442_v6 = vpop.xlane.xlu1 %441  ;;  %v445_v7 = vpop.xlane.xlu0 %444 }
 0x140   : > { %4599 = vrsqrt.f32 %v496_v4  ;;  %v482_v8 = vmul.f32 0.03125, %v442_v6  ;;  %v483_v12 = vmul.f32 0.03125, %v445_v7 }
 0x141   : > { %4601 = vrsqrt.f32 %v497_v5 }
 0x142   : > { %v498_v9 = vadd.f32 1e-05, %v482_v8  ;;  %v499_v18 = vadd.f32 1e-05, %v483_v12 }
 0x143   : > { %v448_v13 = vpop.xlane.xlu1 %447  ;;  %v451_v22 = vpop.xlane.xlu0 %450 }
 0x144   : > { %4603 = vrsqrt.f32 %v498_v9  ;;  %v484_v14 = vmul.f32 0.03125, %v448_v13  ;;  %v485_v32 = vmul.f32 0.03125, %v451_v22 }
 0x146   : > { %v4598_v15 = vpop.eup %4597  ;;  %v500_v19 = vadd.f32 1e-05, %v484_v14  ;;  %v501_v42 = vadd.f32 1e-05, %v485_v32 }
 0x147   : > { %v454_v16 = vpop.xlane.xlu1 %453  ;;  %v527_v26 = vmul.f32 %v4598_v15, %v5042_v36  ;;  %v5156_v36 = vld [vmem:[%s6417_s2] ss:$0 sm:$0xff]  ;;  %v457_v43 = vpop.xlane.xlu0 %456 }
 0x148   : > { %4605 = vrsqrt.f32 %v500_v19  ;;  %v486_v27 = vmul.f32 0.03125, %v454_v16  ;;  %v487_v28 = vmul.f32 0.03125, %v457_v43 }
 0x149   : > { %4607 = vrsqrt.f32 %v499_v18  ;;  %v549_v34 = vmul.f32 %v5149_v30, %v527_v26 }
 0x14a   : > { %v4600_v31 = vpop.eup %4599  ;;  %v502_v38 = vadd.f32 1e-05, %v486_v27  ;;  %v503_v59 = vadd.f32 1e-05, %v487_v28 }
 0x14b   : > { %v528_v33 = vmul.f32 %v4600_v31, %v5050_v44  ;;  %v4602_v20 = vpop.eup %4601  ;;  %v460_v39 = vpop.xlane.xlu1 %459  ;;  %v571_v46 = vadd.f32 %v5156_v36, %v549_v34 }
 0x14c   : > { %v529_v44 = vmul.f32 %v4602_v20, %v5044_v37  ;;  %4609 = vrsqrt.f32 %v502_v38  ;;  %v488_v49 = vmul.f32 0.03125, %v460_v39  ;;  %v463_v60 = vpop.xlane.xlu0 %462 }
 0x14d   : > { %v550_v40 = vmul.f32 %v5149_v30, %v528_v33  ;;  %4611 = vrsqrt.f32 %v501_v42  ;;  %v489_v5 = vmul.f32 0.03125, %v463_v60 }
 0x14e   : > { %v4604_v41 = vpop.eup %4603  ;;  %v551_v29 = vmul.f32 %v5149_v30, %v529_v44  ;;  %v504_v56 = vadd.f32 1e-05, %v488_v49 }
 0x14f   : > { %v572_v24 = vadd.f32 %v5156_v36, %v550_v40  ;;  %v530_v48 = vmul.f32 %v4604_v41, %v5052_v45  ;;  %v466_v57 = vpop.xlane.xlu1 %465  ;;  %v505_v12 = vadd.f32 1e-05, %v489_v5 }
 0x150   : > { %v573_v61 = vadd.f32 %v5156_v36, %v551_v29  ;;  %4613 = vrsqrt.f32 %v504_v56  ;;  %v490_v63 = vmul.f32 0.03125, %v466_v57  ;;  %v469_v13 = vpop.xlane.xlu0 %468 }
 0x151   : > { %v587_v50 = vpack.c.bf16 %v572_v24, %v571_v46  ;;  %v552_v51 = vmul.f32 %v5149_v30, %v530_v48  ;;  %4615 = vrsqrt.f32 %v503_v59  ;;  %v491_v26 = vmul.f32 0.03125, %v469_v13 }
 0x152   : > { %v4606_v52 = vpop.eup %4605 }
 0x153   : > { %3902 = vmatmul.mubr.msk.bf16.vlgmr.msra.gmra.mrb[0].mxu0 %vm333_vm0, %v587_v50  ;;  %v4608_v53 = vpop.eup %4607  ;;  %v574_v37 = vadd.f32 %v5156_v36, %v552_v51  ;;  %v532_v45 = vmul.f32 %v4606_v52, %v5062_v55  ;;  %v506_v55 = vadd.f32 1e-05, %v490_v63  ;;  %v472_v8 = vpop.xlane.xlu1 %471  ;;  %v507_v34 = vadd.f32 1e-05, %v491_v26 }
 0x154   : > { %697 = vmatprep.mubr.bf16.mxu0 %v4909_v58  ;;  %v531_v62 = vmul.f32 %v4608_v53, %v5060_v54  ;;  %v492_v18 = vmul.f32 0.03125, %v472_v8  ;;  %v475_v20 = vpop.xlane.xlu0 %474 }
 0x155   : > { %v588_v2 = vpack.c.bf16 %v574_v37, %v573_v61  ;;  %v554_v3 = vmul.f32 %v5149_v30, %v532_v45  ;;  %4617 = vrsqrt.f32 %v506_v55  ;;  %v493_v46 = vmul.f32 0.03125, %v475_v20 }
 0x156   : > { %v4610_v4 = vpop.eup %4609  ;;  %v553_v6 = vmul.f32 %v5149_v30, %v531_v62  ;;  %4619 = vrsqrt.f32 %v505_v12 }
 0x157   : > { %v4612_v7 = vpop.eup %4611  ;;  %v576_v9 = vadd.f32 %v5156_v36, %v554_v3  ;;  %v534_v54 = vmul.f32 %v4610_v4, %v5074_v1  ;;  %v508_v1 = vadd.f32 1e-05, %v492_v18  ;;  %v478_v32 = vpop.xlane.xlu1 %477  ;;  %v509_v49 = vadd.f32 1e-05, %v493_v46 }
 0x158   : > { %v575_v14 = vadd.f32 %v5156_v36, %v553_v6  ;;  %v533_v15 = vmul.f32 %v4612_v7, %v5071_v0  ;;  %v494_v40 = vmul.f32 0.03125, %v478_v32 }
 0x159   : > { %v556_v22 = vmul.f32 %v5149_v30, %v534_v54  ;;  %4621 = vrsqrt.f32 %v508_v1 }
 0x15a   : > { %v589_v19 = vpack.c.bf16 %v576_v9, %v575_v14  ;;  %v4614_v16 = vpop.eup %4613  ;;  %v555_v27 = vmul.f32 %v5149_v30, %v533_v15  ;;  %4623 = vrsqrt.f32 %v507_v34 }
 0x15b   : > { %3903 = vmatmul.mubr.msk.bf16.gmra.mrb[4].mxu0 %vm333_vm0, %v588_v2  ;;  %v4616_v31 = vpop.eup %4615  ;;  %v578_v33 = vadd.f32 %v5156_v36, %v556_v22  ;;  %v536_v0 = vmul.f32 %v4614_v16, %v5086_v11  ;;  %v510_v11 = vadd.f32 1e-05, %v494_v40 }
 0x15c   : > { %707 = vmatprep.mubr.bf16.mxu0 %v4909_v58  ;;  %v577_v38 = vadd.f32 %v5156_v36, %v555_v27  ;;  %v535_v39 = vmul.f32 %v4616_v31, %v5083_v10 }
 0x15d   : > { %v558_v42 = vmul.f32 %v5149_v30, %v536_v0  ;;  %4625 = vrsqrt.f32 %v510_v11 }
 0x15e   : > { %v590_v41 = vpack.c.bf16 %v578_v33, %v577_v38  ;;  %v557_v24 = vmul.f32 %v5149_v30, %v535_v39  ;;  %4627 = vrsqrt.f32 %v509_v49 }
 0x15f   : > { %v4618_v43 = vpop.eup %4617  ;;  %v580_v48 = vadd.f32 %v5156_v36, %v558_v42 }
 0x160   : > { %v4620_v44 = vpop.eup %4619  ;;  %v538_v10 = vmul.f32 %v4618_v43, %v5098_v17  ;;  %v579_v50 = vadd.f32 %v5156_v36, %v557_v24 }
 0x161   : > { %v537_v51 = vmul.f32 %v4620_v44, %v5095_v23 }
 0x162   : > { %v591_v52 = vpack.c.bf16 %v580_v48, %v579_v50  ;;  %v560_v28 = vmul.f32 %v5149_v30, %v538_v10 }
 0x163   : > { %3904 = vmatmul.mubr.msk.bf16.gmra.mrb[8].mxu0 %vm333_vm0, %v589_v19  ;;  %v4622_v29 = vpop.eup %4621  ;;  %v559_v53 = vmul.f32 %v5149_v30, %v537_v51 }
 0x164   : > { %717 = vmatprep.mubr.bf16.mxu0 %v4909_v58  ;;  %v4624_v56 = vpop.eup %4623  ;;  %v582_v17 = vadd.f32 %v5156_v36, %v560_v28  ;;  %v540_v57 = vmul.f32 %v4622_v29, %v5110_v21 }
 0x165   : > { %v581_v37 = vadd.f32 %v5156_v36, %v559_v53  ;;  %v539_v23 = vmul.f32 %v4624_v56, %v5107_v35 }
 0x166   : > { %v562_v59 = vmul.f32 %v5149_v30, %v540_v57 }
 0x167   : > { %v592_v45 = vpack.c.bf16 %v582_v17, %v581_v37  ;;  %v4626_v60 = vpop.eup %4625  ;;  %v561_v61 = vmul.f32 %v5149_v30, %v539_v23 }
 0x168   : > { %v4628_v62 = vpop.eup %4627  ;;  %v584_v63 = vadd.f32 %v5156_v36, %v562_v59  ;;  %v542_v2 = vmul.f32 %v4626_v60, %v5122_v25  ;;  %v601_v25 = vlaneseq }
 0x169   : > { %v583_v21 = vadd.f32 %v5156_v36, %v561_v61  ;;  %v541_v3 = vmul.f32 %v4628_v62, %v5119_v47  ;;  %v599_v47 = vld [vmem:[%s6419_s4] sm:$0x3] }
 0x16a   : > { %v564_v4 = vmul.f32 %v5149_v30, %v542_v2  ;;  %v602_v8 = vshrl.u32 %v601_v25, 7 }
 0x16b   : > { %3905 = vmatmul.mubr.msk.bf16.gmra.mrb[12].mxu0 %vm333_vm0, %v590_v41  ;;  %v593_v35 = vpack.c.bf16 %v584_v63, %v583_v21  ;;  %v563_v5 = vmul.f32 %v5149_v30, %v541_v3 }
 0x16c   : > { %727 = vmatprep.mubr.bf16.mxu0 %v4909_v58  ;;  %v586_v6 = vadd.f32 %v5156_v36, %v564_v4  ;;  %v603_v9 = vsub.s32 0, %v602_v8  ;;  %v607_v54 = vsub.s32 1, %v602_v8 }
 0x16d   : > { %v585_v7 = vadd.f32 %v5156_v36, %v563_v5 }
 0x16e   : > { %v5221_v12 = vrot.slane %v599_v47, %v603_v9  ;;  %v5223_v13 = vrot.slane %v599_v47, %v607_v54 }
 0x16f   : > { %v594_v55 = vpack.c.bf16 %v586_v6, %v585_v7 }
 0x173   : > { %3906 = vmatmul.mubr.msk.bf16.gmra.mrb[16].mxu0 %vm333_vm0, %v591_v52 }
 0x174   : > { %737 = vmatprep.mubr.bf16.mxu0 %v4909_v58 }
 0x17b   : > { %3907 = vmatmul.mubr.msk.bf16.gmra.mrb[20].mxu0 %vm333_vm0, %v592_v45 }
 0x17c   : > { %747 = vmatprep.mubr.bf16.mxu0 %v4909_v58 }
 0x183   : > { %3908 = vmatmul.mubr.msk.bf16.gmra.mrb[24].mxu0 %vm333_vm0, %v593_v35 }
 0x184   : > { %757 = vmatprep.mubr.bf16.mxu0 %v4909_v58 }
 0x18b   : > { %3909 = vmatmul.mubr.msk.bf16.gmra.mrb[28].mxu0 %vm333_vm0, %v594_v55 }
 0x226   : > { %v689_v30 = vpop.f32.mrb[0].mxu0 }
 0x227   : > { %v691_v58 = vpop.f32.mrb[1].mxu0  ;;  %v690_v36 = vadd.f32 %v689_v30, %v5221_v12 }
 0x228   : > { %v693_v14 = vpop.f32.mrb[2].mxu0  ;;  %v692_v19 = vadd.f32 %v691_v58, %v5223_v13 }
 0x229   : > { %v694_v15 = vadd.f32 %v693_v14, %v5221_v12  ;;  %v695_v18 = vpop.f32.mrb[3].mxu0 }
 0x22a   : > { %v696_v22 = vadd.f32 %v695_v18, %v5223_v13 }
 0x22b   : > { %v5229_v16 = vpack.c.bf16 %v694_v15, %v690_v36 }
 0x22c   : > { %v5231_v26 = vpack.c.bf16 %v696_v22, %v692_v19 }
 0x22d   : > { %780 = vrot.lane.b32.xlu0 %v5229_v16, %s4910_s26  ;;  %4155 = vmatprep.mubr.msk.bf16.mxu0 %vm788_vm1, %v5229_v16 }
 0x22e   : > { %v699_v27 = vpop.f32.mrb[4].mxu0 }
 0x22f   : > { %v701_v31 = vpop.f32.mrb[5].mxu0  ;;  %v700_v33 = vadd.f32 %v699_v27, %v5221_v12 }
 0x230   : > { %v702_v1 = vadd.f32 %v701_v31, %v5223_v13  ;;  %v703_v32 = vpop.f32.mrb[6].mxu0 }
 0x231   : > { %v704_v0 = vadd.f32 %v703_v32, %v5221_v12  ;;  %v705_v34 = vpop.f32.mrb[7].mxu0 }
 0x232   : > { %v706_v20 = vadd.f32 %v705_v34, %v5223_v13 }
 0x233   : > { %v5241_v38 = vpack.c.bf16 %v704_v0, %v700_v33 }
 0x234   : > { %v5243_v39 = vpack.c.bf16 %v706_v20, %v702_v1 }
 0x235   : > { %782 = vrot.lane.b32.xlu1 %v5241_v38, %s4910_s26 }
 0x236   : > { %v709_v40 = vpop.f32.mrb[8].mxu0 }
 0x237   : > { %v711_v41 = vpop.f32.mrb[9].mxu0  ;;  %v710_v46 = vadd.f32 %v709_v40, %v5221_v12 }
 0x238   : > { %v712_v42 = vadd.f32 %v711_v41, %v5223_v13  ;;  %v713_v43 = vpop.f32.mrb[10].mxu0 }
 0x239   : > { %v714_v24 = vadd.f32 %v713_v43, %v5221_v12  ;;  %v715_v44 = vpop.f32.mrb[11].mxu0 }
 0x23a   : > { %v716_v11 = vadd.f32 %v715_v44, %v5223_v13 }
 0x23b   : > { %v5251_v48 = vpack.c.bf16 %v714_v24, %v710_v46 }
 0x23c   : > { %v5253_v10 = vpack.c.bf16 %v716_v11, %v712_v42 }
 0x23e   : > { %v719_v49 = vpop.f32.mrb[12].mxu0 }
 0x23f   : > { %v721_v50 = vpop.f32.mrb[13].mxu0  ;;  %v720_v28 = vadd.f32 %v719_v49, %v5221_v12 }
 0x240   : > { %v722_v51 = vadd.f32 %v721_v50, %v5223_v13  ;;  %v723_v52 = vpop.f32.mrb[14].mxu0 }
 0x241   : > { %v724_v29 = vadd.f32 %v723_v52, %v5221_v12  ;;  %v725_v53 = vpop.f32.mrb[15].mxu0 }
 0x242   : > { %v726_v56 = vadd.f32 %v725_v53, %v5223_v13 }
 0x243   : > { %v5259_v17 = vpack.c.bf16 %v724_v29, %v720_v28 }
 0x244   : > { %v5261_v57 = vpack.c.bf16 %v726_v56, %v722_v51 }
 0x246   : > { %v729_v37 = vpop.f32.mrb[16].mxu0 }
 0x247   : > { %v731_v23 = vpop.f32.mrb[17].mxu0  ;;  %v730_v60 = vadd.f32 %v729_v37, %v5221_v12 }
 0x248   : > { %v732_v45 = vadd.f32 %v731_v23, %v5223_v13  ;;  %v733_v59 = vpop.f32.mrb[18].mxu0 }
 0x249   : > { %v734_v61 = vadd.f32 %v733_v59, %v5221_v12  ;;  %v735_v62 = vpop.f32.mrb[19].mxu0 }
 0x24a   : > { %v736_v63 = vadd.f32 %v735_v62, %v5223_v13 }
 0x24b   : > { %v5267_v2 = vpack.c.bf16 %v734_v61, %v730_v60 }
 0x24c   : > { %v5269_v21 = vpack.c.bf16 %v736_v63, %v732_v45 }
 0x24d   : > { %882 = vrot.lane.b32.xlu1 %v5267_v2, %s4910_s26  ;;  %4171 = vmatprep.mubr.msk.bf16.mxu1 %vm788_vm1, %v5267_v2 }
 0x24e   : > { %v739_v3 = vpop.f32.mrb[20].mxu0 }
 0x24f   : > { %v741_v35 = vpop.f32.mrb[21].mxu0  ;;  %v740_v6 = vadd.f32 %v739_v3, %v5221_v12 }
 0x250   : > { %v742_v4 = vadd.f32 %v741_v35, %v5223_v13  ;;  %v743_v5 = vpop.f32.mrb[22].mxu0 }
 0x251   : > { %v744_v7 = vadd.f32 %v743_v5, %v5221_v12  ;;  %784 = vrot.lane.b32.xlu1 %v5251_v48, %s4910_s26  ;;  %v745_v55 = vpop.f32.mrb[23].mxu0 }
 0x252   : > { %v746_v25 = vadd.f32 %v745_v55, %v5223_v13 }
 0x253   : > { %v5281_v8 = vpack.c.bf16 %v744_v7, %v740_v6 }
 0x254   : > { %v5283_v9 = vpack.c.bf16 %v746_v25, %v742_v4 }
 0x255   : > { %786 = vrot.lane.b32.xlu1 %v5259_v17, %s4910_s26  ;;  %884 = vrot.lane.b32.xlu0 %v5281_v8, %s4910_s26 }
 0x256   : > { %v749_v47 = vpop.f32.mrb[24].mxu0 }
 0x257   : > { %v751_v54 = vpop.f32.mrb[25].mxu0  ;;  %v750_v14 = vadd.f32 %v749_v47, %v5221_v12 }
 0x258   : > { %v752_v30 = vadd.f32 %v751_v54, %v5223_v13  ;;  %v753_v58 = vpop.f32.mrb[26].mxu0 }
 0x259   : > { %v754_v36 = vadd.f32 %v753_v58, %v5221_v12  ;;  %v755_v15 = vpop.f32.mrb[27].mxu0 }
 0x25a   : > { %v756_v18 = vadd.f32 %v755_v15, %v5223_v13 }
 0x25b   : > { %v5293_v19 = vpack.c.bf16 %v754_v36, %v750_v14 }
 0x25c   : > { %v5295_v22 = vpack.c.bf16 %v756_v18, %v752_v30 }
 0x25d   : > { %886 = vrot.lane.b32.xlu0 %v5293_v19, %s4910_s26 }
 0x25e   : > { %v759_v27 = vpop.f32.mrb[28].mxu0 }
 0x25f   : > { %v761_v31 = vpop.f32.mrb[29].mxu0  ;;  %v760_v33 = vadd.f32 %v759_v27, %v5221_v12 }
 0x260   : > { %v762_v1 = vadd.f32 %v761_v31, %v5223_v13  ;;  %v763_v32 = vpop.f32.mrb[30].mxu0 }
 0x261   : > { %v764_v0 = vadd.f32 %v763_v32, %v5221_v12  ;;  %1164 = vrot.lane.b32.xlu0 %v5229_v16, %s4911_s28  ;;  %v765_v34 = vpop.f32.mrb[31].mxu0 }
 0x262   : > { %v766_v20 = vadd.f32 %v765_v34, %v5223_v13 }
 0x263   : > { %v5305_v40 = vpack.c.bf16 %v764_v0, %v760_v33 }
 0x264   : > { %v5307_v41 = vpack.c.bf16 %v766_v20, %v762_v1 }
 0x265   : > { %1168 = vrot.lane.b32.xlu0 %v5251_v48, %s4911_s28  ;;  %888 = vrot.lane.b32.xlu1 %v5305_v40, %s4910_s26 }
 0x269   : > { %1166 = vrot.lane.b32.xlu1 %v5241_v38, %s4911_s28 }
 0x26d   : > { %1170 = vrot.lane.b32.xlu1 %v5259_v17, %s4911_s28 }
 0x29f   : > { %v781_v12 = vpop.permute.xlu0 %780 }
 0x2a0   : > { %4459 = vmatprep.subr.msk.bf16.mxu0 %vm788_vm1, %v781_v12  ;;  %v802_v13 = vsel %vm788_vm1, %v781_v12, 0 }
 0x2a1   : > { %4148 = vmatpush3.bf16.xpose.msra.mxu0 %v802_v13 }
 0x2a7   : > { %v783_v42 = vpop.permute.xlu1 %782 }
 0x2a8   : > { %4460 = vmatprep.subr.msk.bf16.mxu0 %vm788_vm1, %v783_v42  ;;  %v805_v43 = vsel %vm788_vm1, %v783_v42, 0 }
 0x2a9   : > { %4150 = vmatpush3.bf16.xpose.msra.mxu0 %v805_v43 }
 0x2bf   : > { %v883_v46 = vpop.permute.xlu1 %882 }
 0x2c0   : > { %4463 = vmatprep.subr.msk.bf16.mxu1 %vm788_vm1, %v883_v46  ;;  %v903_v24 = vsel %vm788_vm1, %v883_v46, 0 }
 0x2c1   : > { %4164 = vmatpush3.bf16.xpose.msra.mxu1 %v903_v24 }
 0x2c3   : > { %v785_v44 = vpop.permute.xlu1 %784 }
 0x2c4   : > { %4461 = vmatprep.subr.msk.bf16.mxu0 %vm788_vm1, %v785_v44  ;;  %v808_v11 = vsel %vm788_vm1, %v785_v44, 0 }
 0x2c5   : > { %4152 = vmatpush3.bf16.xpose.msra.mxu0 %v808_v11 }
 0x2c7   : > { %v787_v49 = vpop.permute.xlu1 %786  ;;  %v885_v50 = vpop.permute.xlu0 %884 }
 0x2c8   : > { %4462 = vmatprep.subr.msk.bf16.mxu0 %vm788_vm1, %v787_v49  ;;  %4464 = vmatprep.subr.msk.bf16.mxu1 %vm788_vm1, %v885_v50  ;;  %v906_v51 = vsel %vm788_vm1, %v885_v50, 0  ;;  %v811_v52 = vsel %vm788_vm1, %v787_v49, 0 }
 0x2c9   : > { %4166 = vmatpush3.bf16.xpose.msra.mxu1 %v906_v51 }
 0x2cd   : > { %4154 = vmatpush3.bf16.xpose.msra.mxu0 %v811_v52 }
 0x2cf   : > { %v887_v28 = vpop.permute.xlu0 %886 }
 0x2d0   : > { %4465 = vmatprep.subr.msk.bf16.mxu1 %vm788_vm1, %v887_v28  ;;  %v909_v29 = vsel %vm788_vm1, %v887_v28, 0 }
 0x2d1   : > { %4168 = vmatpush3.bf16.xpose.msra.mxu1 %v909_v29 }
 0x2d3   : > { %v1165_v53 = vpop.permute.xlu0 %1164 }
 0x2d4   : > { %4156 = vmatmul.mubr.msk.bf16.vlgmr.msra.gmra.mrb[32].mxu0 %vm788_vm1, %v5241_v38  ;;  %4179 = vmatprep.subr.bf16.mxu0 %v1165_v53 }
 0x2d5   : > { %4159 = vmatprep.mubr.msk.bf16.mxu0 %vm788_vm1, %v5251_v48  ;;  %4180 = vmatpush3.bf16.msra.mxu0 %v1165_v53 }
 0x2d7   : > { %v889_v56 = vpop.permute.xlu1 %888  ;;  %v1169_v45 = vpop.permute.xlu0 %1168 }
 0x2d8   : > { %4466 = vmatprep.subr.msk.bf16.mxu1 %vm788_vm1, %v889_v56  ;;  %v912_v37 = vsel %vm788_vm1, %v889_v56, 0 }
 0x2d9   : > { %4170 = vmatpush3.bf16.xpose.msra.mxu1 %v912_v37 }
 0x2db   : > { %v1167_v23 = vpop.permute.xlu1 %1166 }
 0x2dc   : > { %4160 = vmatmul.mubr.msk.bf16.gmra.mrb[36].mxu0 %vm788_vm1, %v5259_v17  ;;  %4181 = vmatprep.subr.bf16.mxu0 %v1167_v23 }
 0x2dd   : > { %4182 = vmatpush3.bf16.msra.mxu0 %v1167_v23 }
 0x2de   : > { %4183 = vmatprep.subr.bf16.mxu0 %v1169_v45 }
 0x2df   : > { %v1171_v59 = vpop.permute.xlu1 %1170 }
 0x2e0   : > { %4172 = vmatmul.mubr.msk.bf16.vlgmr.msra.gmra.mrb[0].mxu1 %vm788_vm1, %v5281_v8 }
 0x2e1   : > { %4175 = vmatprep.mubr.msk.bf16.mxu1 %vm788_vm1, %v5293_v19  ;;  %4184 = vmatpush3.bf16.msra.mxu0 %v1169_v45 }
 0x2e2   : > { %4185 = vmatprep.subr.bf16.mxu0 %v1171_v59 }
 0x2e5   : > { %4186 = vmatpush3.bf16.msra.mxu0 %v1171_v59 }
 0x2e6   : > { %4467 = vmatprep.subr.msk.bf16.mxu0 %vm788_vm1, %v5231_v26 }
 0x2e8   : > { %4176 = vmatmul.mubr.msk.bf16.gmra.mrb[4].mxu1 %vm788_vm1, %v5305_v40 }
 0x3a7   : > { %v4157_v60 = vpop.f32.mrb[32].mxu0 }
 0x3a8   : > { %v847_v61 = vpop.f32.mrb[33].mxu0  ;;  %v986_v62 = vsel %vm979_vm2, %v4157_v60, -inf }
 0x3a9   : > { %987 = vmax.xlane.f32.xlu0 %v986_v62  ;;  %v4158_v63 = vpop.f32.mrb[34].mxu0  ;;  %v980_v4 = vsel %vm979_vm2, %v847_v61, -inf }
 0x3aa   : > { %v850_v3 = vpop.f32.mrb[35].mxu0  ;;  %v989_v7 = vsel %vm979_vm2, %v4158_v63, -inf }
 0x3ab   : > { %v983_v35 = vsel %vm979_vm2, %v850_v3, -inf }
 0x3ac   : > { %984 = vmax.xlane.f32.xlu1 %v983_v35 }
 0x3ad   : > { %981 = vmax.xlane.f32.xlu0 %v980_v4 }
 0x3af   : > { %v5350_v5 = vpop.f32.mrb[36].mxu0 }
 0x3b0   : > { %v5352_v6 = vpop.f32.mrb[37].mxu0  ;;  %v998_v58 = vsel %vm979_vm2, %v5350_v5, -inf }
 0x3b1   : > { %990 = vmax.xlane.f32.xlu0 %v989_v7  ;;  %v4162_v55 = vpop.f32.mrb[38].mxu0  ;;  %v992_v18 = vsel %vm979_vm2, %v5352_v6, -inf }
 0x3b2   : > { %v5355_v25 = vpop.f32.mrb[39].mxu0  ;;  %v1001_v47 = vsel %vm979_vm2, %v4162_v55, -inf }
 0x3b3   : > { %1002 = vmax.xlane.f32.xlu1 %v1001_v47  ;;  %v5358_v54 = vpop.f32.mrb[0].mxu1  ;;  %v995_v15 = vsel %vm979_vm2, %v5355_v25, -inf }
 0x3b4   : > { %v5360_v30 = vpop.f32.mrb[1].mxu1  ;;  %v1010_v32 = vsel %vm979_vm2, %v5358_v54, -inf }
 0x3b5   : > { %999 = vmax.xlane.f32.xlu0 %v998_v58  ;;  %v5364_v14 = vpop.f32.mrb[2].mxu1  ;;  %v1004_v20 = vsel %vm979_vm2, %v5360_v30, -inf }
 0x3b6   : > { %v5366_v36 = vpop.f32.mrb[3].mxu1  ;;  %v1013_v27 = vsel %vm979_vm2, %v5364_v14, -inf }
 0x3b7   : > { %996 = vmax.xlane.f32.xlu1 %v995_v15  ;;  %v1007_v34 = vsel %vm979_vm2, %v5366_v36, -inf }
 0x3b9   : > { %993 = vmax.xlane.f32.xlu0 %v992_v18 }
 0x3bb   : > { %1014 = vmax.xlane.f32.xlu1 %v1013_v27  ;;  %v5374_v31 = vpop.f32.mrb[4].mxu1 }
 0x3bc   : > { %v5376_v1 = vpop.f32.mrb[5].mxu1  ;;  %v1022_v13 = vsel %vm979_vm2, %v5374_v31, -inf }
 0x3bd   : > { %1011 = vmax.xlane.f32.xlu0 %v1010_v32  ;;  %v5380_v33 = vpop.f32.mrb[6].mxu1  ;;  %v1016_v43 = vsel %vm979_vm2, %v5376_v1, -inf }
 0x3be   : > { %v5382_v0 = vpop.f32.mrb[7].mxu1  ;;  %v1025_v12 = vsel %vm979_vm2, %v5380_v33, -inf }
 0x3bf   : > { %1008 = vmax.xlane.f32.xlu1 %v1007_v34  ;;  %v1019_v42 = vsel %vm979_vm2, %v5382_v0, -inf }
 0x3c1   : > { %1005 = vmax.xlane.f32.xlu0 %v1004_v20 }
 0x3c3   : > { %1026 = vmax.xlane.f32.xlu1 %v1025_v12 }
 0x3c5   : > { %1023 = vmax.xlane.f32.xlu0 %v1022_v13 }
 0x3c7   : > { %1020 = vmax.xlane.f32.xlu1 %v1019_v42 }
 0x3c9   : > { %1017 = vmax.xlane.f32.xlu0 %v1016_v43 }
 0x3d8   : > { %1255 = vrot.lane.b32.xlu1 %v5281_v8, %s4911_s28 }
 0x3df   : > { %1253 = vrot.lane.b32.xlu0 %v5267_v2, %s4911_s28 }
 0x3e3   : > { %1257 = vrot.lane.b32.xlu0 %v5293_v19, %s4911_s28 }
 0x3e7   : > { %1259 = vrot.lane.b32.xlu0 %v5305_v40, %s4911_s28  ;;  %s6317_s28 = scalar_lea.vmem %s6423_s8, %s3997_s30 }
 0x436   : > { %v988_v46 = vpop.xlane.xlu0 %987 }
 0x437   : > { %v1030_v24 = vsub.f32 %v4157_v60, %v988_v46 }
 0x439   : > { %v1048_v44 = vmul.f32 1.442695, %v1030_v24  ;;  %v985_v11 = vpop.xlane.xlu1 %984 }
 0x43a   : > { %v982_v49 = vpop.xlane.xlu0 %981  ;;  %v1029_v51 = vsub.f32 %v850_v3, %v985_v11 }
 0x43b   : > { %4629 = vpow2.f32 %v1048_v44  ;;  %v1028_v50 = vsub.f32 %v847_v61, %v982_v49 }
 0x43c   : > { %v1046_v56 = vmul.f32 1.442695, %v1029_v51 }
 0x43d   : > { %v1044_v52 = vmul.f32 1.442695, %v1028_v50 }
 0x43e   : > { %v991_v28 = vpop.xlane.xlu0 %990 }
 0x43f   : > { %4631 = vpow2.f32 %v1044_v52  ;;  %v1031_v29 = vsub.f32 %v4158_v63, %v991_v28 }
 0x440   : > { %v1003_v53 = vpop.xlane.xlu1 %1002 }
 0x441   : > { %v1050_v37 = vmul.f32 1.442695, %v1031_v29  ;;  %v1035_v23 = vsub.f32 %v4162_v55, %v1003_v53 }
 0x442   : > { %v1000_v45 = vpop.xlane.xlu0 %999 }
 0x443   : > { %4633 = vpow2.f32 %v1050_v37  ;;  %v1034_v59 = vsub.f32 %v5350_v5, %v1000_v45  ;;  %v1058_v35 = vmul.f32 1.442695, %v1035_v23 }
 0x444   : > { %v997_v62 = vpop.xlane.xlu1 %996  ;;  %4635 = vpow2.f32 %v1046_v56 }
 0x445   : > { %v5405_v60 = vpop.eup %4629  ;;  %v1056_v4 = vmul.f32 1.442695, %v1034_v59  ;;  %v1033_v61 = vsub.f32 %v5355_v25, %v997_v62 }
 0x446   : > { %v994_v3 = vpop.xlane.xlu0 %993  ;;  %v1082_v63 = vsel %vm979_vm2, %v5405_v60, 0.0 }
 0x447   : > { %4637 = vpow2.f32 %v1056_v4  ;;  %v1032_v7 = vsub.f32 %v5352_v6, %v994_v3  ;;  %1083 = vadd.xlane.f32.xlu0 %v1082_v63  ;;  %v1054_v5 = vmul.f32 1.442695, %v1033_v61 }
 0x448   : > { %v1015_v55 = vpop.xlane.xlu1 %1014  ;;  %4639 = vpow2.f32 %v1058_v35 }
 0x449   : > { %v5411_v47 = vpop.eup %4631  ;;  %v1052_v58 = vmul.f32 1.442695, %v1032_v7  ;;  %v1039_v6 = vsub.f32 %v5364_v14, %v1015_v55 }
 0x44a   : > { %v1012_v15 = vpop.xlane.xlu0 %1011  ;;  %v1076_v18 = vsel %vm979_vm2, %v5411_v47, 0.0 }
 0x44b   : > { %4641 = vpow2.f32 %v1052_v58  ;;  %v1038_v25 = vsub.f32 %v5358_v54, %v1012_v15  ;;  %1077 = vadd.xlane.f32.xlu0 %v1076_v18  ;;  %v1066_v54 = vmul.f32 1.442695, %v1039_v6 }
 0x44c   : > { %v1009_v27 = vpop.xlane.xlu1 %1008  ;;  %4643 = vpow2.f32 %v1054_v5 }
 0x44d   : > { %v5416_v32 = vpop.eup %4633  ;;  %v1064_v34 = vmul.f32 1.442695, %v1038_v25  ;;  %v1037_v46 = vsub.f32 %v5366_v36, %v1009_v27 }
 0x44e   : > { %v1006_v20 = vpop.xlane.xlu0 %1005  ;;  %v1085_v12 = vsel %vm979_vm2, %v5416_v32, 0.0  ;;  %v5421_v13 = vpop.eup %4635 }
 0x44f   : > { %4645 = vpow2.f32 %v1064_v34  ;;  %v1036_v42 = vsub.f32 %v5360_v30, %v1006_v20  ;;  %1086 = vadd.xlane.f32.xlu1 %v1085_v12  ;;  %v1079_v14 = vsel %vm979_vm2, %v5421_v13, 0.0  ;;  %v1062_v36 = vmul.f32 1.442695, %v1037_v46 }
 0x450   : > { %v1027_v44 = vpop.xlane.xlu1 %1026 }
 0x451   : > { %v5424_v43 = vpop.eup %4637  ;;  %v1060_v24 = vmul.f32 1.442695, %v1036_v42  ;;  %v1043_v45 = vsub.f32 %v5380_v33, %v1027_v44 }
 0x452   : > { %v1024_v11 = vpop.xlane.xlu0 %1023  ;;  %v1094_v49 = vsel %vm979_vm2, %v5424_v43, 0.0  ;;  %v5431_v50 = vpop.eup %4639 }
 0x453   : > { %4647 = vpow2.f32 %v1060_v24  ;;  %v1042_v30 = vsub.f32 %v5374_v31, %v1024_v11  ;;  %1080 = vadd.xlane.f32.xlu1 %v1079_v14  ;;  %1095 = vadd.xlane.f32.xlu0 %v1094_v49  ;;  %v1097_v29 = vsel %vm979_vm2, %v5431_v50, 0.0 }
 0x454   : > { %4649 = vpow2.f32 %v1066_v54  ;;  %v1021_v37 = vpop.xlane.xlu1 %1020 }
 0x455   : > { %v5434_v51 = vpop.eup %4641  ;;  %v1072_v52 = vmul.f32 1.442695, %v1042_v30  ;;  %v1041_v3 = vsub.f32 %v5382_v0, %v1021_v37 }
 0x456   : > { %v1018_v28 = vpop.xlane.xlu0 %1017  ;;  %v1088_v53 = vsel %vm979_vm2, %v5434_v51, 0.0  ;;  %v5440_v56 = vpop.eup %4643 }
 0x457   : > { %4651 = vpow2.f32 %v1072_v52  ;;  %v1040_v31 = vsub.f32 %v5376_v1, %v1018_v28  ;;  %1098 = vadd.xlane.f32.xlu1 %v1097_v29  ;;  %1089 = vadd.xlane.f32.xlu0 %v1088_v53  ;;  %v1091_v35 = vsel %vm979_vm2, %v5440_v56, 0.0  ;;  %v1074_v1 = vmul.f32 1.442695, %v1043_v45 }
 0x458   : > { %4653 = vpow2.f32 %v1062_v36  ;;  %v1256_v63 = vpop.permute.xlu1 %1255  ;;  %v1070_v58 = vmul.f32 1.442695, %v1041_v3 }
 0x459   : > { %v5443_v23 = vpop.eup %4645  ;;  %v1068_v59 = vmul.f32 1.442695, %v1040_v31 }
 0x45a   : > { %v1254_v62 = vpop.permute.xlu0 %1253  ;;  %v1106_v4 = vsel %vm979_vm2, %v5443_v23, 0.0 }
 0x45b   : > { %1092 = vadd.xlane.f32.xlu1 %v1091_v35  ;;  %1107 = vadd.xlane.f32.xlu0 %v1106_v4  ;;  %4655 = vpow2.f32 %v1068_v59 }
 0x45c   : > { %4195 = vmatprep.subr.bf16.mxu1 %v1254_v62  ;;  %4657 = vpow2.f32 %v1074_v1 }
 0x45d   : > { %v5450_v61 = vpop.eup %4647  ;;  %4196 = vmatpush3.bf16.msra.mxu1 %v1254_v62  ;;  %4659 = vpow2.f32 %v1070_v58 }
 0x45e   : > { %4197 = vmatprep.subr.bf16.mxu1 %v1256_v63  ;;  %v1100_v33 = vsel %vm979_vm2, %v5450_v61, 0.0  ;;  %v5455_v7 = vpop.eup %4649  ;;  %v1258_v55 = vpop.permute.xlu0 %1257 }
 0x45f   : > { %1101 = vadd.xlane.f32.xlu1 %v1100_v33  ;;  %v1109_v0 = vsel %vm979_vm2, %v5455_v7, 0.0 }
 0x461   : > { %v5457_v5 = vpop.eup %4651  ;;  %4198 = vmatpush3.bf16.msra.mxu1 %v1256_v63 }
 0x462   : > { %4199 = vmatprep.subr.bf16.mxu1 %v1258_v55  ;;  %v1118_v15 = vsel %vm979_vm2, %v5457_v5, 0.0  ;;  %v5463_v18 = vpop.eup %4653  ;;  %v1260_v25 = vpop.permute.xlu0 %1259 }
 0x463   : > { %1110 = vadd.xlane.f32.xlu1 %v1109_v0  ;;  %1119 = vadd.xlane.f32.xlu0 %v1118_v15  ;;  %v1103_v27 = vsel %vm979_vm2, %v5463_v18, 0.0 }
 0x465   : > { %4200 = vmatpush3.bf16.msra.mxu1 %v1258_v55  ;;  %v5467_v6 = vpop.eup %4655 }
 0x466   : > { %4201 = vmatprep.subr.bf16.mxu1 %v1260_v25  ;;  %v1112_v34 = vsel %vm979_vm2, %v5467_v6, 0.0  ;;  %v5473_v20 = vpop.eup %4657 }
 0x467   : > { %1104 = vadd.xlane.f32.xlu1 %v1103_v27  ;;  %v1121_v12 = vsel %vm979_vm2, %v5473_v20, 0.0  ;;  %v5477_v42 = vpop.eup %4659 }
 0x468   : > { %v1115_v54 = vsel %vm979_vm2, %v5477_v42, 0.0 }
 0x469   : > { %4202 = vmatpush3.bf16.msra.mxu1 %v1260_v25 }
 0x46a   : > { %4469 = vmatprep.subr.msk.bf16.mxu1 %vm788_vm1, %v5269_v21 }
 0x46b   : > { %1113 = vadd.xlane.f32.xlu1 %v1112_v34 }
 0x46f   : > { %1122 = vadd.xlane.f32.xlu1 %v1121_v12 }
 0x473   : > { %1116 = vadd.xlane.f32.xlu1 %v1115_v54 }
 0x479   : > { %1346 = vrot.lane.b32.xlu0 %v5251_v48, %s4912_s9 }
 0x47d   : > { %1411 = vrot.lane.b32.xlu0 %v5293_v19, %s4912_s9 }
 0x484   : > { %1348 = vrot.lane.b32.xlu1 %v5259_v17, %s4912_s9 }
 0x488   : > { %1413 = vrot.lane.b32.xlu1 %v5305_v40, %s4912_s9 }
 0x4d4   : > { %v1084_v46 = vpop.xlane.xlu0 %1083 }
 0x4d8   : > { %v1078_v24 = vpop.xlane.xlu0 %1077 }
 0x4dc   : > { %v1087_v44 = vpop.xlane.xlu1 %1086 }
 0x4dd   : > { %4661 = vrcp.f32 %v1087_v44 }
 0x4de   : > { %4663 = vrcp.f32 %v1078_v24 }
 0x4df   : > { %4665 = vrcp.f32 %v1084_v46 }
 0x4e0   : > { %v1081_v11 = vpop.xlane.xlu1 %1080  ;;  %v1096_v14 = vpop.xlane.xlu0 %1095 }
 0x4e1   : > { %4667 = vrcp.f32 %v1081_v11 }
 0x4e4   : > { %v1099_v49 = vpop.xlane.xlu1 %1098  ;;  %v1090_v30 = vpop.xlane.xlu0 %1089 }
 0x4e5   : > { %4669 = vrcp.f32 %v1099_v49 }
 0x4e6   : > { %4671 = vrcp.f32 %v1090_v30 }
 0x4e7   : > { %v4662_v36 = vpop.eup %4661  ;;  %4673 = vrcp.f32 %v1096_v14 }
 0x4e8   : > { %v1093_v52 = vpop.xlane.xlu1 %1092  ;;  %v4664_v28 = vpop.eup %4663  ;;  %v1143_v37 = vmul.f32 %v4662_v36, %v5416_v32  ;;  %v1357_v32 = vsel %vm788_vm1, %v5231_v26, 0 }
 0x4e9   : > { %4675 = vrcp.f32 %v1093_v52  ;;  %v4666_v29 = vpop.eup %4665  ;;  %v1140_v45 = vmul.f32 %v4664_v28, %v5411_v47  ;;  %v1108_v1 = vpop.xlane.xlu0 %1107 }
 0x4ea   : > { %v1142_v62 = vmul.f32 %v4666_v29, %v5405_v60 }
 0x4eb   : > { %v4668_v53 = vpop.eup %4667 }
 0x4ec   : > { %v1102_v31 = vpop.xlane.xlu1 %1101  ;;  %v1141_v59 = vmul.f32 %v4668_v53, %v5421_v13  ;;  %v1157_v4 = vpack.c.bf16 %v1143_v37, %v1142_v62 }
 0x4ee   : > { %v1156_v35 = vpack.c.bf16 %v1141_v59, %v1140_v45  ;;  %v1425_v45 = vsel %vm788_vm1, %v5283_v9, 0 }
 0x4ef   : > { %v4670_v3 = vpop.eup %4669 }
 0x4f0   : > { %v1111_v63 = vpop.xlane.xlu1 %1110  ;;  %4187 = vmatprep.mubr.msk.bf16.mxu0 %vm979_vm2, %v1156_v35  ;;  %v4672_v33 = vpop.eup %4671  ;;  %v1147_v60 = vmul.f32 %v4670_v3, %v5431_v50  ;;  %v1360_v50 = vsel %vm788_vm1, %v5243_v39, 0 }
 0x4f1   : > { %4188 = vmatmul.mubr.msk.bf16.vlgmr.msra.gmra.mrb[40].mxu0 %vm979_vm2, %v1157_v4  ;;  %v4674_v55 = vpop.eup %4673  ;;  %4677 = vrcp.f32 %v1111_v63  ;;  %v1120_v13 = vpop.xlane.xlu0 %1119  ;;  %v1144_v0 = vmul.f32 %v4672_v33, %v5434_v51 }
 0x4f2   : > { %4212 = vmatpush3.bf16.xpose.msra.mxu0 %v1357_v32  ;;  %4679 = vrcp.f32 %v1102_v31  ;;  %v1146_v25 = vmul.f32 %v4674_v55, %v5424_v43 }
 0x4f3   : > { %v4676_v47 = vpop.eup %4675  ;;  %4468 = vmatprep.subr.msk.bf16.mxu0 %vm788_vm1, %v5243_v39  ;;  %4681 = vrcp.f32 %v1108_v1 }
 0x4f4   : > { %v1105_v58 = vpop.xlane.xlu1 %1104  ;;  %v1145_v15 = vmul.f32 %v4676_v47, %v5440_v56  ;;  %v1159_v34 = vpack.c.bf16 %v1147_v60, %v1146_v25 }
 0x4f5   : > { %4683 = vrcp.f32 %v1105_v58  ;;  %v1347_v54 = vpop.permute.xlu0 %1346 }
 0x4f6   : > { %v1158_v27 = vpack.c.bf16 %v1145_v15, %v1144_v0 }
 0x4f8   : > { %v1114_v12 = vpop.xlane.xlu1 %1113  ;;  %4191 = vmatprep.mubr.msk.bf16.mxu0 %vm979_vm2, %v1158_v27 }
 0x4f9   : > { %4192 = vmatmul.mubr.msk.bf16.gmra.mrb[44].mxu0 %vm979_vm2, %v1159_v34  ;;  %v1412_v4 = vpop.permute.xlu0 %1411 }
 0x4fa   : > { %4214 = vmatpush3.bf16.xpose.msra.mxu0 %v1360_v50  ;;  %4215 = vmatprep.mubr.msk.bf16.mxu0 %vm788_vm1, %v1347_v54 }
 0x4fb   : > { %v4678_v51 = vpop.eup %4677 }
 0x4fc   : > { %v1123_v46 = vpop.xlane.xlu1 %1122  ;;  %v4680_v56 = vpop.eup %4679  ;;  %v1151_v44 = vmul.f32 %v4678_v51, %v5455_v7  ;;  %v1422_v7 = vsel %vm788_vm1, %v5269_v21, 0 }
 0x4fd   : > { %v4682_v24 = vpop.eup %4681  ;;  %4685 = vrcp.f32 %v1123_v46  ;;  %v1148_v14 = vmul.f32 %v4680_v56, %v5450_v61 }
 0x4fe   : > { %4687 = vrcp.f32 %v1114_v12  ;;  %v1150_v30 = vmul.f32 %v4682_v24, %v5443_v23 }
 0x4ff   : > { %v4684_v43 = vpop.eup %4683  ;;  %4689 = vrcp.f32 %v1120_v13 }
 0x500   : > { %v1117_v11 = vpop.xlane.xlu1 %1116  ;;  %v1149_v49 = vmul.f32 %v4684_v43, %v5463_v18  ;;  %v1161_v52 = vpack.c.bf16 %v1151_v44, %v1150_v30 }
 0x501   : > { %4691 = vrcp.f32 %v1117_v11 }
 0x502   : > { %v1160_v36 = vpack.c.bf16 %v1149_v49, %v1148_v14 }
 0x504   : > { %4203 = vmatprep.mubr.msk.bf16.mxu1 %vm979_vm2, %v1160_v36  ;;  %v1349_v28 = vpop.permute.xlu1 %1348 }
 0x505   : > { %4204 = vmatmul.mubr.msk.bf16.vlgmr.msra.gmra.mrb[8].mxu1 %vm979_vm2, %v1161_v52  ;;  %4216 = vmatmul.mubr.msk.bf16.vlgmr.msra.gmra.mrb[48].mxu0 %vm788_vm1, %v1349_v28 }
 0x506   : > { %4220 = vmatpush3.bf16.xpose.msra.mxu1 %v1422_v7 }
 0x507   : > { %4470 = vmatprep.subr.msk.bf16.mxu1 %vm788_vm1, %v5283_v9  ;;  %v4686_v61 = vpop.eup %4685 }
 0x508   : > { %v4688_v18 = vpop.eup %4687  ;;  %v1155_v53 = vmul.f32 %v4686_v61, %v5473_v20  ;;  %v1709_v20 = vsel %vm788_vm1, %v5253_v10, 0 }
 0x509   : > { %v4690_v23 = vpop.eup %4689  ;;  %v1152_v37 = vmul.f32 %v4688_v18, %v5467_v6  ;;  %v1414_v6 = vpop.permute.xlu1 %1413 }
 0x50a   : > { %v1154_v59 = vmul.f32 %v4690_v23, %v5457_v5  ;;  %v1712_v5 = vsel %vm788_vm1, %v5261_v57, 0 }
 0x50b   : > { %v4692_v29 = vpop.eup %4691 }
 0x50c   : > { %v1153_v31 = vmul.f32 %v4692_v29, %v5477_v42  ;;  %v1163_v35 = vpack.c.bf16 %v1155_v53, %v1154_v59 }
 0x50e   : > { %4222 = vmatpush3.bf16.xpose.msra.mxu1 %v1425_v45  ;;  %v1162_v62 = vpack.c.bf16 %v1153_v31, %v1152_v37 }
 0x50f   : > { %4471 = vmatprep.subr.msk.bf16.mxu1 %vm788_vm1, %v5253_v10 }
 0x510   : > { %4207 = vmatprep.mubr.msk.bf16.mxu1 %vm979_vm2, %v1162_v62 }
 0x511   : > { %4208 = vmatmul.mubr.msk.bf16.gmra.mrb[12].mxu1 %vm979_vm2, %v1163_v35 }
 0x512   : > { %4223 = vmatprep.mubr.msk.bf16.mxu1 %vm788_vm1, %v1412_v4 }
 0x519   : > { %4224 = vmatmul.mubr.msk.bf16.vlgmr.msra.gmra.mrb[16].mxu1 %vm788_vm1, %v1414_v6 }
 0x51a   : > { %4244 = vmatpush3.bf16.xpose.msra.mxu1 %v1709_v20 }
 0x51b   : > { %4472 = vmatprep.subr.msk.bf16.mxu1 %vm788_vm1, %v5261_v57 }
 0x522   : > { %4246 = vmatpush3.bf16.xpose.msra.mxu1 %v1712_v5 }
 0x5c4   : > { %v5537_v42 = vpop.f32.mrb[40].mxu0 }
 0x5c5   : > { %6424 = vst [vmem:[#allocation2_spill] sm:$0xff] %v5537_v42  ;;  %v5539_v1 = vpop.f32.mrb[41].mxu0 }
 0x5c6   : > { %v5541_v3 = vpop.f32.mrb[42].mxu0 }
 0x5c7   : > { %v5543_v63 = vpop.f32.mrb[43].mxu0 }
 0x5cc   : > { %v5545_v33 = vpop.f32.mrb[44].mxu0 }
 0x5cd   : > { %6425 = vst [vmem:[#allocation3_spill] sm:$0xff] %v5545_v33  ;;  %v5547_v32 = vpop.f32.mrb[45].mxu0 }
 0x5ce   : > { %v5549_v55 = vpop.f32.mrb[46].mxu0 }
 0x5cf   : > { %6426 = vst [vmem:[#allocation4_spill] sm:$0xff] %v5549_v55  ;;  %v5551_v47 = vpop.f32.mrb[47].mxu0 }
 0x5d8   : > { %v5553_v13 = vpop.f32.mrb[8].mxu1  ;;  %v4217_v60 = vpop.f32.mrb[48].mxu0 }
 0x5d9   : > { %6427 = vst [vmem:[#allocation5_spill] sm:$0xff] %v5553_v13  ;;  %v5555_v58 = vpop.f32.mrb[9].mxu1  ;;  %v1396_v0 = vpop.f32.mrb[49].mxu0  ;;  %v1482_v50 = vsel %vm333_vm0, %v4217_v60, -inf }
 0x5da   : > { %v5557_v15 = vpop.f32.mrb[10].mxu1  ;;  %v4218_v25 = vpop.f32.mrb[50].mxu0  ;;  %v1476_v27 = vsel %vm333_vm0, %v1396_v0, -inf }
 0x5db   : > { %6428 = vst [vmem:[#allocation6_spill] sm:$0xff] %v5557_v15  ;;  %v5560_v34 = vpop.f32.mrb[11].mxu1  ;;  %1477 = vmax.xlane.f32.xlu0 %v1476_v27  ;;  %v1399_v12 = vpop.f32.mrb[51].mxu0  ;;  %v1485_v51 = vsel %vm333_vm0, %v4218_v25, -inf }
 0x5dc   : > { %v1479_v54 = vsel %vm333_vm0, %v1399_v12, -inf }
 0x5dd   : > { %1480 = vmax.xlane.f32.xlu1 %v1479_v54 }
 0x5df   : > { %1483 = vmax.xlane.f32.xlu0 %v1482_v50 }
 0x5e3   : > { %1486 = vmax.xlane.f32.xlu0 %v1485_v51 }
 0x5e4   : > { %v5565_v46 = vpop.f32.mrb[12].mxu1 }
 0x5e5   : > { %6429 = vst [vmem:[#allocation7_spill] sm:$0xff] %v5565_v46  ;;  %v5567_v56 = vpop.f32.mrb[13].mxu1 }
 0x5e6   : > { %v5569_v24 = vpop.f32.mrb[14].mxu1 }
 0x5e7   : > { %6430 = vst [vmem:[#allocation8_spill] sm:$0xff] %v5569_v24  ;;  %v5571_v43 = vpop.f32.mrb[15].mxu1 }
 0x5ec   : > { %v4225_v44 = vpop.f32.mrb[16].mxu1 }
 0x5ed   : > { %v1461_v11 = vpop.f32.mrb[17].mxu1  ;;  %v1494_v52 = vsel %vm333_vm0, %v4225_v44, -inf }
 0x5ee   : > { %v4226_v14 = vpop.f32.mrb[18].mxu1  ;;  %v1488_v49 = vsel %vm333_vm0, %v1461_v11, -inf }
 0x5ef   : > { %1489 = vmax.xlane.f32.xlu0 %v1488_v49  ;;  %v1464_v30 = vpop.f32.mrb[19].mxu1  ;;  %v1497_v28 = vsel %vm333_vm0, %v4226_v14, -inf }
 0x5f0   : > { %v1491_v36 = vsel %vm333_vm0, %v1464_v30, -inf }
 0x5f1   : > { %1492 = vmax.xlane.f32.xlu1 %v1491_v36 }
 0x5f3   : > { %1495 = vmax.xlane.f32.xlu0 %v1494_v52 }
 0x5f5   : > { %1498 = vmax.xlane.f32.xlu1 %v1497_v28 }
 0x606   : > { %1572 = vrot.lane.b32.xlu1 %v5243_v39, %s4910_s26 }
 0x60a   : > { %1633 = vrot.lane.b32.xlu1 %v5269_v21, %s4910_s26 }
 0x60e   : > { %1635 = vrot.lane.b32.xlu1 %v5283_v9, %s4910_s26 }
 0x668   : > { %v1478_v7 = vpop.xlane.xlu0 %1477 }
 0x669   : > { %v1500_v61 = vsub.f32 %v1396_v0, %v1478_v7 }
 0x66a   : > { %v1481_v18 = vpop.xlane.xlu1 %1480 }
 0x66b   : > { %v1508_v53 = vmul.f32 1.442695, %v1500_v61  ;;  %v1501_v37 = vsub.f32 %v1399_v12, %v1481_v18 }
 0x66c   : > { %v1484_v23 = vpop.xlane.xlu0 %1483 }
 0x66d   : > { %v1502_v29 = vsub.f32 %v4217_v60, %v1484_v23  ;;  %v1510_v62 = vmul.f32 1.442695, %v1501_v37 }
 0x66f   : > { %v1512_v31 = vmul.f32 1.442695, %v1502_v29 }
 0x670   : > { %v1487_v45 = vpop.xlane.xlu0 %1486 }
 0x671   : > { %4693 = vpow2.f32 %v1512_v31  ;;  %v1503_v59 = vsub.f32 %v4218_v25, %v1487_v45 }
 0x672   : > { %4695 = vpow2.f32 %v1508_v53 }
 0x673   : > { %v1514_v35 = vmul.f32 1.442695, %v1503_v59 }
 0x675   : > { %4697 = vpow2.f32 %v1514_v35 }
 0x676   : > { %4699 = vpow2.f32 %v1510_v62 }
 0x67b   : > { %v5583_v4 = vpop.eup %4693 }
 0x67c   : > { %v1530_v6 = vsel %vm333_vm0, %v5583_v4, 0.0  ;;  %v5587_v20 = vpop.eup %4695  ;;  %v1490_v61 = vpop.xlane.xlu0 %1489 }
 0x67d   : > { %1531 = vadd.xlane.f32.xlu0 %v1530_v6  ;;  %v1524_v0 = vsel %vm333_vm0, %v5587_v20, 0.0  ;;  %v1504_v23 = vsub.f32 %v1461_v11, %v1490_v61 }
 0x67e   : > { %v1493_v5 = vpop.xlane.xlu1 %1492 }
 0x67f   : > { %v4698_v60 = vpop.eup %4697  ;;  %v1505_v12 = vsub.f32 %v1464_v30, %v1493_v5  ;;  %v1516_v53 = vmul.f32 1.442695, %v1504_v23 }
 0x680   : > { %v1533_v25 = vsel %vm333_vm0, %v4698_v60, 0.0  ;;  %v4700_v27 = vpop.eup %4699 }
 0x681   : > { %1525 = vadd.xlane.f32.xlu0 %v1524_v0  ;;  %1534 = vadd.xlane.f32.xlu1 %v1533_v25  ;;  %v1527_v51 = vsel %vm333_vm0, %v4700_v27, 0.0  ;;  %v1518_v49 = vmul.f32 1.442695, %v1505_v12 }
 0x682   : > { %v1499_v54 = vpop.xlane.xlu1 %1498 }
 0x683   : > { %v1507_v50 = vsub.f32 %v4226_v14, %v1499_v54  ;;  %v1496_v14 = vpop.xlane.xlu0 %1495 }
 0x684   : > { %v1506_v18 = vsub.f32 %v4225_v44, %v1496_v14 }
 0x685   : > { %v1522_v36 = vmul.f32 1.442695, %v1507_v50  ;;  %1528 = vadd.xlane.f32.xlu1 %v1527_v51 }
 0x686   : > { %v1520_v29 = vmul.f32 1.442695, %v1506_v18  ;;  %v1573_v44 = vpop.permute.xlu1 %1572 }
 0x687   : > { %4701 = vpow2.f32 %v1522_v36 }
 0x688   : > { %4703 = vpow2.f32 %v1518_v49 }
 0x689   : > { %4705 = vpow2.f32 %v1520_v29 }
 0x68a   : > { %4707 = vpow2.f32 %v1516_v53  ;;  %v1634_v11 = vpop.permute.xlu1 %1633 }
 0x68e   : > { %v1636_v62 = vpop.permute.xlu1 %1635 }
 0x691   : > { %v5593_v52 = vpop.eup %4701 }
 0x692   : > { %v1545_v28 = vsel %vm333_vm0, %v5593_v52, 0.0  ;;  %v5597_v7 = vpop.eup %4703 }
 0x693   : > { %1546 = vadd.xlane.f32.xlu1 %v1545_v28  ;;  %v1539_v30 = vsel %vm333_vm0, %v5597_v7, 0.0  ;;  %v4706_v37 = vpop.eup %4705 }
 0x694   : > { %v1542_v31 = vsel %vm333_vm0, %v4706_v37, 0.0  ;;  %v4708_v45 = vpop.eup %4707 }
 0x695   : > { %v1536_v59 = vsel %vm333_vm0, %v4708_v45, 0.0 }
 0x697   : > { %1570 = vrot.lane.b32.xlu0 %v5231_v26, %s4910_s26  ;;  %1540 = vadd.xlane.f32.xlu1 %v1539_v30 }
 0x6a8   : > { %1700 = vrot.lane.b32.xlu1 %v5241_v38, %s4912_s9 }
 0x6ac   : > { %1765 = vrot.lane.b32.xlu1 %v5281_v8, %s4912_s9 }
 0x6b6   : > { %1543 = vadd.xlane.f32.xlu0 %v1542_v31 }
 0x6ba   : > { %1537 = vadd.xlane.f32.xlu0 %v1536_v59 }
 0x6d0   : > { %1698 = vrot.lane.b32.xlu0 %v5229_v16, %s4912_s9 }
 0x6d4   : > { %1763 = vrot.lane.b32.xlu0 %v5267_v2, %s4912_s9 }
 0x70a   : > { %v1532_v35 = vpop.xlane.xlu0 %1531 }
 0x70e   : > { %v1535_v6 = vpop.xlane.xlu1 %1534  ;;  %v1526_v5 = vpop.xlane.xlu0 %1525 }
 0x70f   : > { %4709 = vrcp.f32 %v1535_v6 }
 0x710   : > { %4711 = vrcp.f32 %v1526_v5 }
 0x711   : > { %4713 = vrcp.f32 %v1532_v35 }
 0x712   : > { %v1529_v0 = vpop.xlane.xlu1 %1528  ;;  %v1571_v25 = vpop.permute.xlu0 %1570 }
 0x713   : > { %4715 = vrcp.f32 %v1529_v0  ;;  %4227 = vmatprep.subr.bf16.mxu0 %v1571_v25 }
 0x714   : > { %4228 = vmatpush3.bf16.msra.mxu0 %v1571_v25  ;;  %v1774_v25 = vsel %vm788_vm1, %v5295_v22, 0 }
 0x715   : > { %4229 = vmatprep.subr.bf16.mxu0 %v1573_v44 }
 0x718   : > { %4230 = vmatpush3.bf16.msra.mxu0 %v1573_v44 }
 0x719   : > { %4235 = vmatprep.subr.bf16.mxu0 %v1634_v11  ;;  %v4710_v12 = vpop.eup %4709 }
 0x71a   : > { %v4712_v54 = vpop.eup %4711  ;;  %v1559_v49 = vmul.f32 %v4710_v12, %v4698_v60 }
 0x71b   : > { %v4714_v50 = vpop.eup %4713  ;;  %v1556_v36 = vmul.f32 %v4712_v54, %v5587_v20 }
 0x71c   : > { %v1558_v30 = vmul.f32 %v4714_v50, %v5583_v4 }
 0x71d   : > { %v4716_v51 = vpop.eup %4715 }
 0x71e   : > { %v1557_v28 = vmul.f32 %v4716_v51, %v4700_v27  ;;  %v1565_v14 = vpack.c.bf16 %v1559_v49, %v1558_v30 }
 0x720   : > { %v1564_v61 = vpack.c.bf16 %v1557_v28, %v1556_v36  ;;  %v1547_v18 = vpop.xlane.xlu1 %1546 }
 0x722   : > { %4231 = vmatprep.mubr.msk.bf16.mxu0 %vm333_vm0, %v1564_v61 }
 0x723   : > { %4232 = vmatmul.mubr.msk.bf16.vlgmr.msra.gmra.mrb[52].mxu0 %vm333_vm0, %v1565_v14 }
 0x724   : > { %4236 = vmatpush3.bf16.msra.mxu0 %v1634_v11  ;;  %v1541_v23 = vpop.xlane.xlu1 %1540 }
 0x725   : > { %4237 = vmatprep.subr.bf16.mxu0 %v1636_v62 }
 0x728   : > { %4238 = vmatpush3.bf16.msra.mxu0 %v1636_v62  ;;  %v1701_v27 = vpop.permute.xlu1 %1700 }
 0x729   : > { %4473 = vmatprep.subr.msk.bf16.mxu0 %vm788_vm1, %v5295_v22 }
 0x743   : > { %v1544_v60 = vpop.xlane.xlu0 %1543 }
 0x744   : > { %4717 = vrcp.f32 %v1544_v60 }
 0x745   : > { %4719 = vrcp.f32 %v1541_v23 }
 0x746   : > { %4721 = vrcp.f32 %v1547_v18 }
 0x747   : > { %v1538_v20 = vpop.xlane.xlu0 %1537 }
 0x748   : > { %4723 = vrcp.f32 %v1538_v20 }
 0x74b   : > { %v1699_v4 = vpop.permute.xlu0 %1698 }
 0x74c   : > { %4247 = vmatprep.mubr.msk.bf16.mxu1 %vm788_vm1, %v1699_v4 }
 0x74d   : > { %4248 = vmatmul.mubr.msk.bf16.vlgmr.msra.gmra.mrb[20].mxu1 %vm788_vm1, %v1701_v27 }
 0x74e   : > { %v4718_v29 = vpop.eup %4717 }
 0x74f   : > { %v4720_v53 = vpop.eup %4719  ;;  %v1562_v44 = vmul.f32 %v4718_v29, %v4706_v37  ;;  %v1764_v0 = vpop.permute.xlu0 %1763 }
 0x750   : > { %v4722_v31 = vpop.eup %4721  ;;  %v1561_v62 = vmul.f32 %v4720_v53, %v5597_v7  ;;  %v1777_v7 = vsel %vm788_vm1, %v5307_v41, 0 }
 0x751   : > { %v1563_v35 = vmul.f32 %v4722_v31, %v5593_v52  ;;  %v1766_v52 = vpop.permute.xlu1 %1765 }
 0x752   : > { %v4724_v59 = vpop.eup %4723 }
 0x753   : > { %v1560_v11 = vmul.f32 %v4724_v59, %v4708_v45  ;;  %v1567_v5 = vpack.c.bf16 %v1563_v35, %v1562_v44 }
 0x755   : > { %v1566_v6 = vpack.c.bf16 %v1561_v62, %v1560_v11 }
 0x757   : > { %4239 = vmatprep.mubr.msk.bf16.mxu0 %vm333_vm0, %v1566_v6 }
 0x758   : > { %4240 = vmatmul.mubr.msk.bf16.vlgmr.msra.gmra.mrb[56].mxu0 %vm333_vm0, %v1567_v5 }
 0x759   : > { %4252 = vmatpush3.bf16.xpose.msra.mxu0 %v1774_v25  ;;  %4255 = vmatprep.mubr.msk.bf16.mxu0 %vm788_vm1, %v1764_v0 }
 0x75a   : > { %4474 = vmatprep.subr.msk.bf16.mxu0 %vm788_vm1, %v5307_v41 }
 0x761   : > { %4254 = vmatpush3.bf16.xpose.msra.mxu0 %v1777_v7 }
 0x768   : > { %4256 = vmatmul.mubr.msk.bf16.vlgmr.msra.gmra.mrb[60].mxu0 %vm788_vm1, %v1766_v52 }
 0x7f6   : > { %v5633_v37 = vpop.f32.mrb[52].mxu0 }
 0x7f7   : > { %6431 = vst [vmem:[#allocation9_spill] sm:$0xff] %v5633_v37  ;;  %v5635_v45 = vpop.f32.mrb[53].mxu0 }
 0x7f8   : > { %v5637_v12 = vpop.f32.mrb[54].mxu0 }
 0x7f9   : > { %6432 = vst [vmem:[#allocation10_spill] sm:$0xff] %v5637_v12  ;;  %v5639_v54 = vpop.f32.mrb[55].mxu0 }
 0x820   : > { %v4249_v50 = vpop.f32.mrb[20].mxu1 }
 0x821   : > { %v1748_v51 = vpop.f32.mrb[21].mxu1  ;;  %v1834_v61 = vsel %vm333_vm0, %v4249_v50, -inf }
 0x822   : > { %v4250_v49 = vpop.f32.mrb[22].mxu1  ;;  %v1828_v36 = vsel %vm333_vm0, %v1748_v51, -inf }
 0x823   : > { %1829 = vmax.xlane.f32.xlu0 %v1828_v36  ;;  %v1751_v28 = vpop.f32.mrb[23].mxu1  ;;  %v1837_v14 = vsel %vm333_vm0, %v4250_v49, -inf }
 0x824   : > { %v1831_v30 = vsel %vm333_vm0, %v1751_v28, -inf }
 0x825   : > { %1832 = vmax.xlane.f32.xlu1 %v1831_v30 }
 0x827   : > { %1835 = vmax.xlane.f32.xlu0 %v1834_v61 }
 0x82b   : > { %v5645_v18 = vpop.f32.mrb[56].mxu0  ;;  %1838 = vmax.xlane.f32.xlu0 %v1837_v14 }
 0x82c   : > { %6433 = vst [vmem:[#allocation11_spill] sm:$0xff] %v5645_v18  ;;  %v5647_v23 = vpop.f32.mrb[57].mxu0 }
 0x82d   : > { %6434 = vst [vmem:[#allocation12_spill] sm:$0xff] %v5647_v23  ;;  %v5649_v60 = vpop.f32.mrb[58].mxu0 }
 0x82e   : > { %6435 = vst [vmem:[#allocation13_spill] sm:$0xff] %v5649_v60  ;;  %v5651_v20 = vpop.f32.mrb[59].mxu0 }
 0x82f   : > { %6436 = vst [vmem:[#allocation14_spill] sm:$0xff] %v5651_v20 }
 0x83b   : > { %v4257_v4 = vpop.f32.mrb[60].mxu0 }
 0x83c   : > { %v1813_v27 = vpop.f32.mrb[61].mxu0  ;;  %v1846_v44 = vsel %vm333_vm0, %v4257_v4, -inf }
 0x83d   : > { %v4258_v29 = vpop.f32.mrb[62].mxu0  ;;  %v1840_v53 = vsel %vm333_vm0, %v1813_v27, -inf }
 0x83e   : > { %1841 = vmax.xlane.f32.xlu0 %v1840_v53  ;;  %v1816_v31 = vpop.f32.mrb[63].mxu0  ;;  %v1849_v11 = vsel %vm333_vm0, %v4258_v29, -inf }
 0x83f   : > { %v1843_v59 = vsel %vm333_vm0, %v1816_v31, -inf }
 0x840   : > { %1844 = vmax.xlane.f32.xlu1 %v1843_v59 }
 0x842   : > { %1847 = vmax.xlane.f32.xlu0 %v1846_v44 }
 0x844   : > { %1850 = vmax.xlane.f32.xlu1 %v1849_v11 }
 0x8b0   : > { %v1830_v62 = vpop.xlane.xlu0 %1829 }
 0x8b1   : > { %v1852_v35 = vsub.f32 %v1748_v51, %v1830_v62 }
 0x8b2   : > { %v1833_v6 = vpop.xlane.xlu1 %1832 }
 0x8b3   : > { %v1860_v5 = vmul.f32 1.442695, %v1852_v35  ;;  %v1853_v0 = vsub.f32 %v1751_v28, %v1833_v6 }
 0x8b4   : > { %v1836_v25 = vpop.xlane.xlu0 %1835 }
 0x8b5   : > { %4725 = vpow2.f32 %v1860_v5  ;;  %v1862_v7 = vmul.f32 1.442695, %v1853_v0  ;;  %v1854_v52 = vsub.f32 %v4249_v50, %v1836_v25 }
 0x8b7   : > { %4727 = vpow2.f32 %v1862_v7  ;;  %v1864_v36 = vmul.f32 1.442695, %v1854_v52 }
 0x8b8   : > { %v1839_v30 = vpop.xlane.xlu0 %1838 }
 0x8b9   : > { %4729 = vpow2.f32 %v1864_v36  ;;  %v1855_v61 = vsub.f32 %v4250_v49, %v1839_v30 }
 0x8bb   : > { %v1866_v14 = vmul.f32 1.442695, %v1855_v61 }
 0x8bd   : > { %4731 = vpow2.f32 %v1866_v14 }
 0x8bf   : > { %v5657_v53 = vpop.eup %4725 }
 0x8c0   : > { %v1876_v59 = vsel %vm333_vm0, %v5657_v53, 0.0 }
 0x8c1   : > { %v5661_v51 = vpop.eup %4727  ;;  %1877 = vadd.xlane.f32.xlu0 %v1876_v59 }
 0x8c2   : > { %v1879_v28 = vsel %vm333_vm0, %v5661_v51, 0.0 }
 0x8c3   : > { %v5665_v44 = vpop.eup %4729  ;;  %1880 = vadd.xlane.f32.xlu1 %v1879_v28 }
 0x8c4   : > { %v1882_v50 = vsel %vm333_vm0, %v5665_v44, 0.0 }
 0x8c5   : > { %1883 = vadd.xlane.f32.xlu0 %v1882_v50 }
 0x8c7   : > { %v5669_v49 = vpop.eup %4731 }
 0x8c8   : > { %v1885_v11 = vsel %vm333_vm0, %v5669_v49, 0.0 }
 0x8c9   : > { %1886 = vadd.xlane.f32.xlu1 %v1885_v11 }
 0x8cb   : > { %v1842_v62 = vpop.xlane.xlu0 %1841 }
 0x8cc   : > { %v1856_v6 = vsub.f32 %v1813_v27, %v1842_v62 }
 0x8cd   : > { %v1845_v35 = vpop.xlane.xlu1 %1844 }
 0x8ce   : > { %v1868_v0 = vmul.f32 1.442695, %v1856_v6  ;;  %v1857_v30 = vsub.f32 %v1816_v31, %v1845_v35 }
 0x8cf   : > { %v1848_v5 = vpop.xlane.xlu0 %1847 }
 0x8d0   : > { %v1858_v25 = vsub.f32 %v4257_v4, %v1848_v5  ;;  %4733 = vpow2.f32 %v1868_v0  ;;  %v1870_v14 = vmul.f32 1.442695, %v1857_v30 }
 0x8d1   : > { %v1851_v7 = vpop.xlane.xlu1 %1850 }
 0x8d2   : > { %v1872_v52 = vmul.f32 1.442695, %v1858_v25  ;;  %v1859_v36 = vsub.f32 %v4258_v29, %v1851_v7 }
 0x8d4   : > { %4735 = vpow2.f32 %v1872_v52  ;;  %v1874_v61 = vmul.f32 1.442695, %v1859_v36 }
 0x8d6   : > { %4737 = vpow2.f32 %v1874_v61 }
 0x8d7   : > { %4739 = vpow2.f32 %v1870_v14 }
 0x8da   : > { %1924 = vrot.lane.b32.xlu1 %v5261_v57, %s4910_s26  ;;  %v5685_v59 = vpop.eup %4733 }
 0x8db   : > { %1922 = vrot.lane.b32.xlu0 %v5253_v10, %s4910_s26  ;;  %v1888_v28 = vsel %vm333_vm0, %v5685_v59, 0.0 }
 0x8de   : > { %1985 = vrot.lane.b32.xlu1 %v5295_v22, %s4910_s26  ;;  %v5689_v50 = vpop.eup %4735 }
 0x8df   : > { %2054 = vrot.lane.b32.xlu0 %v5229_v16, %s4913_s10  ;;  %v1894_v4 = vsel %vm333_vm0, %v5689_v50, 0.0 }
 0x8e0   : > { %v5693_v27 = vpop.eup %4737 }
 0x8e1   : > { %v1897_v29 = vsel %vm333_vm0, %v5693_v27, 0.0  ;;  %v5697_v31 = vpop.eup %4739 }
 0x8e2   : > { %2056 = vrot.lane.b32.xlu1 %v5241_v38, %s4913_s10  ;;  %v1891_v11 = vsel %vm333_vm0, %v5697_v31, 0.0 }
 0x8e3   : > { %1987 = vrot.lane.b32.xlu0 %v5307_v41, %s4910_s26 }
 0x902   : > { %1889 = vadd.xlane.f32.xlu0 %v1888_v28 }
 0x906   : > { %1895 = vadd.xlane.f32.xlu1 %v1894_v4 }
 0x90a   : > { %1898 = vadd.xlane.f32.xlu1 %v1897_v29 }
 0x90e   : > { %1892 = vadd.xlane.f32.xlu1 %v1891_v11 }
 0x918   : > { %2058 = vrot.lane.b32.xlu0 %v5251_v48, %s4913_s10 }
 0x91c   : > { %2060 = vrot.lane.b32.xlu0 %v5259_v17, %s4913_s10 }
 0x91f   : > { %2159 = vrot.lane.b32.xlu1 %v5267_v2, %s4913_s10 }
 0x920   : > { %2046 = vrot.lane.b32.xlu0 %v5229_v16, %s4914_s12 }
 0x923   : > { %2161 = vrot.lane.b32.xlu1 %v5281_v8, %s4913_s10 }
 0x924   : > { %2163 = vrot.lane.b32.xlu0 %v5293_v19, %s4913_s10 }
 0x927   : > { %2048 = vrot.lane.b32.xlu1 %v5241_v38, %s4914_s12 }
 0x928   : > { %2052 = vrot.lane.b32.xlu0 %v5259_v17, %s4914_s12 }
 0x92b   : > { %2050 = vrot.lane.b32.xlu1 %v5251_v48, %s4914_s12 }
 0x92c   : > { %2151 = vrot.lane.b32.xlu0 %v5267_v2, %s4914_s12 }
 0x92f   : > { %2165 = vrot.lane.b32.xlu1 %v5305_v40, %s4913_s10 }
 0x930   : > { %2155 = vrot.lane.b32.xlu0 %v5293_v19, %s4914_s12 }
 0x933   : > { %2153 = vrot.lane.b32.xlu1 %v5281_v8, %s4914_s12 }
 0x937   : > { %2157 = vrot.lane.b32.xlu1 %v5305_v40, %s4914_s12 }
 0x94e   : > { %v1878_v62 = vpop.xlane.xlu0 %1877 }
 0x94f   : > { %4741 = vrcp.f32 %v1878_v62 }
 0x950   : > { %v1881_v35 = vpop.xlane.xlu1 %1880 }
 0x951   : > { %4743 = vrcp.f32 %v1881_v35 }
 0x952   : > { %v1884_v6 = vpop.xlane.xlu0 %1883 }
 0x953   : > { %4745 = vrcp.f32 %v1884_v6 }
 0x956   : > { %v1887_v5 = vpop.xlane.xlu1 %1886  ;;  %v1923_v0 = vpop.permute.xlu0 %1922 }
 0x957   : > { %4747 = vrcp.f32 %v1887_v5  ;;  %4259 = vmatprep.subr.bf16.mxu1 %v1923_v0 }
 0x958   : > { %4260 = vmatpush3.bf16.msra.mxu1 %v1923_v0 }
 0x959   : > { %v4742_v25 = vpop.eup %4741 }
 0x95a   : > { %v1925_v7 = vpop.permute.xlu1 %1924  ;;  %v2055_v52 = vpop.permute.xlu0 %2054  ;;  %v1908_v30 = vmul.f32 %v4742_v25, %v5657_v53 }
 0x95b   : > { %v4744_v36 = vpop.eup %4743  ;;  %4261 = vmatprep.subr.bf16.mxu1 %v1925_v7 }
 0x95c   : > { %4262 = vmatpush3.bf16.msra.mxu1 %v1925_v7  ;;  %v1909_v61 = vmul.f32 %v4744_v36, %v5661_v51  ;;  %v2075_v51 = vsel %vm788_vm1, %v2055_v52, 0 }
 0x95d   : > { %4475 = vmatprep.subr.msk.bf16.mxu1 %vm788_vm1, %v2055_v52  ;;  %v4746_v4 = vpop.eup %4745 }
 0x95e   : > { %v1986_v14 = vpop.permute.xlu1 %1985  ;;  %v1916_v28 = vpack.c.bf16 %v1909_v61, %v1908_v30  ;;  %v1988_v29 = vpop.permute.xlu0 %1987  ;;  %v1910_v62 = vmul.f32 %v4746_v4, %v5665_v44 }
 0x95f   : > { %4267 = vmatprep.subr.bf16.mxu0 %v1986_v14 }
 0x960   : > { %4263 = vmatprep.mubr.msk.bf16.mxu1 %vm333_vm0, %v1916_v28  ;;  %4268 = vmatpush3.bf16.msra.mxu0 %v1986_v14 }
 0x961   : > { %v4748_v11 = vpop.eup %4747  ;;  %4269 = vmatprep.subr.bf16.mxu0 %v1988_v29 }
 0x962   : > { %v1911_v35 = vmul.f32 %v4748_v11, %v5669_v49  ;;  %v2057_v6 = vpop.permute.xlu1 %2056 }
 0x963   : > { %v2078_v5 = vsel %vm788_vm1, %v2057_v6, 0 }
 0x964   : > { %4270 = vmatpush3.bf16.msra.mxu0 %v1988_v29  ;;  %v1917_v53 = vpack.c.bf16 %v1911_v35, %v1910_v62 }
 0x966   : > { %4264 = vmatmul.mubr.msk.bf16.vlgmr.msra.gmra.mrb[24].mxu1 %vm333_vm0, %v1917_v53 }
 0x967   : > { %4276 = vmatpush3.bf16.xpose.msra.mxu1 %v2075_v51 }
 0x968   : > { %4476 = vmatprep.subr.msk.bf16.mxu1 %vm788_vm1, %v2057_v6 }
 0x96f   : > { %4278 = vmatpush3.bf16.xpose.msra.mxu1 %v2078_v5 }
 0x98f   : > { %v1890_v0 = vpop.xlane.xlu0 %1889 }
 0x993   : > { %v1896_v25 = vpop.xlane.xlu1 %1895  ;;  %v2059_v7 = vpop.permute.xlu0 %2058 }
 0x994   : > { %4477 = vmatprep.subr.msk.bf16.mxu1 %vm788_vm1, %v2059_v7  ;;  %v2081_v44 = vsel %vm788_vm1, %v2059_v7, 0 }
 0x995   : > { %4280 = vmatpush3.bf16.xpose.msra.mxu1 %v2081_v44 }
 0x997   : > { %v1899_v49 = vpop.xlane.xlu1 %1898  ;;  %v2061_v36 = vpop.permute.xlu0 %2060 }
 0x998   : > { %4478 = vmatprep.subr.msk.bf16.mxu1 %vm788_vm1, %v2061_v36  ;;  %4749 = vrcp.f32 %v1899_v49  ;;  %v2084_v61 = vsel %vm788_vm1, %v2061_v36, 0 }
 0x999   : > { %4751 = vrcp.f32 %v1890_v0 }
 0x99a   : > { %4753 = vrcp.f32 %v1896_v25 }
 0x99b   : > { %v1893_v52 = vpop.xlane.xlu1 %1892  ;;  %v2047_v30 = vpop.permute.xlu0 %2046 }
 0x99c   : > { %4755 = vrcp.f32 %v1893_v52  ;;  %4283 = vmatprep.mubr.msk.bf16.mxu1 %vm788_vm1, %v2047_v30 }
 0x99d   : > { %4282 = vmatpush3.bf16.xpose.msra.mxu1 %v2084_v61 }
 0x99f   : > { %v2160_v14 = vpop.permute.xlu1 %2159  ;;  %v2164_v28 = vpop.permute.xlu0 %2163 }
 0x9a0   : > { %4479 = vmatprep.subr.msk.bf16.mxu0 %vm788_vm1, %v2160_v14 }
 0x9a2   : > { %v4750_v4 = vpop.eup %4749 }
 0x9a3   : > { %v2162_v29 = vpop.permute.xlu1 %2161  ;;  %v4752_v11 = vpop.eup %4751  ;;  %v1915_v53 = vmul.f32 %v4750_v4, %v5693_v27  ;;  %v2180_v27 = vsel %vm788_vm1, %v2160_v14, 0 }
 0x9a4   : > { %v4754_v62 = vpop.eup %4753  ;;  %v2053_v51 = vpop.permute.xlu0 %2052  ;;  %v1912_v5 = vmul.f32 %v4752_v11, %v5685_v59  ;;  %v2183_v59 = vsel %vm788_vm1, %v2162_v29, 0 }
 0x9a5   : > { %v1914_v25 = vmul.f32 %v4754_v62, %v5689_v50  ;;  %v2186_v50 = vsel %vm788_vm1, %v2164_v28, 0 }
 0x9a6   : > { %v4756_v35 = vpop.eup %4755 }
 0x9a7   : > { %v2049_v6 = vpop.permute.xlu1 %2048  ;;  %v1913_v0 = vmul.f32 %v4756_v35, %v5697_v31  ;;  %v1919_v44 = vpack.c.bf16 %v1915_v53, %v1914_v25 }
 0x9a8   : > { %4284 = vmatmul.mubr.msk.bf16.vlgmr.msra.gmra.mrb[28].mxu1 %vm788_vm1, %v2049_v6  ;;  %v2152_v36 = vpop.permute.xlu0 %2151 }
 0x9a9   : > { %v1918_v7 = vpack.c.bf16 %v1913_v0, %v1912_v5 }
 0x9ab   : > { %v2051_v49 = vpop.permute.xlu1 %2050  ;;  %4271 = vmatprep.mubr.msk.bf16.mxu0 %vm333_vm0, %v1918_v7 }
 0x9ac   : > { %4272 = vmatmul.mubr.msk.bf16.vlgmr.msra.gmra.mrb[64].mxu0 %vm333_vm0, %v1919_v44  ;;  %4287 = vmatprep.mubr.msk.bf16.mxu1 %vm788_vm1, %v2051_v49  ;;  %v2156_v61 = vpop.permute.xlu0 %2155 }
 0x9ad   : > { %4292 = vmatpush3.bf16.xpose.msra.mxu0 %v2180_v27  ;;  %4299 = vmatprep.mubr.msk.bf16.mxu0 %vm788_vm1, %v2152_v36 }
 0x9ae   : > { %4480 = vmatprep.subr.msk.bf16.mxu0 %vm788_vm1, %v2162_v29 }
 0x9af   : > { %v2166_v31 = vpop.permute.xlu1 %2165 }
 0x9b0   : > { %4288 = vmatmul.mubr.msk.bf16.gmra.mrb[32].mxu1 %vm788_vm1, %v2053_v51  ;;  %v2189_v52 = vsel %vm788_vm1, %v2166_v31, 0 }
 0x9b3   : > { %v2154_v30 = vpop.permute.xlu1 %2153 }
 0x9b5   : > { %4294 = vmatpush3.bf16.xpose.msra.mxu0 %v2183_v59 }
 0x9b6   : > { %4481 = vmatprep.subr.msk.bf16.mxu0 %vm788_vm1, %v2164_v28 }
 0x9b7   : > { %v2158_v14 = vpop.permute.xlu1 %2157 }
 0x9bd   : > { %4296 = vmatpush3.bf16.xpose.msra.mxu0 %v2186_v50 }
 0x9be   : > { %4482 = vmatprep.subr.msk.bf16.mxu0 %vm788_vm1, %v2166_v31 }
 0x9c5   : > { %4298 = vmatpush3.bf16.xpose.msra.mxu0 %v2189_v52 }
 0x9cc   : > { %4300 = vmatmul.mubr.msk.bf16.vlgmr.msra.gmra.mrb[68].mxu0 %vm788_vm1, %v2154_v30 }
 0x9cd   : > { %4303 = vmatprep.mubr.msk.bf16.mxu0 %vm788_vm1, %v2156_v61 }
 0x9d4   : > { %4304 = vmatmul.mubr.msk.bf16.gmra.mrb[72].mxu0 %vm788_vm1, %v2158_v14 }
 0xa39   : > { %v5765_v4 = vpop.f32.mrb[24].mxu1 }
 0xa3a   : > { %6437 = vst [vmem:[#allocation15_spill] sm:$0xff] %v5765_v4  ;;  %v5767_v29 = vpop.f32.mrb[25].mxu1 }
 0xa3b   : > { %6438 = vst [vmem:[#allocation16_spill] sm:$0xff] %v5767_v29  ;;  %v5769_v28 = vpop.f32.mrb[26].mxu1 }
 0xa3c   : > { %6439 = vst [vmem:[#allocation17_spill] sm:$0xff] %v5769_v28  ;;  %v5771_v11 = vpop.f32.mrb[27].mxu1 }
 0xa3d   : > { %6440 = vst [vmem:[#allocation18_spill] sm:$0xff] %v5771_v11 }
 0xa7b   : > { %v4285_v62 = vpop.f32.mrb[28].mxu1 }
 0xa7c   : > { %v2120_v35 = vpop.f32.mrb[29].mxu1  ;;  %v2262_v44 = vsel %vm979_vm2, %v4285_v62, -inf }
 0xa7d   : > { %v4286_v53 = vpop.f32.mrb[30].mxu1  ;;  %v2256_v51 = vsel %vm979_vm2, %v2120_v35, -inf }
 0xa7e   : > { %2257 = vmax.xlane.f32.xlu0 %v2256_v51  ;;  %v2123_v6 = vpop.f32.mrb[31].mxu1  ;;  %v2265_v50 = vsel %vm979_vm2, %v4286_v53, -inf }
 0xa7f   : > { %v5774_v5 = vpop.f32.mrb[64].mxu0  ;;  %v2259_v0 = vsel %vm979_vm2, %v2123_v6, -inf }
 0xa80   : > { %6441 = vst [vmem:[#allocation19_spill] sm:$0xff] %v5774_v5  ;;  %v5777_v25 = vpop.f32.mrb[65].mxu0  ;;  %2260 = vmax.xlane.f32.xlu1 %v2259_v0 }
 0xa81   : > { %6442 = vst [vmem:[#allocation20_spill] sm:$0xff] %v5777_v25  ;;  %v5779_v7 = vpop.f32.mrb[66].mxu0 }
 0xa82   : > { %6443 = vst [vmem:[#allocation21_spill] sm:$0xff] %v5779_v7  ;;  %v5782_v49 = vpop.f32.mrb[67].mxu0  ;;  %2263 = vmax.xlane.f32.xlu0 %v2262_v44 }
 0xa83   : > { %6444 = vst [vmem:[#allocation22_spill] sm:$0xff] %v5782_v49  ;;  %v4289_v36 = vpop.f32.mrb[32].mxu1 }
 0xa84   : > { %v2136_v27 = vpop.f32.mrb[33].mxu1  ;;  %v2274_v14 = vsel %vm979_vm2, %v4289_v36, -inf }
 0xa85   : > { %v4290_v59 = vpop.f32.mrb[34].mxu1  ;;  %v2268_v30 = vsel %vm979_vm2, %v2136_v27, -inf }
 0xa86   : > { %2266 = vmax.xlane.f32.xlu0 %v2265_v50  ;;  %v2139_v31 = vpop.f32.mrb[35].mxu1  ;;  %v2277_v61 = vsel %vm979_vm2, %v4290_v59, -inf }
 0xa87   : > { %v2271_v52 = vsel %vm979_vm2, %v2139_v31, -inf }
 0xa88   : > { %2272 = vmax.xlane.f32.xlu1 %v2271_v52 }
 0xa8a   : > { %2269 = vmax.xlane.f32.xlu0 %v2268_v30 }
 0xa8c   : > { %2278 = vmax.xlane.f32.xlu1 %v2277_v61 }
 0xa8e   : > { %2275 = vmax.xlane.f32.xlu0 %v2274_v14 }
 0xa9f   : > { %v5789_v51 = vpop.f32.mrb[68].mxu0 }
 0xaa0   : > { %v5791_v0 = vpop.f32.mrb[69].mxu0 }
 0xaa1   : > { %v5793_v44 = vpop.f32.mrb[70].mxu0 }
 0xaa2   : > { %v5795_v50 = vpop.f32.mrb[71].mxu0 }
 0xaa7   : > { %v5797_v25 = vpop.f32.mrb[72].mxu0 }
 0xaa8   : > { %v5799_v52 = vpop.f32.mrb[73].mxu0 }
 0xaa9   : > { %v5801_v49 = vpop.f32.mrb[74].mxu0 }
 0xaaa   : > { %v5803_v30 = vpop.f32.mrb[75].mxu0 }
 0xb0b   : > { %v2258_v61 = vpop.xlane.xlu0 %2257 }
 0xb0c   : > { %v2304_v5 = vsub.f32 %v2120_v35, %v2258_v61 }
 0xb0d   : > { %v2261_v7 = vpop.xlane.xlu1 %2260 }
 0xb0e   : > { %v2320_v20 = vmul.f32 1.442695, %v2304_v5  ;;  %v2305_v18 = vsub.f32 %v2123_v6, %v2261_v7 }
 0xb0f   : > { %v2264_v14 = vpop.xlane.xlu0 %2263 }
 0xb10   : > { %v2306_v23 = vsub.f32 %v4285_v62, %v2264_v14  ;;  %v2322_v28 = vmul.f32 1.442695, %v2305_v18  ;;  %v2280_v14 = vsel %vm979_vm2, %v5791_v0, -inf }
 0xb12   : > { %v2324_v60 = vmul.f32 1.442695, %v2306_v23 }
 0xb13   : > { %v2267_v29 = vpop.xlane.xlu0 %2266 }
 0xb14   : > { %4757 = vpow2.f32 %v2324_v60  ;;  %v2307_v11 = vsub.f32 %v4286_v53, %v2267_v29 }
 0xb15   : > { %v2273_v4 = vpop.xlane.xlu1 %2272  ;;  %4759 = vpow2.f32 %v2320_v20 }
 0xb16   : > { %v2326_v37 = vmul.f32 1.442695, %v2307_v11  ;;  %v2309_v46 = vsub.f32 %v2139_v31, %v2273_v4  ;;  %v2283_v31 = vsel %vm979_vm2, %v5795_v50, -inf }
 0xb17   : > { %v2270_v12 = vpop.xlane.xlu0 %2269 }
 0xb18   : > { %4761 = vpow2.f32 %v2326_v37  ;;  %v2308_v13 = vsub.f32 %v2136_v27, %v2270_v12  ;;  %v2330_v5 = vmul.f32 1.442695, %v2309_v46  ;;  %v2289_v27 = vsel %vm979_vm2, %v5793_v44, -inf }
 0xb19   : > { %v2279_v24 = vpop.xlane.xlu1 %2278  ;;  %4763 = vpow2.f32 %v2322_v28 }
 0xb1a   : > { %v2311_v35 = vsub.f32 %v4290_v59, %v2279_v24  ;;  %v2328_v23 = vmul.f32 1.442695, %v2308_v13  ;;  %v2286_v59 = vsel %vm979_vm2, %v5789_v51, -inf }
 0xb1b   : > { %v2276_v61 = vpop.xlane.xlu0 %2275 }
 0xb1c   : > { %v2334_v15 = vmul.f32 1.442695, %v2311_v35  ;;  %v2310_v62 = vsub.f32 %v4289_v36, %v2276_v61  ;;  %v2298_v35 = vsel %vm979_vm2, %v5797_v25, -inf  ;;  %v2292_v61 = vsel %vm979_vm2, %v5799_v52, -inf }
 0xb1e   : > { %v5805_v6 = vpop.eup %4757  ;;  %4765 = vpow2.f32 %v2334_v15  ;;  %v2332_v60 = vmul.f32 1.442695, %v2310_v62  ;;  %v2301_v62 = vsel %vm979_vm2, %v5801_v49, -inf }
 0xb1f   : > { %v2358_v18 = vsel %vm979_vm2, %v5805_v6, 0.0  ;;  %v5809_v20 = vpop.eup %4759 }
 0xb20   : > { %4767 = vpow2.f32 %v2332_v60  ;;  %2359 = vadd.xlane.f32.xlu0 %v2358_v18  ;;  %v2352_v24 = vsel %vm979_vm2, %v5809_v20, 0.0 }
 0xb21   : > { %4769 = vpow2.f32 %v2330_v5  ;;  %v2295_v5 = vsel %vm979_vm2, %v5803_v30, -inf }
 0xb22   : > { %v5811_v37 = vpop.eup %4761  ;;  %4771 = vpow2.f32 %v2328_v23 }
 0xb23   : > { %v2361_v46 = vsel %vm979_vm2, %v5811_v37, 0.0  ;;  %v4764_v13 = vpop.eup %4763 }
 0xb24   : > { %2353 = vadd.xlane.f32.xlu0 %v2352_v24  ;;  %2362 = vadd.xlane.f32.xlu1 %v2361_v46  ;;  %v2355_v15 = vsel %vm979_vm2, %v4764_v13, 0.0 }
 0xb28   : > { %v5818_v12 = vpop.eup %4765  ;;  %2356 = vadd.xlane.f32.xlu1 %v2355_v15 }
 0xb29   : > { %v2373_v28 = vsel %vm979_vm2, %v5818_v12, 0.0 }
 0xb2a   : > { %v5820_v4 = vpop.eup %4767 }
 0xb2b   : > { %v5822_v29 = vpop.eup %4769  ;;  %v2370_v11 = vsel %vm979_vm2, %v5820_v4, 0.0 }
 0xb2c   : > { %v5828_v53 = vpop.eup %4771  ;;  %2374 = vadd.xlane.f32.xlu1 %v2373_v28  ;;  %2371 = vadd.xlane.f32.xlu0 %v2370_v11  ;;  %v2367_v7 = vsel %vm979_vm2, %v5822_v29, 0.0 }
 0xb2d   : > { %v2364_v36 = vsel %vm979_vm2, %v5828_v53, 0.0 }
 0xb30   : > { %2368 = vadd.xlane.f32.xlu1 %v2367_v7  ;;  %2365 = vadd.xlane.f32.xlu0 %v2364_v36 }
 0xb34   : > { %2290 = vmax.xlane.f32.xlu1 %v2289_v27  ;;  %2287 = vmax.xlane.f32.xlu0 %v2286_v59 }
 0xb38   : > { %2284 = vmax.xlane.f32.xlu1 %v2283_v31  ;;  %2281 = vmax.xlane.f32.xlu0 %v2280_v14 }
 0xb3c   : > { %2299 = vmax.xlane.f32.xlu0 %v2298_v35 }
 0xb40   : > { %2293 = vmax.xlane.f32.xlu0 %v2292_v61 }
 0xb49   : > { %2442 = vrot.lane.b32.xlu1 %v5241_v38, %s4915_s13 }
 0xb56   : > { %2440 = vrot.lane.b32.xlu0 %v5229_v16, %s4915_s13 }
 0xb5a   : > { %2444 = vrot.lane.b32.xlu0 %v5251_v48, %s4915_s13 }
 0xb5e   : > { %2529 = vrot.lane.b32.xlu0 %v5267_v2, %s4915_s13 }
 0xb62   : > { %2535 = vrot.lane.b32.xlu0 %v5305_v40, %s4915_s13 }
 0xb66   : > { %2618 = vrot.lane.b32.xlu0 %v5251_v48, %s4916_s14 }
 0xb6d   : > { %2302 = vmax.xlane.f32.xlu1 %v2301_v62 }
 0xb71   : > { %2296 = vmax.xlane.f32.xlu1 %v2295_v5 }
 0xb82   : > { %2446 = vrot.lane.b32.xlu1 %v5259_v17, %s4915_s13 }
 0xb86   : > { %2531 = vrot.lane.b32.xlu1 %v5281_v8, %s4915_s13 }
 0xb8a   : > { %2622 = vrot.lane.b32.xlu1 %v5231_v26, %s4914_s12 }
 0xb8e   : > { %2533 = vrot.lane.b32.xlu1 %v5293_v19, %s4915_s13 }
 0xb92   : > { %2624 = vrot.lane.b32.xlu1 %v5243_v39, %s4914_s12 }
 0xb96   : > { %2620 = vrot.lane.b32.xlu1 %v5259_v17, %s4916_s14 }
 0xbad   : > { %v5866_v48 = vpop.xlane.xlu0 %2359 }
 0xbb1   : > { %v5868_v23 = vpop.xlane.xlu1 %2362  ;;  %v2354_v60 = vpop.xlane.xlu0 %2353 }
 0xbb2   : > { %4773 = vrcp.f32 %v2354_v60 }
 0xbb5   : > { %v2357_v18 = vpop.xlane.xlu1 %2356 }
 0xbb6   : > { %4775 = vrcp.f32 %v2357_v18 }
 0xbb9   : > { %v5870_v24 = vpop.xlane.xlu1 %2374  ;;  %v5872_v46 = vpop.xlane.xlu0 %2371 }
 0xbbc   : > { %v4774_v11 = vpop.eup %4773 }
 0xbbd   : > { %v2369_v15 = vpop.xlane.xlu1 %2368  ;;  %v2366_v28 = vpop.xlane.xlu0 %2365  ;;  %v2416_v17 = vmul.f32 %v4774_v11, %v5809_v20 }
 0xbc0   : > { %v4776_v7 = vpop.eup %4775 }
 0xbc1   : > { %v2291_v36 = vpop.xlane.xlu1 %2290  ;;  %v2288_v27 = vpop.xlane.xlu0 %2287  ;;  %v2417_v59 = vmul.f32 %v4776_v7, %v4764_v13 }
 0xbc2   : > { %v2314_v31 = vsub.f32 %v5789_v51, %v2288_v27  ;;  %v2315_v61 = vsub.f32 %v5793_v44, %v2291_v36 }
 0xbc3   : > { %v2432_v14 = vpack.c.bf16 %v2417_v59, %v2416_v17 }
 0xbc4   : > { %v2340_v35 = vmul.f32 1.442695, %v2314_v31  ;;  %v2342_v42 = vmul.f32 1.442695, %v2315_v61 }
 0xbc5   : > { %v2285_v62 = vpop.xlane.xlu1 %2284  ;;  %4315 = vmatprep.mubr.msk.bf16.mxu1 %vm979_vm2, %v2432_v14  ;;  %v2282_v5 = vpop.xlane.xlu0 %2281 }
 0xbc6   : > { %v2313_v60 = vsub.f32 %v5795_v50, %v2285_v62  ;;  %v2312_v18 = vsub.f32 %v5791_v0, %v2282_v5  ;;  %4777 = vpow2.f32 %v2340_v35 }
 0xbc8   : > { %v2338_v33 = vmul.f32 1.442695, %v2313_v60  ;;  %v2336_v55 = vmul.f32 1.442695, %v2312_v18 }
 0xbc9   : > { %v2300_v20 = vpop.xlane.xlu0 %2299  ;;  %v2443_v27 = vpop.permute.xlu1 %2442 }
 0xbca   : > { %4779 = vpow2.f32 %v2338_v33  ;;  %v2318_v51 = vsub.f32 %v5797_v25, %v2300_v20 }
 0xbcb   : > { %4781 = vpow2.f32 %v2336_v55 }
 0xbcc   : > { %v2348_v13 = vmul.f32 1.442695, %v2318_v51  ;;  %4783 = vpow2.f32 %v2342_v42 }
 0xbcd   : > { %v2294_v44 = vpop.xlane.xlu0 %2293 }
 0xbce   : > { %4785 = vpow2.f32 %v2348_v13  ;;  %v2316_v11 = vsub.f32 %v5799_v52, %v2294_v44 }
 0xbd0   : > { %v2344_v7 = vmul.f32 1.442695, %v2316_v11  ;;  %v5882_v36 = vpop.eup %4777 }
 0xbd1   : > { %v2441_v50 = vpop.permute.xlu0 %2440  ;;  %v2382_v0 = vsel %vm979_vm2, %v5882_v36, 0.0 }
 0xbd2   : > { %4787 = vpow2.f32 %v2344_v7  ;;  %4307 = vmatprep.subr.bf16.mxu1 %v2441_v50  ;;  %2383 = vadd.xlane.f32.xlu0 %v2382_v0 }
 0xbd3   : > { %4308 = vmatpush3.bf16.msra.mxu1 %v2441_v50  ;;  %4789 = vrcp.f32 %v5868_v23 }
 0xbd4   : > { %v5886_v33 = vpop.eup %4779  ;;  %4309 = vmatprep.subr.bf16.mxu1 %v2443_v27  ;;  %4791 = vrcp.f32 %v2369_v15 }
 0xbd5   : > { %v5888_v42 = vpop.eup %4781  ;;  %v2445_v55 = vpop.permute.xlu0 %2444  ;;  %v2379_v25 = vsel %vm979_vm2, %v5886_v33, 0.0  ;;  %4793 = vrcp.f32 %v2366_v28 }
 0xbd6   : > { %v2376_v52 = vsel %vm979_vm2, %v5888_v42, 0.0  ;;  %v5894_v17 = vpop.eup %4783  ;;  %2380 = vadd.xlane.f32.xlu0 %v2379_v25  ;;  %4795 = vrcp.f32 %v5866_v48 }
 0xbd7   : > { %2377 = vadd.xlane.f32.xlu1 %v2376_v52  ;;  %4310 = vmatpush3.bf16.msra.mxu1 %v2443_v27  ;;  %v2385_v35 = vsel %vm979_vm2, %v5894_v17, 0.0  ;;  %4797 = vrcp.f32 %v5870_v24 }
 0xbd8   : > { %v5896_v59 = vpop.eup %4785  ;;  %4311 = vmatprep.subr.bf16.mxu1 %v2445_v55  ;;  %4799 = vrcp.f32 %v5872_v46 }
 0xbd9   : > { %v2530_v31 = vpop.permute.xlu0 %2529  ;;  %v2394_v14 = vsel %vm979_vm2, %v5896_v59, 0.0 }
 0xbda   : > { %4323 = vmatprep.subr.bf16.mxu0 %v2530_v31  ;;  %2395 = vadd.xlane.f32.xlu0 %v2394_v14 }
 0xbdb   : > { %2386 = vadd.xlane.f32.xlu1 %v2385_v35  ;;  %4312 = vmatpush3.bf16.msra.mxu1 %v2445_v55 }
 0xbdc   : > { %v5902_v61 = vpop.eup %4787  ;;  %4324 = vmatpush3.bf16.msra.mxu0 %v2530_v31 }
 0xbdd   : > { %v2388_v62 = vsel %vm979_vm2, %v5902_v61, 0.0  ;;  %v4790_v18 = vpop.eup %4789 }
 0xbde   : > { %v4792_v51 = vpop.eup %4791  ;;  %v2419_v15 = vmul.f32 %v4790_v18, %v5811_v37  ;;  %v2536_v37 = vpop.permute.xlu0 %2535 }
 0xbdf   : > { %2389 = vadd.xlane.f32.xlu1 %v2388_v62  ;;  %v4794_v44 = vpop.eup %4793  ;;  %v2421_v24 = vmul.f32 %v4792_v51, %v5822_v29 }
 0xbe0   : > { %v4796_v23 = vpop.eup %4795  ;;  %v2420_v7 = vmul.f32 %v4794_v44, %v5828_v53 }
 0xbe1   : > { %v4798_v46 = vpop.eup %4797 }
 0xbe2   : > { %v4800_v0 = vpop.eup %4799  ;;  %v2434_v55 = vpack.c.bf16 %v2421_v24, %v2420_v7 }
 0xbe3   : > { %v2422_v29 = vmul.f32 %v4800_v0, %v5820_v4  ;;  %v2619_v4 = vpop.permute.xlu0 %2618 }
 0xbfa   : > { %v2303_v5 = vpop.xlane.xlu1 %2302 }
 0xbfb   : > { %v2319_v60 = vsub.f32 %v5801_v49, %v2303_v5  ;;  %v2418_v49 = vmul.f32 %v4796_v23, %v5805_v6  ;;  %v2423_v6 = vmul.f32 %v4798_v46, %v5818_v12 }
 0xbfd   : > { %v2350_v20 = vmul.f32 1.442695, %v2319_v60  ;;  %v2433_v50 = vpack.c.bf16 %v2419_v15, %v2418_v49  ;;  %v2435_v14 = vpack.c.bf16 %v2423_v6, %v2422_v29 }
 0xbfe   : > { %v2297_v13 = vpop.xlane.xlu1 %2296 }
 0xbff   : > { %4801 = vpow2.f32 %v2350_v20  ;;  %v2317_v11 = vsub.f32 %v5803_v30, %v2297_v13 }
 0xc01   : > { %v2346_v28 = vmul.f32 1.442695, %v2317_v11 }
 0xc02   : > { %v2447_v48 = vpop.permute.xlu1 %2446 }
 0xc03   : > { %4803 = vpow2.f32 %v2346_v28  ;;  %4313 = vmatprep.subr.bf16.mxu1 %v2447_v48 }
 0xc04   : > { %4314 = vmatpush3.bf16.msra.mxu1 %v2447_v48 }
 0xc06   : > { %v2532_v27 = vpop.permute.xlu1 %2531 }
 0xc07   : > { %4316 = vmatmul.mubr.msk.bf16.vlgmr.msra.gmra.mrb[36].mxu1 %vm979_vm2, %v2433_v50  ;;  %4325 = vmatprep.subr.bf16.mxu0 %v2532_v27 }
 0xc08   : > { %4319 = vmatprep.mubr.msk.bf16.mxu1 %vm979_vm2, %v2434_v55  ;;  %4326 = vmatpush3.bf16.msra.mxu0 %v2532_v27 }
 0xc09   : > { %v5918_v30 = vpop.eup %4801 }
 0xc0a   : > { %v2623_v53 = vpop.permute.xlu1 %2622  ;;  %v2397_v25 = vsel %vm979_vm2, %v5918_v30, 0.0 }
 0xc0b   : > { %v2633_v52 = vsel %vm788_vm1, %v2623_v53, 0  ;;  %2398 = vadd.xlane.f32.xlu1 %v2397_v25  ;;  %4483 = vmatprep.subr.msk.bf16.mxu1 %vm788_vm1, %v2623_v53 }
 0xc0d   : > { %v5926_v31 = vpop.eup %4803  ;;  %4340 = vmatpush3.bf16.xpose.msra.mxu1 %v2633_v52 }
 0xc0e   : > { %v2534_v35 = vpop.permute.xlu1 %2533  ;;  %v2391_v62 = vsel %vm979_vm2, %v5926_v31, 0.0 }
 0xc0f   : > { %2392 = vadd.xlane.f32.xlu0 %v2391_v62  ;;  %4320 = vmatmul.mubr.msk.bf16.gmra.mrb[40].mxu1 %vm979_vm2, %v2435_v14 }
 0xc10   : > { %4327 = vmatprep.subr.bf16.mxu0 %v2534_v35  ;;  %4343 = vmatprep.mubr.msk.bf16.mxu1 %vm788_vm1, %v2619_v4 }
 0xc11   : > { %4328 = vmatpush3.bf16.msra.mxu0 %v2534_v35 }
 0xc12   : > { %4329 = vmatprep.subr.bf16.mxu0 %v2536_v37  ;;  %v2625_v12 = vpop.permute.xlu1 %2624 }
 0xc13   : > { %v2636_v5 = vsel %vm788_vm1, %v2625_v12, 0  ;;  %4484 = vmatprep.subr.msk.bf16.mxu1 %vm788_vm1, %v2625_v12 }
 0xc15   : > { %4330 = vmatpush3.bf16.msra.mxu0 %v2536_v37  ;;  %4342 = vmatpush3.bf16.xpose.msra.mxu1 %v2636_v5 }
 0xc16   : > { %v2621_v60 = vpop.permute.xlu1 %2620 }
 0xc1c   : > { %2693 = vrot.lane.b32.xlu1 %v5283_v9, %s4914_s12  ;;  %4344 = vmatmul.mubr.msk.bf16.vlgmr.msra.gmra.mrb[44].mxu1 %vm788_vm1, %v2621_v60 }
 0xc20   : > { %2689 = vrot.lane.b32.xlu1 %v5305_v40, %s4916_s14 }
 0xc25   : > { %2691 = vrot.lane.b32.xlu0 %v5269_v21, %s4914_s12 }
 0xc29   : > { %2687 = vrot.lane.b32.xlu0 %v5293_v19, %s4916_s14 }
 0xc5f   : > { %v2384_v18 = vpop.xlane.xlu0 %2383 }
 0xc63   : > { %v2381_v51 = vpop.xlane.xlu0 %2380 }
 0xc64   : > { %v2378_v20 = vpop.xlane.xlu1 %2377 }
 0xc65   : > { %4805 = vrcp.f32 %v2378_v20 }
 0xc66   : > { %4807 = vrcp.f32 %v2381_v51 }
 0xc67   : > { %4809 = vrcp.f32 %v2384_v18  ;;  %v2396_v46 = vpop.xlane.xlu0 %2395 }
 0xc68   : > { %v2387_v13 = vpop.xlane.xlu1 %2386 }
 0xc69   : > { %4811 = vrcp.f32 %v2387_v13 }
 0xc6c   : > { %v2390_v49 = vpop.xlane.xlu1 %2389 }
 0xc6f   : > { %v4806_v44 = vpop.eup %4805 }
 0xc70   : > { %v4808_v11 = vpop.eup %4807  ;;  %v2424_v23 = vmul.f32 %v4806_v44, %v5888_v42 }
 0xc71   : > { %v4810_v15 = vpop.eup %4809  ;;  %v2425_v40 = vmul.f32 %v4808_v11, %v5886_v33 }
 0xc72   : > { %v2426_v7 = vmul.f32 %v4810_v15, %v5882_v36 }
 0xc73   : > { %v4812_v28 = vpop.eup %4811  ;;  %v2436_v48 = vpack.c.bf16 %v2425_v40, %v2424_v23 }
 0xc74   : > { %v2427_v19 = vmul.f32 %v4812_v28, %v5894_v17 }
 0xc75   : > { %4331 = vmatprep.mubr.msk.bf16.mxu0 %vm979_vm2, %v2436_v48 }
 0xc76   : > { %v2437_v24 = vpack.c.bf16 %v2427_v19, %v2426_v7 }
 0xc78   : > { %4332 = vmatmul.mubr.msk.bf16.vlgmr.msra.gmra.mrb[76].mxu0 %vm979_vm2, %v2437_v24 }
 0xc98   : > { %v2399_v50 = vpop.xlane.xlu1 %2398 }
 0xc99   : > { %4813 = vrcp.f32 %v2399_v50 }
 0xc9a   : > { %4815 = vrcp.f32 %v2390_v49 }
 0xc9b   : > { %4817 = vrcp.f32 %v2396_v46 }
 0xc9c   : > { %v2393_v42 = vpop.xlane.xlu0 %2392  ;;  %v2694_v36 = vpop.permute.xlu1 %2693 }
 0xc9d   : > { %4819 = vrcp.f32 %v2393_v42  ;;  %v2705_v25 = vsel %vm788_vm1, %v2694_v36, 0 }
 0xca0   : > { %v2692_v33 = vpop.permute.xlu0 %2691  ;;  %v2690_v4 = vpop.permute.xlu1 %2689 }
 0xca1   : > { %v2702_v0 = vsel %vm788_vm1, %v2692_v33, 0  ;;  %4485 = vmatprep.subr.msk.bf16.mxu0 %vm788_vm1, %v2692_v33 }
 0xca2   : > { %4348 = vmatpush3.bf16.xpose.msra.mxu0 %v2702_v0 }
 0xca3   : > { %4486 = vmatprep.subr.msk.bf16.mxu0 %vm788_vm1, %v2694_v36  ;;  %v4814_v17 = vpop.eup %4813 }
 0xca4   : > { %v4816_v27 = vpop.eup %4815  ;;  %v2431_v29 = vmul.f32 %v4814_v17, %v5918_v30  ;;  %v2688_v62 = vpop.permute.xlu0 %2687 }
 0xca5   : > { %v4818_v55 = vpop.eup %4817  ;;  %v2428_v6 = vmul.f32 %v4816_v27, %v5902_v61 }
 0xca6   : > { %v2430_v52 = vmul.f32 %v4818_v55, %v5896_v59 }
 0xca7   : > { %v4820_v37 = vpop.eup %4819 }
 0xca8   : > { %v2429_v53 = vmul.f32 %v4820_v37, %v5926_v31  ;;  %v2439_v35 = vpack.c.bf16 %v2431_v29, %v2430_v52 }
 0xcaa   : > { %4350 = vmatpush3.bf16.xpose.msra.mxu0 %v2705_v25  ;;  %v2438_v14 = vpack.c.bf16 %v2429_v53, %v2428_v6 }
 0xcac   : > { %4335 = vmatprep.mubr.msk.bf16.mxu0 %vm979_vm2, %v2438_v14 }
 0xcad   : > { %4336 = vmatmul.mubr.msk.bf16.gmra.mrb[80].mxu0 %vm979_vm2, %v2439_v35 }
 0xcae   : > { %4351 = vmatprep.mubr.msk.bf16.mxu0 %vm788_vm1, %v2688_v62 }
 0xcb5   : > { %4352 = vmatmul.mubr.msk.bf16.vlgmr.msra.gmra.mrb[84].mxu0 %vm788_vm1, %v2690_v4 }
 0xcda   : > { %v5961_v61 = vpop.f32.mrb[36].mxu1 }
 0xcdb   : > { %v5963_v30 = vpop.f32.mrb[37].mxu1 }
 0xcdc   : > { %v5965_v31 = vpop.f32.mrb[38].mxu1 }
 0xcdd   : > { %v5969_v12 = vpop.f32.mrb[39].mxu1 }
 0xcde   : > { %v4507_v5 = vpack.i.bf16 %v5969_v12, %v5963_v30 }
 0xce2   : > { %v5973_v60 = vpop.f32.mrb[40].mxu1 }
 0xce3   : > { %v5975_v18 = vpop.f32.mrb[41].mxu1 }
 0xce4   : > { %v5977_v20 = vpop.f32.mrb[42].mxu1 }
 0xce5   : > { %v5981_v13 = vpop.f32.mrb[43].mxu1 }
 0xce6   : > { %v4517_v44 = vpack.i.bf16 %v5981_v13, %v5975_v18  ;;  %v6448_v18 = vpack.i.bf16 %v5965_v31, %v5961_v61  ;;  %v6449_v13 = vpack.i.bf16 %v5977_v20, %v5973_v60 }
 0xcef   : > { %v4345_v11 = vpop.f32.mrb[44].mxu1 }
 0xcf0   : > { %v2672_v23 = vpop.f32.mrb[45].mxu1  ;;  %v2762_v7 = vsel %vm333_vm0, %v4345_v11, -inf }
 0xcf1   : > { %v4346_v15 = vpop.f32.mrb[46].mxu1  ;;  %v2756_v40 = vsel %vm333_vm0, %v2672_v23, -inf }
 0xcf2   : > { %2757 = vmax.xlane.f32.xlu0 %v2756_v40  ;;  %v2675_v28 = vpop.f32.mrb[47].mxu1  ;;  %v2765_v19 = vsel %vm333_vm0, %v4346_v15, -inf }
 0xcf3   : > { %v2759_v48 = vsel %vm333_vm0, %v2675_v28, -inf }
 0xcf4   : > { %2760 = vmax.xlane.f32.xlu1 %v2759_v48 }
 0xcf6   : > { %2763 = vmax.xlane.f32.xlu0 %v2762_v7 }
 0xcfa   : > { %2766 = vmax.xlane.f32.xlu0 %v2765_v19 }
 0xd4b   : > { %v5989_v24 = vpop.f32.mrb[76].mxu0 }
 0xd4c   : > { %v5991_v49 = vpop.f32.mrb[77].mxu0 }
 0xd4d   : > { %v5993_v46 = vpop.f32.mrb[78].mxu0 }
 0xd4e   : > { %v5997_v42 = vpop.f32.mrb[79].mxu0 }
 0xd4f   : > { %v6445_v30 = vpack.i.bf16 %v5997_v42, %v5991_v49 }
 0xd7f   : > { %v2758_v0 = vpop.xlane.xlu0 %2757 }
 0xd80   : > { %v2780_v36 = vsub.f32 %v2672_v23, %v2758_v0  ;;  %v6001_v17 = vpop.f32.mrb[80].mxu0 }
 0xd81   : > { %v2761_v27 = vpop.xlane.xlu1 %2760  ;;  %v6003_v55 = vpop.f32.mrb[81].mxu0 }
 0xd82   : > { %v2788_v37 = vmul.f32 1.442695, %v2780_v36  ;;  %v2781_v29 = vsub.f32 %v2675_v28, %v2761_v27  ;;  %v6005_v6 = vpop.f32.mrb[82].mxu0 }
 0xd83   : > { %v6009_v25 = vpop.f32.mrb[83].mxu0  ;;  %v2764_v52 = vpop.xlane.xlu0 %2763  ;;  %v6451_v49 = vpack.i.bf16 %v6005_v6, %v6001_v17 }
 0xd84   : > { %v2790_v14 = vmul.f32 1.442695, %v2781_v29  ;;  %v2782_v62 = vsub.f32 %v4345_v11, %v2764_v52  ;;  %4821 = vpow2.f32 %v2788_v37  ;;  %v6446_v12 = vpack.i.bf16 %v6009_v25, %v6003_v55 }
 0xd86   : > { %v2792_v4 = vmul.f32 1.442695, %v2782_v62  ;;  %4823 = vpow2.f32 %v2790_v14 }
 0xd87   : > { %v2767_v23 = vpop.xlane.xlu0 %2766 }
 0xd88   : > { %v2783_v40 = vsub.f32 %v4346_v15, %v2767_v23  ;;  %v4353_v48 = vpop.f32.mrb[84].mxu0  ;;  %4825 = vpow2.f32 %v2792_v4 }
 0xd89   : > { %v2741_v28 = vpop.f32.mrb[85].mxu0  ;;  %v2774_v11 = vsel %vm333_vm0, %v4353_v48, -inf }
 0xd8a   : > { %v2794_v7 = vmul.f32 1.442695, %v2783_v40  ;;  %v4354_v19 = vpop.f32.mrb[86].mxu0  ;;  %v2768_v0 = vsel %vm333_vm0, %v2741_v28, -inf }
 0xd8b   : > { %2769 = vmax.xlane.f32.xlu0 %v2768_v0  ;;  %v2744_v36 = vpop.f32.mrb[87].mxu0  ;;  %v2777_v15 = vsel %vm333_vm0, %v4354_v19, -inf }
 0xd8c   : > { %4827 = vpow2.f32 %v2794_v7  ;;  %v2771_v27 = vsel %vm333_vm0, %v2744_v36, -inf }
 0xd8d   : > { %2772 = vmax.xlane.f32.xlu1 %v2771_v27 }
 0xd8e   : > { %v6016_v37 = vpop.eup %4821 }
 0xd8f   : > { %2775 = vmax.xlane.f32.xlu0 %v2774_v11  ;;  %v2804_v52 = vsel %vm333_vm0, %v6016_v37, 0.0 }
 0xd90   : > { %v6019_v29 = vpop.eup %4823 }
 0xd91   : > { %2778 = vmax.xlane.f32.xlu1 %v2777_v15  ;;  %v2807_v62 = vsel %vm333_vm0, %v6019_v29, 0.0 }
 0xd92   : > { %v6023_v14 = vpop.eup %4825 }
 0xd93   : > { %2805 = vadd.xlane.f32.xlu0 %v2804_v52  ;;  %v2810_v23 = vsel %vm333_vm0, %v6023_v14, 0.0 }
 0xd95   : > { %2808 = vadd.xlane.f32.xlu1 %v2807_v62 }
 0xd96   : > { %v6027_v4 = vpop.eup %4827 }
 0xd97   : > { %2811 = vadd.xlane.f32.xlu0 %v2810_v23  ;;  %v2813_v40 = vsel %vm333_vm0, %v6027_v4, 0.0 }
 0xd99   : > { %2814 = vadd.xlane.f32.xlu1 %v2813_v40 }
 0xdaa   : > { %2850 = vrot.lane.b32.xlu1 %v5243_v39, %s4913_s10 }
 0xdad   : > { %2848 = vrot.lane.b32.xlu0 %v5231_v26, %s4913_s10 }
 0xdae   : > { %2909 = vrot.lane.b32.xlu1 %v5269_v21, %s4913_s10 }
 0xdb1   : > { %2974 = vrot.lane.b32.xlu0 %v5253_v10, %s4914_s12 }
 0xdb2   : > { %2976 = vrot.lane.b32.xlu1 %v5261_v57, %s4914_s12 }
 0xdb5   : > { %2911 = vrot.lane.b32.xlu0 %v5283_v9, %s4913_s10 }
 0xdb9   : > { %2970 = vrot.lane.b32.xlu0 %v5229_v16, %s4916_s14 }
 0xe18   : > { %v2770_v7 = vpop.xlane.xlu0 %2769 }
 0xe19   : > { %v2784_v39 = vsub.f32 %v2741_v28, %v2770_v7 }
 0xe1a   : > { %v2773_v0 = vpop.xlane.xlu1 %2772 }
 0xe1b   : > { %v2796_v27 = vmul.f32 1.442695, %v2784_v39  ;;  %v2785_v21 = vsub.f32 %v2744_v36, %v2773_v0 }
 0xe1c   : > { %v2776_v26 = vpop.xlane.xlu0 %2775 }
 0xe1d   : > { %4829 = vpow2.f32 %v2796_v27  ;;  %v2786_v11 = vsub.f32 %v4353_v48, %v2776_v26  ;;  %v2798_v53 = vmul.f32 1.442695, %v2785_v21 }
 0xe1e   : > { %v2779_v15 = vpop.xlane.xlu1 %2778 }
 0xe1f   : > { %v2800_v52 = vmul.f32 1.442695, %v2786_v11  ;;  %v2787_v62 = vsub.f32 %v4354_v19, %v2779_v15 }
 0xe20   : > { %v2806_v23 = vpop.xlane.xlu0 %2805 }
 0xe21   : > { %4831 = vpow2.f32 %v2800_v52  ;;  %v2802_v40 = vmul.f32 1.442695, %v2787_v62 }
 0xe22   : > { %4833 = vrcp.f32 %v2806_v23  ;;  %v2809_v9 = vpop.xlane.xlu1 %2808 }
 0xe23   : > { %4835 = vpow2.f32 %v2802_v40 }
 0xe24   : > { %4837 = vrcp.f32 %v2809_v9  ;;  %v2812_v16 = vpop.xlane.xlu0 %2811 }
 0xe25   : > { %4839 = vrcp.f32 %v2812_v16 }
 0xe26   : > { %4841 = vpow2.f32 %v2798_v53  ;;  %v2815_v28 = vpop.xlane.xlu1 %2814 }
 0xe27   : > { %v6047_v7 = vpop.eup %4829  ;;  %4843 = vrcp.f32 %v2815_v28 }
 0xe28   : > { %v2849_v48 = vpop.permute.xlu0 %2848  ;;  %v2816_v36 = vsel %vm333_vm0, %v6047_v7, 0.0 }
 0xe29   : > { %2817 = vadd.xlane.f32.xlu0 %v2816_v36  ;;  %4355 = vmatprep.subr.bf16.mxu1 %v2849_v48 }
 0xe2a   : > { %v2851_v19 = vpop.permute.xlu1 %2850  ;;  %4356 = vmatpush3.bf16.msra.mxu1 %v2849_v48 }
 0xe2b   : > { %v6051_v39 = vpop.eup %4831  ;;  %4357 = vmatprep.subr.bf16.mxu1 %v2851_v19 }
 0xe2c   : > { %v4834_v0 = vpop.eup %4833  ;;  %v2975_v27 = vpop.permute.xlu0 %2974  ;;  %v2822_v53 = vsel %vm333_vm0, %v6051_v39, 0.0 }
 0xe2d   : > { %v4836_v26 = vpop.eup %4835  ;;  %2823 = vadd.xlane.f32.xlu1 %v2822_v53  ;;  %v2836_v52 = vmul.f32 %v4834_v0, %v6016_v37 }
 0xe2e   : > { %v4838_v11 = vpop.eup %4837  ;;  %v2910_v21 = vpop.permute.xlu1 %2909  ;;  %4358 = vmatpush3.bf16.msra.mxu1 %v2851_v19  ;;  %v2825_v9 = vsel %vm333_vm0, %v4836_v26, 0.0 }
 0xe2f   : > { %v4840_v15 = vpop.eup %4839  ;;  %4363 = vmatprep.subr.bf16.mxu0 %v2910_v21  ;;  %4487 = vmatprep.subr.msk.bf16.mxu1 %vm788_vm1, %v2975_v27  ;;  %v2837_v62 = vmul.f32 %v4838_v11, %v6019_v29  ;;  %v2985_v29 = vsel %vm788_vm1, %v2975_v27, 0 }
 0xe30   : > { %v4842_v23 = vpop.eup %4841  ;;  %4364 = vmatpush3.bf16.msra.mxu0 %v2910_v21  ;;  %v2912_v40 = vpop.permute.xlu0 %2911  ;;  %v2838_v48 = vmul.f32 %v4840_v15, %v6023_v14 }
 0xe31   : > { %v4844_v16 = vpop.eup %4843  ;;  %2826 = vadd.xlane.f32.xlu1 %v2825_v9  ;;  %4365 = vmatprep.subr.bf16.mxu0 %v2912_v40  ;;  %v2844_v28 = vpack.c.bf16 %v2837_v62, %v2836_v52  ;;  %v2819_v37 = vsel %vm333_vm0, %v4842_v23, 0.0 }
 0xe32   : > { %v2839_v36 = vmul.f32 %v4844_v16, %v6027_v4  ;;  %v2977_v53 = vpop.permute.xlu1 %2976 }
 0xe33   : > { %4359 = vmatprep.mubr.msk.bf16.mxu1 %vm333_vm0, %v2844_v28  ;;  %v2988_v14 = vsel %vm788_vm1, %v2977_v53, 0 }
 0xe34   : > { %4366 = vmatpush3.bf16.msra.mxu0 %v2912_v40  ;;  %v2845_v19 = vpack.c.bf16 %v2839_v36, %v2838_v48  ;;  %v2971_v0 = vpop.permute.xlu0 %2970 }
 0xe35   : > { %2820 = vadd.xlane.f32.xlu1 %v2819_v37 }
 0xe36   : > { %4360 = vmatmul.mubr.msk.bf16.vlgmr.msra.gmra.mrb[48].mxu1 %vm333_vm0, %v2845_v19 }
 0xe37   : > { %4372 = vmatpush3.bf16.xpose.msra.mxu1 %v2985_v29  ;;  %4375 = vmatprep.mubr.msk.bf16.mxu1 %vm788_vm1, %v2971_v0 }
 0xe38   : > { %4488 = vmatprep.subr.msk.bf16.mxu1 %vm788_vm1, %v2977_v53 }
 0xe3f   : > { %3043 = vrot.lane.b32.xlu0 %v5295_v22, %s4914_s12  ;;  %4374 = vmatpush3.bf16.xpose.msra.mxu1 %v2988_v14 }
 0xe43   : > { %3039 = vrot.lane.b32.xlu0 %v5267_v2, %s4916_s14 }
 0xe46   : > { %2972 = vrot.lane.b32.xlu1 %v5241_v38, %s4916_s14 }
 0xe4a   : > { %3045 = vrot.lane.b32.xlu1 %v5307_v41, %s4914_s12 }
 0xe4e   : > { %3041 = vrot.lane.b32.xlu1 %v5281_v8, %s4916_s14 }
 0xeb6   : > { %v2818_v4 = vpop.xlane.xlu0 %2817 }
 0xeba   : > { %v2824_v27 = vpop.xlane.xlu1 %2823  ;;  %v3044_v11 = vpop.permute.xlu0 %3043 }
 0xebb   : > { %4489 = vmatprep.subr.msk.bf16.mxu0 %vm788_vm1, %v3044_v11  ;;  %v3054_v37 = vsel %vm788_vm1, %v3044_v11, 0 }
 0xebe   : > { %v2827_v21 = vpop.xlane.xlu1 %2826  ;;  %v3040_v19 = vpop.permute.xlu0 %3039 }
 0xebf   : > { %4845 = vrcp.f32 %v2827_v21 }
 0xec0   : > { %4847 = vrcp.f32 %v2818_v4 }
 0xec1   : > { %4849 = vrcp.f32 %v2824_v27 }
 0xec2   : > { %v2821_v15 = vpop.xlane.xlu1 %2820 }
 0xec3   : > { %4851 = vrcp.f32 %v2821_v15 }
 0xec6   : > { %v2973_v2 = vpop.permute.xlu1 %2972 }
 0xec7   : > { %4376 = vmatmul.mubr.msk.bf16.vlgmr.msra.gmra.mrb[52].mxu1 %vm788_vm1, %v2973_v2 }
 0xec9   : > { %v4846_v38 = vpop.eup %4845 }
 0xeca   : > { %v4848_v52 = vpop.eup %4847  ;;  %v2843_v9 = vmul.f32 %v4846_v38, %v4836_v26  ;;  %v3046_v29 = vpop.permute.xlu1 %3045 }
 0xecb   : > { %v4850_v62 = vpop.eup %4849  ;;  %v2840_v8 = vmul.f32 %v4848_v52, %v6047_v7  ;;  %v3057_v7 = vsel %vm788_vm1, %v3046_v29, 0 }
 0xecc   : > { %v2842_v28 = vmul.f32 %v4850_v62, %v6051_v39 }
 0xecd   : > { %v4852_v40 = vpop.eup %4851 }
 0xece   : > { %v2841_v16 = vmul.f32 %v4852_v40, %v4842_v23  ;;  %v2847_v36 = vpack.c.bf16 %v2843_v9, %v2842_v28  ;;  %v3042_v26 = vpop.permute.xlu1 %3041 }
 0xed0   : > { %v2846_v48 = vpack.c.bf16 %v2841_v16, %v2840_v8 }
 0xed2   : > { %4367 = vmatprep.mubr.msk.bf16.mxu0 %vm333_vm0, %v2846_v48 }
 0xed3   : > { %4368 = vmatmul.mubr.msk.bf16.vlgmr.msra.gmra.mrb[88].mxu0 %vm333_vm0, %v2847_v36 }
 0xed4   : > { %4380 = vmatpush3.bf16.xpose.msra.mxu0 %v3054_v37  ;;  %4383 = vmatprep.mubr.msk.bf16.mxu0 %vm788_vm1, %v3040_v19 }
 0xed5   : > { %4490 = vmatprep.subr.msk.bf16.mxu0 %vm788_vm1, %v3046_v29 }
 0xedc   : > { %4382 = vmatpush3.bf16.xpose.msra.mxu0 %v3057_v7 }
 0xee3   : > { %4384 = vmatmul.mubr.msk.bf16.vlgmr.msra.gmra.mrb[92].mxu0 %vm788_vm1, %v3042_v26 }
 0xf09   : > { %v6089_v39 = vpop.f32.mrb[48].mxu1 }
 0xf0a   : > { %v6091_v23 = vpop.f32.mrb[49].mxu1 }
 0xf0b   : > { %v6093_v0 = vpop.f32.mrb[50].mxu1 }
 0xf0c   : > { %v6097_v14 = vpop.f32.mrb[51].mxu1 }
 0xf9a   : > { %v4377_v27 = vpop.f32.mrb[52].mxu1 }
 0xf9b   : > { %v3024_v11 = vpop.f32.mrb[53].mxu1  ;;  %v3114_v52 = vsel %vm333_vm0, %v4377_v27, -inf }
 0xf9c   : > { %v4378_v21 = vpop.f32.mrb[54].mxu1  ;;  %v3108_v15 = vsel %vm333_vm0, %v3024_v11, -inf }
 0xf9d   : > { %3109 = vmax.xlane.f32.xlu0 %v3108_v15  ;;  %v3027_v2 = vpop.f32.mrb[55].mxu1  ;;  %v3117_v62 = vsel %vm333_vm0, %v4378_v21, -inf }
 0xf9e   : > { %v3111_v38 = vsel %vm333_vm0, %v3027_v2, -inf }
 0xf9f   : > { %3112 = vmax.xlane.f32.xlu1 %v3111_v38 }
 0xfa1   : > { %3115 = vmax.xlane.f32.xlu0 %v3114_v52 }
 0xfa5   : > { %3118 = vmax.xlane.f32.xlu0 %v3117_v62 }
 0xfa6   : > { %v6105_v40 = vpop.f32.mrb[88].mxu0 }
 0xfa7   : > { %v6107_v9 = vpop.f32.mrb[89].mxu0 }
 0xfa8   : > { %v6109_v8 = vpop.f32.mrb[90].mxu0 }
 0xfa9   : > { %v6113_v28 = vpop.f32.mrb[91].mxu0 }
 0xfb6   : > { %v4385_v36 = vpop.f32.mrb[92].mxu0 }
 0xfb7   : > { %v3093_v37 = vpop.f32.mrb[93].mxu0  ;;  %v3126_v15 = vsel %vm333_vm0, %v4385_v36, -inf }
 0xfb8   : > { %v4386_v19 = vpop.f32.mrb[94].mxu0  ;;  %v3120_v29 = vsel %vm333_vm0, %v3093_v37, -inf }
 0xfb9   : > { %3121 = vmax.xlane.f32.xlu0 %v3120_v29  ;;  %v3096_v7 = vpop.f32.mrb[95].mxu0  ;;  %v3129_v38 = vsel %vm333_vm0, %v4386_v19, -inf }
 0xfba   : > { %v3123_v26 = vsel %vm333_vm0, %v3096_v7, -inf }
 0xfbb   : > { %3124 = vmax.xlane.f32.xlu1 %v3123_v26 }
 0xfbd   : > { %3127 = vmax.xlane.f32.xlu0 %v3126_v15 }
 0xfbf   : > { %3130 = vmax.xlane.f32.xlu1 %v3129_v38 }
0x102a   : > { %v3110_v52 = vpop.xlane.xlu0 %3109 }
0x102b   : > { %v3132_v62 = vsub.f32 %v3024_v11, %v3110_v52 }
0x102c   : > { %v3113_v16 = vpop.xlane.xlu1 %3112 }
0x102d   : > { %v3140_v48 = vmul.f32 1.442695, %v3132_v62  ;;  %v3133_v53 = vsub.f32 %v3027_v2, %v3113_v16 }
0x102e   : > { %v3116_v50 = vpop.xlane.xlu0 %3115 }
0x102f   : > { %4853 = vpow2.f32 %v3140_v48  ;;  %v3142_v51 = vmul.f32 1.442695, %v3133_v53  ;;  %v3134_v59 = vsub.f32 %v4377_v27, %v3116_v50 }
0x1031   : > { %4855 = vpow2.f32 %v3142_v51  ;;  %v3144_v29 = vmul.f32 1.442695, %v3134_v59 }
0x1032   : > { %v3119_v4 = vpop.xlane.xlu0 %3118 }
0x1033   : > { %4857 = vpow2.f32 %v3144_v29  ;;  %v3135_v26 = vsub.f32 %v4378_v21, %v3119_v4 }
0x1035   : > { %v3146_v35 = vmul.f32 1.442695, %v3135_v26 }
0x1037   : > { %4859 = vpow2.f32 %v3146_v35 }
0x1039   : > { %v4854_v15 = vpop.eup %4853 }
0x103a   : > { %v3156_v33 = vsel %vm333_vm0, %v4854_v15, 0.0 }
0x103b   : > { %v4856_v38 = vpop.eup %4855  ;;  %3157 = vadd.xlane.f32.xlu0 %v3156_v33 }
0x103c   : > { %v3159_v11 = vsel %vm333_vm0, %v4856_v38, 0.0 }
0x103d   : > { %v6123_v52 = vpop.eup %4857  ;;  %3160 = vadd.xlane.f32.xlu1 %v3159_v11 }
0x103e   : > { %v3162_v50 = vsel %vm333_vm0, %v6123_v52, 0.0 }
0x103f   : > { %3163 = vadd.xlane.f32.xlu0 %v3162_v50 }
0x1041   : > { %v6127_v59 = vpop.eup %4859 }
0x1042   : > { %v3165_v51 = vsel %vm333_vm0, %v6127_v59, 0.0 }
0x1043   : > { %3166 = vadd.xlane.f32.xlu1 %v3165_v51 }
0x1046   : > { %v3122_v35 = vpop.xlane.xlu0 %3121 }
0x1047   : > { %v3136_v53 = vsub.f32 %v3093_v37, %v3122_v35 }
0x1048   : > { %v3125_v37 = vpop.xlane.xlu1 %3124 }
0x1049   : > { %v3148_v33 = vmul.f32 1.442695, %v3136_v53  ;;  %v3137_v26 = vsub.f32 %v3096_v7, %v3125_v37 }
0x104a   : > { %v3128_v4 = vpop.xlane.xlu0 %3127 }
0x104b   : > { %v3138_v27 = vsub.f32 %v4385_v36, %v3128_v4  ;;  %v3150_v11 = vmul.f32 1.442695, %v3137_v26 }
0x104c   : > { %v3131_v62 = vpop.xlane.xlu1 %3130 }
0x104d   : > { %v3152_v21 = vmul.f32 1.442695, %v3138_v27  ;;  %v3139_v29 = vsub.f32 %v4386_v19, %v3131_v62 }
0x104f   : > { %4861 = vpow2.f32 %v3152_v21 }
0x1050   : > { %4863 = vpow2.f32 %v3148_v33 }
0x1054   : > { %3202 = vrot.lane.b32.xlu1 %v5261_v57, %s4913_s10  ;;  %v3154_v57 = vmul.f32 1.442695, %v3139_v29 }
0x1056   : > { %4865 = vpow2.f32 %v3154_v57 }
0x1057   : > { %4867 = vpow2.f32 %v3150_v11 }
0x1058   : > { %3261 = vrot.lane.b32.xlu1 %v5295_v22, %s4913_s10 }
0x1059   : > { %v6135_v2 = vpop.eup %4861 }
0x105a   : > { %v3174_v16 = vsel %vm333_vm0, %v6135_v2, 0.0  ;;  %v6139_v48 = vpop.eup %4863 }
0x105b   : > { %3175 = vadd.xlane.f32.xlu0 %v3174_v16  ;;  %v3168_v36 = vsel %vm333_vm0, %v6139_v48, 0.0 }
0x105f   : > { %3169 = vadd.xlane.f32.xlu0 %v3168_v36 }
0x1060   : > { %v6145_v22 = vpop.eup %4865 }
0x1061   : > { %v3177_v50 = vsel %vm333_vm0, %v6145_v22, 0.0  ;;  %v6153_v51 = vpop.eup %4867 }
0x1075   : > { %3200 = vrot.lane.b32.xlu0 %v5253_v10, %s4913_s10  ;;  %v3171_v10 = vsel %vm333_vm0, %v6153_v51, 0.0 }
0x1079   : > { %4508 = vrot.lane.b32.xlu0 %v4507_v5, %s4916_s14  ;;  %v6447_v5 = vpack.i.bf16 %v6097_v14, %v6091_v23 }
0x107c   : > { %3178 = vadd.xlane.f32.xlu1 %v3177_v50 }
0x107d   : > { %4518 = vrot.lane.b32.xlu0 %v4517_v44, %s4916_s14  ;;  %v6450_v44 = vpack.i.bf16 %v5993_v46, %v5989_v24 }
0x1080   : > { %3172 = vadd.xlane.f32.xlu1 %v3171_v10 }
0x1081   : > { %4528 = vrot.lane.b32.xlu0 %v6445_v30, %s4916_s14 }
0x1085   : > { %4538 = vrot.lane.b32.xlu0 %v6446_v12, %s4916_s14 }
0x1089   : > { %4548 = vrot.lane.b32.xlu0 %v6447_v5, %s4916_s14 }
0x1091   : > { %3263 = vrot.lane.b32.xlu1 %v5307_v41, %s4913_s10  ;;  %v6452_v41 = vpack.i.bf16 %v6093_v0, %v6089_v39 }
0x1095   : > { %4513 = vrot.lane.b32.xlu1 %v6448_v18, %s4916_s14 }
0x1099   : > { %4523 = vrot.lane.b32.xlu1 %v6449_v13, %s4916_s14 }
0x109d   : > { %4533 = vrot.lane.b32.xlu1 %v6450_v44, %s4916_s14 }
0x10a1   : > { %4543 = vrot.lane.b32.xlu1 %v6451_v49, %s4916_s14 }
0x10a5   : > { %4553 = vrot.lane.b32.xlu1 %v6452_v41, %s4916_s14 }
0x10c8   : > { %v3158_v61 = vpop.xlane.xlu0 %3157 }
0x10c9   : > { %4869 = vrcp.f32 %v3158_v61 }
0x10ca   : > { %v3161_v31 = vpop.xlane.xlu1 %3160 }
0x10cb   : > { %4871 = vrcp.f32 %v3161_v31 }
0x10cc   : > { %v3164_v17 = vpop.xlane.xlu0 %3163 }
0x10d0   : > { %v3167_v60 = vpop.xlane.xlu1 %3166 }
0x10d1   : > { %4873 = vrcp.f32 %v3167_v60 }
0x10d2   : > { %4875 = vrcp.f32 %v3164_v17 }
0x10d3   : > { %v4870_v20 = vpop.eup %4869 }
0x10d4   : > { %v3203_v42 = vpop.permute.xlu1 %3202  ;;  %v3188_v24 = vmul.f32 %v4870_v20, %v4854_v15  ;;  %v4593_v15 = vld [vmem:[%s6421_s6] sm:$0xff]  }
0x10d5   : > { %v4872_v55 = vpop.eup %4871 }
0x10d6   : > { %v3189_v46 = vmul.f32 %v4872_v55, %v4856_v38 }
0x10d8   : > { %v3262_v25 = vpop.permute.xlu1 %3261  ;;  %v3196_v23 = vpack.c.bf16 %v3189_v46, %v3188_v24 }
0x10d9   : > { %4395 = vmatprep.subr.bf16.mxu0 %v3262_v25 }
0x10da   : > { %4391 = vmatprep.mubr.msk.bf16.mxu1 %vm333_vm0, %v3196_v23  ;;  %4396 = vmatpush3.bf16.msra.mxu0 %v3262_v25  ;;  %v6453_v23 = vld [vmem:[#allocation2_spill] sm:$0xff] }
0x10db   : > { %v4874_v0 = vpop.eup %4873 }
0x10dc   : > { %v4876_v19 = vpop.eup %4875  ;;  %v3191_v7 = vmul.f32 %v4874_v0, %v6127_v59  ;;  %v4594_v59 = vld [vmem:[%s6421_s6 + $0x8] sm:$0xff]  }
0x10dd   : > { %v3190_v35 = vmul.f32 %v4876_v19, %v6123_v52  ;;  %v4595_v52 = vld [vmem:[%s6420_s5] sm:$0xff]   ;;  %v4596_v19 = vld [vmem:[%s6420_s5 + $0x8] sm:$0xff]  }
0x10df   : > { %v3197_v21 = vpack.c.bf16 %v3191_v7, %v3190_v35 }
0x10e8   : > { %v3176_v6 = vpop.xlane.xlu0 %3175 }
0x10ec   : > { %v3170_v39 = vpop.xlane.xlu0 %3169 }
0x10f0   : > { %v3201_v14 = vpop.permute.xlu0 %3200 }
0x10f1   : > { %4387 = vmatprep.subr.bf16.mxu1 %v3201_v14 }
0x10f2   : > { %4388 = vmatpush3.bf16.msra.mxu1 %v3201_v14 }
0x10f3   : > { %4389 = vmatprep.subr.bf16.mxu1 %v3203_v42 }
0x10f4   : > { %v4509_v38 = vpop.permute.xlu0 %4508 }
0x10f5   : > { %v4511_v53 = vunpack.i.h.bf16 %v4509_v38  ;;  %v4510_v4 = vunpack.i.l.bf16 %v4509_v38  ;;  %v6454_v38 = vld [vmem:[#allocation4_spill] sm:$0xff] }
0x10f6   : > { %4390 = vmatpush3.bf16.msra.mxu1 %v3203_v42 }
0x10f7   : > { %v3387_v27 = vsel %vm788_vm1, %v5543_v63, %v4511_v53  ;;  %v3386_v33 = vsel %vm788_vm1, %v5539_v1, %v4510_v4  ;;  %4403 = vmatprep.subr.bf16.mxu1 %v4593_v15  ;;  %v6455_v53 = vld [vmem:[#allocation3_spill] sm:$0xff] }
0x10f8   : > { %v3494_v16 = vpack.c.bf16 %v3387_v27, %v3386_v33  ;;  %v4519_v37 = vpop.permute.xlu0 %4518 }
0x10f9   : > { %v4521_v36 = vunpack.i.h.bf16 %v4519_v37  ;;  %v4520_v62 = vunpack.i.l.bf16 %v4519_v37  ;;  %4392 = vmatmul.mubr.msk.bf16.vlgmr.msra.gmra.mrb[56].mxu1 %vm333_vm0, %v3197_v21  ;;  %v6456_v21 = vld [vmem:[#allocation6_spill] sm:$0xff] }
0x10fa   : > { %4407 = vmatprep.mubr.msk.bf16.mxu1 %vm333_vm0, %v3494_v16  ;;  %4404 = vmatpush3.bf16.msra.mxu1 %v4593_v15  ;;  %v6457_v16 = vld [vmem:[#allocation5_spill] sm:$0xff] }
0x10fb   : > { %v3391_v63 = vsel %vm788_vm1, %v5551_v47, %v4521_v36  ;;  %v3390_v1 = vsel %vm788_vm1, %v5547_v32, %v4520_v62  ;;  %4405 = vmatprep.subr.bf16.mxu1 %v4594_v59 }
0x10fc   : > { %v3496_v29 = vpack.c.bf16 %v3391_v63, %v3390_v1  ;;  %v4529_v26 = vpop.permute.xlu0 %4528 }
0x10fd   : > { %v4531_v57 = vunpack.i.h.bf16 %v4529_v26  ;;  %v4530_v11 = vunpack.i.l.bf16 %v4529_v26  ;;  %v6459_v26 = vld [vmem:[#allocation7_spill] sm:$0xff] }
0x10fe   : > { %4406 = vmatpush3.bf16.msra.mxu1 %v4594_v59 }
0x10ff   : > { %v6219_v50 = vsel %vm788_vm1, %v5560_v34, %v4531_v57  ;;  %v6223_v47 = vsel %vm788_vm1, %v5555_v58, %v4530_v11  ;;  %4423 = vmatprep.subr.bf16.mxu1 %v4595_v52 }
0x1100   : > { %v3498_v32 = vpack.c.bf16 %v6219_v50, %v6223_v47  ;;  %v4539_v10 = vpop.permute.xlu0 %4538 }
0x1101   : > { %v4541_v30 = vunpack.i.h.bf16 %v4539_v10  ;;  %v4540_v12 = vunpack.i.l.bf16 %v4539_v10 }
0x1103   : > { %v6229_v5 = vsel %vm788_vm1, %v5571_v43, %v4541_v30  ;;  %v6233_v18 = vsel %vm788_vm1, %v5567_v56, %v4540_v12 }
0x1104   : > { %v3500_v34 = vpack.c.bf16 %v6229_v5, %v6233_v18  ;;  %v4549_v58 = vpop.permute.xlu0 %4548  ;;  %v6462_v5 = vpack.i.bf16 %v6109_v8, %v6105_v40  ;;  %v6463_v18 = vpack.i.bf16 %v6113_v28, %v6107_v9  ;;  %v6309_v40 = vld [vmem:[%s6422_s7] ss:$0 sm:$0xff] }
0x1105   : > { %v4551_v13 = vunpack.i.h.bf16 %v4549_v58  ;;  %v4550_v44 = vunpack.i.l.bf16 %v4549_v58  ;;  %v6460_v58 = vld [vmem:[#allocation10_spill] sm:$0xff] }
0x1107   : > { %v6239_v49 = vsel %vm788_vm1, %v5639_v54, %v4551_v13  ;;  %v6243_v41 = vsel %vm788_vm1, %v5635_v45, %v4550_v44  ;;  %v6461_v44 = vld [vmem:[#allocation9_spill] sm:$0xff] }
0x1108   : > { %v3482_v43 = vpack.c.bf16 %v6239_v49, %v6243_v41 }
0x1109   : > { %v3179_v61 = vpop.xlane.xlu1 %3178 }
0x110a   : > { %4877 = vrcp.f32 %v3179_v61 }
0x110b   : > { %4879 = vrcp.f32 %v3170_v39 }
0x110c   : > { %4881 = vrcp.f32 %v3176_v6 }
0x110d   : > { %v3173_v56 = vpop.xlane.xlu1 %3172 }
0x110e   : > { %4883 = vrcp.f32 %v3173_v56 }
0x1111   : > { %v3264_v31 = vpop.permute.xlu1 %3263 }
0x1112   : > { %4397 = vmatprep.subr.bf16.mxu0 %v3264_v31 }
0x1113   : > { %4398 = vmatpush3.bf16.msra.mxu0 %v3264_v31 }
0x1114   : > { %v4878_v60 = vpop.eup %4877 }
0x1115   : > { %v4514_v20 = vpop.permute.xlu1 %4513  ;;  %v4880_v54 = vpop.eup %4879  ;;  %v3195_v46 = vmul.f32 %v4878_v60, %v6145_v22 }
0x1116   : > { %v4516_v42 = vunpack.i.h.bf16 %v4514_v20  ;;  %v4515_v55 = vunpack.i.l.bf16 %v4514_v20  ;;  %v4882_v24 = vpop.eup %4881  ;;  %v3192_v0 = vmul.f32 %v4880_v54, %v6139_v48 }
0x1117   : > { %v3194_v7 = vmul.f32 %v4882_v24, %v6135_v2 }
0x1118   : > { %v4884_v45 = vpop.eup %4883  ;;  %v3389_v25 = vsel %vm788_vm1, %v5541_v3, %v4516_v42  ;;  %v3388_v17 = vsel %vm788_vm1, %v6453_v23, %v4515_v55 }
0x1119   : > { %v3495_v6 = vpack.c.bf16 %v3389_v25, %v3388_v17  ;;  %v4524_v39 = vpop.permute.xlu1 %4523  ;;  %v3193_v14 = vmul.f32 %v4884_v45, %v6153_v51  ;;  %v3199_v48 = vpack.c.bf16 %v3195_v46, %v3194_v7  ;;  %v4885_v45 = vld [vmem:[%s4978_s11 + $0x10] sm:$0xff]  ;;  %v4886_v17 = vld [vmem:[%s4978_s11] sm:$0xff] }
0x111a   : > { %v4526_v15 = vunpack.i.h.bf16 %v4524_v39  ;;  %v4525_v22 = vunpack.i.l.bf16 %v4524_v39 }
0x111b   : > { %4408 = vmatmul.mubr.msk.bf16.vlgmr.msra.gmra.mrb[60].mxu1 %vm333_vm0, %v3495_v6  ;;  %v3198_v3 = vpack.c.bf16 %v3193_v14, %v3192_v0  ;;  %v4887_v0 = vld [vmem:[%s4978_s11 + $0x18] sm:$0xff] }
0x111c   : > { %v3393_v35 = vsel %vm788_vm1, %v6454_v38, %v4526_v15  ;;  %v3392_v4 = vsel %vm788_vm1, %v6455_v53, %v4525_v22  ;;  %4411 = vmatprep.mubr.msk.bf16.mxu1 %vm333_vm0, %v3496_v29  ;;  %4424 = vmatpush3.bf16.msra.mxu1 %v4595_v52  ;;  %v6458_v52 = vld [vmem:[#allocation8_spill] sm:$0xff] }
0x111d   : > { %v3497_v51 = vpack.c.bf16 %v3393_v35, %v3392_v4  ;;  %v4534_v27 = vpop.permute.xlu1 %4533  ;;  %4399 = vmatprep.mubr.msk.bf16.mxu0 %vm333_vm0, %v3198_v3  ;;  %4425 = vmatprep.subr.bf16.mxu1 %v4596_v19  ;;  %v6464_v4 = vld [vmem:[#allocation17_spill] sm:$0xff] }
0x111e   : > { %v4536_v2 = vunpack.i.h.bf16 %v4534_v27  ;;  %v4535_v33 = vunpack.i.l.bf16 %v4534_v27  ;;  %4400 = vmatmul.mubr.msk.bf16.vlgmr.msra.gmra.mrb[96].mxu0 %vm333_vm0, %v3199_v48 }
0x1120   : > { %v3397_v59 = vsel %vm788_vm1, %v6456_v21, %v4536_v2  ;;  %v3396_v37 = vsel %vm788_vm1, %v6457_v16, %v4535_v33  ;;  %4426 = vmatpush3.bf16.msra.mxu1 %v4596_v19  ;;  %v4888_v19 = vld [vmem:[%s4978_s11 + $0x8] sm:$0xff]  ;;  %v6466_v33 = vld [vmem:[#allocation18_spill] sm:$0xff] }
0x1121   : > { %v3499_v36 = vpack.c.bf16 %v3397_v59, %v3396_v37  ;;  %v4544_v62 = vpop.permute.xlu1 %4543  ;;  %v6467_v59 = vld [vmem:[#allocation16_spill] sm:$0xff] }
0x1122   : > { %v4546_v63 = vunpack.i.h.bf16 %v4544_v62  ;;  %v4545_v1 = vunpack.i.l.bf16 %v4544_v62 }
0x1123   : > { %4412 = vmatmul.mubr.msk.bf16.gmra.mrb[64].mxu1 %vm333_vm0, %v3497_v51  ;;  %v6465_v51 = vld [vmem:[#allocation15_spill] sm:$0xff] }
0x1124   : > { %v3401_v29 = vsel %vm788_vm1, %v6458_v52, %v4546_v63  ;;  %v3400_v57 = vsel %vm788_vm1, %v6459_v26, %v4545_v1  ;;  %4415 = vmatprep.mubr.msk.bf16.mxu1 %vm333_vm0, %v3498_v32  ;;  %v6468_v26 = vld [vmem:[#allocation13_spill] sm:$0xff] }
0x1125   : > { %v3501_v11 = vpack.c.bf16 %v3401_v29, %v3400_v57  ;;  %v4554_v10 = vpop.permute.xlu1 %4553 }
0x1126   : > { %v4556_v30 = vunpack.i.h.bf16 %v4554_v10  ;;  %v4555_v12 = vunpack.i.l.bf16 %v4554_v10 }
0x1128   : > { %v3469_v13 = vsel %vm788_vm1, %v6460_v58, %v4556_v30  ;;  %v3468_v61 = vsel %vm788_vm1, %v6461_v44, %v4555_v12  ;;  %v6470_v12 = vld [vmem:[#allocation14_spill] sm:$0xff] }
0x1129   : > { %v3483_v56 = vpack.c.bf16 %v3469_v13, %v3468_v61  ;;  %v6471_v13 = vld [vmem:[#allocation12_spill] sm:$0xff] }
0x112b   : > { %4416 = vmatmul.mubr.msk.bf16.gmra.mrb[68].mxu1 %vm333_vm0, %v3499_v36 }
0x112c   : > { %4419 = vmatprep.mubr.msk.bf16.mxu1 %vm333_vm0, %v3500_v34 }
0x1133   : > { %4420 = vmatmul.mubr.msk.bf16.gmra.mrb[72].mxu1 %vm333_vm0, %v3501_v11  ;;  %v6469_v11 = vld [vmem:[#allocation11_spill] sm:$0xff] }
0x1134   : > { %4427 = vmatprep.mubr.msk.bf16.mxu1 %vm333_vm0, %v3482_v43 }
0x113b   : > { %4428 = vmatmul.mubr.msk.bf16.vlgmr.msra.gmra.mrb[60].mxu1 %vm333_vm0, %v3483_v56 }
0x11cc   : > { %v4393_v50 = vpop.f32.mrb[56].mxu1 }
0x11cd   : > { %v3246_v47 = vpop.f32.mrb[57].mxu1 }
0x11ce   : > { %v4394_v32 = vpop.f32.mrb[58].mxu1 }
0x11cf   : > { %v4562_v31 = vpack.i.bf16 %v4394_v32, %v4393_v50  ;;  %v3249_v60 = vpop.f32.mrb[59].mxu1 }
0x11d0   : > { %v4557_v20 = vpack.i.bf16 %v3249_v60, %v3246_v47 }
0x11d1   : > { %4563 = vrot.lane.b32.xlu1 %v4562_v31, %s4916_s14 }
0x11d2   : > { %4558 = vrot.lane.b32.xlu0 %v4557_v20, %s4916_s14  ;;  %v6472_v20 = vld [vmem:[#allocation21_spill] sm:$0xff] }
0x11d5   : > { %4573 = vrot.lane.b32.xlu1 %v6462_v5, %s4916_s14 }
0x11d6   : > { %4568 = vrot.lane.b32.xlu0 %v6463_v18, %s4916_s14  ;;  %v6473_v18 = vld [vmem:[#allocation19_spill] sm:$0xff] }
0x11f1   : > { %v4401_v34 = vpop.f32.mrb[96].mxu0 }
0x11f2   : > { %v3307_v49 = vpop.f32.mrb[97].mxu0 }
0x11f3   : > { %v4402_v41 = vpop.f32.mrb[98].mxu0 }
0x11f4   : > { %v4582_v43 = vpack.i.bf16 %v4402_v41, %v4401_v34  ;;  %v3310_v54 = vpop.f32.mrb[99].mxu0  ;;  %v6474_v41 = vld [vmem:[#allocation22_spill] sm:$0xff] }
0x11f5   : > { %v4577_v42 = vpack.i.bf16 %v3310_v54, %v3307_v49  ;;  %v6475_v54 = vld [vmem:[#allocation20_spill] sm:$0xff] }
0x11f6   : > { %4583 = vrot.lane.b32.xlu1 %v4582_v43, %s4916_s14 }
0x11f7   : > { %4578 = vrot.lane.b32.xlu0 %v4577_v42, %s4916_s14 }
0x120e   : > { %v4429_v9 = vpop.f32.mrb[60].mxu1 }
0x120f   : > { %v3781_v8 = vadd.f32 %v4429_v9, %v6309_v40  ;;  %v3709_v28 = vpop.f32.mrb[61].mxu1 }
0x1210   : > { %v3779_v55 = vadd.f32 %v6309_v40, %v3709_v28  ;;  %v4430_v24 = vpop.f32.mrb[62].mxu1 }
0x1211   : > { %v3797_v46 = vadd.f32 %v4885_v45, %v3781_v8  ;;  %v3782_v25 = vadd.f32 %v4430_v24, %v6309_v40  ;;  %v3712_v23 = vpop.f32.mrb[63].mxu1 }
0x1212   : > { %v3795_v6 = vadd.f32 %v4886_v17, %v3779_v55  ;;  %v3780_v39 = vadd.f32 %v6309_v40, %v3712_v23 }
0x1213   : > { %3813 = vst.msk [vmem:[%s6317_s28 + $0x10] sm:$0xff] %vm333_vm0, %v3797_v46  ;;  %v3798_v14 = vadd.f32 %v4887_v0, %v3782_v25  ;;  %v4889_v46 = vld [vmem:[%s4978_s11 + $0x30] sm:$0xff] }
0x1214   : > { %3811 = vst.msk [vmem:[%s6317_s28] sm:$0xff] %vm333_vm0, %v3795_v6  ;;  %v3796_v7 = vadd.f32 %v4888_v19, %v3780_v39  ;;  %v4890_v6 = vld [vmem:[%s4978_s11 + $0x20] sm:$0xff] }
0x1215   : > { %3814 = vst.msk [vmem:[%s6317_s28 + $0x18] sm:$0xff] %vm333_vm0, %v3798_v14  ;;  %v4891_v14 = vld [vmem:[%s4978_s11 + $0x38] sm:$0xff] }
0x1216   : > { %3812 = vst.msk [vmem:[%s6317_s28 + $0x8] sm:$0xff] %vm333_vm0, %v3796_v7  ;;  %v4892_v7 = vld [vmem:[%s4978_s11 + $0x28] sm:$0xff] }
0x1243   : > { %v4564_v15 = vpop.permute.xlu1 %4563 }
0x1244   : > { %v4566_v22 = vunpack.i.h.bf16 %v4564_v15  ;;  %v4565_v3 = vunpack.i.l.bf16 %v4564_v15  ;;  %v4559_v38 = vpop.permute.xlu0 %4558 }
0x1245   : > { %v4561_v35 = vunpack.i.h.bf16 %v4559_v38  ;;  %v4560_v53 = vunpack.i.l.bf16 %v4559_v38 }
0x1246   : > { %v3473_v48 = vsel %vm788_vm1, %v6464_v4, %v4566_v22  ;;  %v3472_v27 = vsel %vm788_vm1, %v6465_v51, %v4565_v3  ;;  %v4893_v4 = vld [vmem:[%s4978_s11 + $0x50] sm:$0xff] }
0x1247   : > { %v3485_v2 = vpack.c.bf16 %v3473_v48, %v3472_v27  ;;  %v3471_v21 = vsel %vm788_vm1, %v6466_v33, %v4561_v35  ;;  %v3470_v16 = vsel %vm788_vm1, %v6467_v59, %v4560_v53  ;;  %v4574_v37 = vpop.permute.xlu1 %4573  ;;  %v4895_v59 = vld [vmem:[%s4978_s11 + $0x58] sm:$0xff] }
0x1248   : > { %v3484_v36 = vpack.c.bf16 %v3471_v21, %v3470_v16  ;;  %v4576_v62 = vunpack.i.h.bf16 %v4574_v37  ;;  %v4575_v63 = vunpack.i.l.bf16 %v4574_v37  ;;  %v4569_v1 = vpop.permute.xlu0 %4568  ;;  %v4896_v37 = vld [vmem:[%s4978_s11 + $0x48] sm:$0xff] }
0x1249   : > { %v4571_v52 = vunpack.i.h.bf16 %v4569_v1  ;;  %v4570_v29 = vunpack.i.l.bf16 %v4569_v1 }
0x124a   : > { %v3477_v57 = vsel %vm788_vm1, %v6468_v26, %v4576_v62  ;;  %v3476_v10 = vsel %vm788_vm1, %v6469_v11, %v4575_v63  ;;  %4431 = vmatprep.mubr.msk.bf16.mxu1 %vm333_vm0, %v3484_v36  ;;  %v4897_v26 = vld [vmem:[%s4978_s11 + $0x70] sm:$0xff] }
0x124b   : > { %v3487_v30 = vpack.c.bf16 %v3477_v57, %v3476_v10  ;;  %v3475_v58 = vsel %vm788_vm1, %v6470_v12, %v4571_v52  ;;  %v3474_v44 = vsel %vm788_vm1, %v6471_v13, %v4570_v29  ;;  %4432 = vmatmul.mubr.msk.bf16.gmra.mrb[64].mxu1 %vm333_vm0, %v3485_v2  ;;  %v4894_v2 = vld [vmem:[%s4978_s11 + $0x40] sm:$0xff]  ;;  %v4899_v13 = vld [vmem:[%s4978_s11 + $0x78] sm:$0xff] }
0x124c   : > { %v3486_v61 = vpack.c.bf16 %v3475_v58, %v3474_v44 }
0x124e   : > { %4435 = vmatprep.mubr.msk.bf16.mxu1 %vm333_vm0, %v3486_v61  ;;  %v4900_v61 = vld [vmem:[%s4978_s11 + $0x68] sm:$0xff] }
0x1253   : > { %4436 = vmatmul.mubr.msk.bf16.gmra.mrb[68].mxu1 %vm333_vm0, %v3487_v30  ;;  %v4898_v30 = vld [vmem:[%s4978_s11 + $0x60] sm:$0xff] }
0x1268   : > { %v4584_v56 = vpop.permute.xlu1 %4583 }
0x1269   : > { %v4586_v50 = vunpack.i.h.bf16 %v4584_v56  ;;  %v4585_v47 = vunpack.i.l.bf16 %v4584_v56  ;;  %v4579_v32 = vpop.permute.xlu0 %4578 }
0x126a   : > { %v4581_v31 = vunpack.i.h.bf16 %v4579_v32  ;;  %v4580_v60 = vunpack.i.l.bf16 %v4579_v32 }
0x126b   : > { %v3481_v5 = vsel %vm788_vm1, %v6472_v20, %v4586_v50  ;;  %v3480_v34 = vsel %vm788_vm1, %v6473_v18, %v4585_v47 }
0x126c   : > { %v3489_v49 = vpack.c.bf16 %v3481_v5, %v3480_v34  ;;  %v3479_v43 = vsel %vm788_vm1, %v6474_v41, %v4581_v31  ;;  %v3478_v42 = vsel %vm788_vm1, %v6475_v54, %v4580_v60 }
0x126d   : > { %v3488_v9 = vpack.c.bf16 %v3479_v43, %v3478_v42 }
0x126f   : > { %4439 = vmatprep.mubr.msk.bf16.mxu1 %vm333_vm0, %v3488_v9 }
0x1270   : > { %4440 = vmatmul.mubr.msk.bf16.gmra.mrb[72].mxu1 %vm333_vm0, %v3489_v49 }
0x131e   : > { %v4433_v8 = vpop.f32.mrb[64].mxu1 }
0x131f   : > { %v3785_v28 = vadd.f32 %v4433_v8, %v6309_v40  ;;  %v3725_v55 = vpop.f32.mrb[65].mxu1 }
0x1320   : > { %v3783_v24 = vadd.f32 %v6309_v40, %v3725_v55  ;;  %v4434_v45 = vpop.f32.mrb[66].mxu1 }
0x1321   : > { %v3801_v25 = vadd.f32 %v4889_v46, %v3785_v28  ;;  %v3786_v23 = vadd.f32 %v4434_v45, %v6309_v40  ;;  %v3728_v17 = vpop.f32.mrb[67].mxu1 }
0x1322   : > { %v3799_v39 = vadd.f32 %v4890_v6, %v3783_v24  ;;  %v3784_v0 = vadd.f32 %v6309_v40, %v3728_v17 }
0x1323   : > { %3817 = vst.msk [vmem:[%s6317_s28 + $0x30] sm:$0xff] %vm333_vm0, %v3801_v25  ;;  %v3802_v19 = vadd.f32 %v4891_v14, %v3786_v23 }
0x1324   : > { %3815 = vst.msk [vmem:[%s6317_s28 + $0x20] sm:$0xff] %vm333_vm0, %v3799_v39  ;;  %v3800_v15 = vadd.f32 %v4892_v7, %v3784_v0 }
0x1325   : > { %3818 = vst.msk [vmem:[%s6317_s28 + $0x38] sm:$0xff] %vm333_vm0, %v3802_v19 }
0x1326   : > { %3816 = vst.msk [vmem:[%s6317_s28 + $0x28] sm:$0xff] %vm333_vm0, %v3800_v15  ;;  %v4437_v22 = vpop.f32.mrb[68].mxu1 }
0x1327   : > { %v3789_v3 = vadd.f32 %v4437_v22, %v6309_v40  ;;  %v3741_v38 = vpop.f32.mrb[69].mxu1 }
0x1328   : > { %v3787_v35 = vadd.f32 %v6309_v40, %v3741_v38  ;;  %v4438_v53 = vpop.f32.mrb[70].mxu1 }
0x1329   : > { %v3805_v48 = vadd.f32 %v4893_v4, %v3789_v3  ;;  %v3790_v51 = vadd.f32 %v4438_v53, %v6309_v40  ;;  %v3744_v27 = vpop.f32.mrb[71].mxu1 }
0x132a   : > { %v3803_v33 = vadd.f32 %v4894_v2, %v3787_v35  ;;  %v3788_v21 = vadd.f32 %v6309_v40, %v3744_v27 }
0x132b   : > { %3821 = vst.msk [vmem:[%s6317_s28 + $0x50] sm:$0xff] %vm333_vm0, %v3805_v48  ;;  %v3806_v16 = vadd.f32 %v4895_v59, %v3790_v51 }
0x132c   : > { %3819 = vst.msk [vmem:[%s6317_s28 + $0x40] sm:$0xff] %vm333_vm0, %v3803_v33  ;;  %v3804_v36 = vadd.f32 %v4896_v37, %v3788_v21 }
0x132d   : > { %3822 = vst.msk [vmem:[%s6317_s28 + $0x58] sm:$0xff] %vm333_vm0, %v3806_v16 }
0x132e   : > { %3820 = vst.msk [vmem:[%s6317_s28 + $0x48] sm:$0xff] %vm333_vm0, %v3804_v36 }
0x1343   : > { %v4441_v62 = vpop.f32.mrb[72].mxu1 }
0x1344   : > { %v3793_v63 = vadd.f32 %v4441_v62, %v6309_v40  ;;  %v3757_v1 = vpop.f32.mrb[73].mxu1 }
0x1345   : > { %v3791_v52 = vadd.f32 %v6309_v40, %v3757_v1  ;;  %v4442_v29 = vpop.f32.mrb[74].mxu1 }
0x1346   : > { %v3809_v57 = vadd.f32 %v4897_v26, %v3793_v63  ;;  %v3794_v11 = vadd.f32 %v4442_v29, %v6309_v40  ;;  %v3760_v10 = vpop.f32.mrb[75].mxu1 }
0x1347   : > { %v3807_v12 = vadd.f32 %v4898_v30, %v3791_v52  ;;  %v3792_v58 = vadd.f32 %v6309_v40, %v3760_v10 }
0x1348   : > { %3825 = vst.msk [vmem:[%s6317_s28 + $0x70] sm:$0xff] %vm333_vm0, %v3809_v57  ;;  %v3810_v44 = vadd.f32 %v4899_v13, %v3794_v11 }
0x1349   : > { %3823 = vst.msk [vmem:[%s6317_s28 + $0x60] sm:$0xff] %vm333_vm0, %v3807_v12  ;;  %v3808_v56 = vadd.f32 %v4900_v61, %v3792_v58 }
0x134a   : > { %3826 = vst.msk [vmem:[%s6317_s28 + $0x78] sm:$0xff] %vm333_vm0, %v3810_v44 }
0x134b   : > { %3824 = vst.msk [vmem:[%s6317_s28 + $0x68] sm:$0xff] %vm333_vm0, %v3808_v56 }
0x134c PF: > { %s18_s27 = sadd.s32 1, %s4907_s27  }
0x134d   : > { %p15_p4 = scmp.ge.s32.totalorder %s18_s27, 4  }
0x134f   :  { %17 = sbr.rel (!%p15_p4) target bundleno = 1 (0x1), region = 82 }

</bundles_post_ra>
